<compile_context>
chip_gen: v7x
topology: tpu7x:2x2x1
jax: 0.10.0
libtpu: 0.0.40
codegen_flags: <defaults>
</compile_context>

<pallas_src>
import functools

import jax
import jax.numpy as jnp
from jax.experimental import pallas as pl
from jax.experimental.pallas import tpu as pltpu


def _round_up(n, m):
    return ((n + m - 1) // m) * m


# ----------------------------- Fused Pallas kernel ---------------------------

def _make_fused_kernel(num_layers, S, B, Hp, O):
    """Fused kernel for static (num_layers, S, B, padded hidden Hp, output O)."""

    def kernel(*refs):
        # refs = (x2d, [w_ih_t, w_hh_t, b] * L, w_fc, b_fc, out, act_sc)
        x_ref = refs[0]
        idx = 1
        layer_refs = []
        for _ in range(num_layers):
            layer_refs.append((refs[idx], refs[idx + 1], refs[idx + 2]))
            idx += 3
        wfc_ref = refs[idx]
        bfc_ref = refs[idx + 1]
        out_ref = refs[idx + 2]
        act_sc = refs[idx + 3]            # (S*B, Hp) f32 VMEM: inter-layer activations

        h = None
        for l in range(num_layers):
            wih_ref, whh_ref, b_ref = layer_refs[l]
            whh = whh_ref[...]            # bf16 (Hp, 4Hp), loaded once per layer

            # Hoisted input projection: one bf16 matmul over all S timesteps, f32 acc.
            if l == 0:
                lhs = x_ref[...].astype(jnp.bfloat16)          # (S*B, In)
            else:
                lhs = act_sc[...].astype(jnp.bfloat16)         # (S*B, Hp)
            gpre = (jnp.dot(lhs, wih_ref[...], preferred_element_type=jnp.float32)
                    + b_ref[...])                              # (S*B, 4Hp) f32

            h = jnp.zeros((B, Hp), jnp.float32)
            c = jnp.zeros((B, Hp), jnp.float32)
            # Fully-unrolled static time loop (S is small & static).
            # TODO(synk): for large S switch to lax.fori_loop with gpre staged in VMEM.
            for t in range(S):
                gates = gpre[t * B:(t + 1) * B, :] + jnp.dot(
                    h.astype(jnp.bfloat16), whh, preferred_element_type=jnp.float32)
                # Gate columns are [ i | f | o | g ], each a full 128-lane tile:
                # one contiguous sigmoid slab + one tanh slab, tile-aligned slices.
                sig = jax.nn.sigmoid(gates[:, :3 * Hp])
                g_g = jnp.tanh(gates[:, 3 * Hp:])
                i_g = sig[:, :Hp]
                f_g = sig[:, Hp:2 * Hp]
                o_g = sig[:, 2 * Hp:3 * Hp]
                c = f_g * c + i_g * g_g
                h = o_g * jnp.tanh(c)
                if l < num_layers - 1:
                    act_sc[t * B:(t + 1) * B, :] = h           # stays in VMEM
            # TODO(synk): inter-layer LSTM dropout applies only in training; eval = identity.

        # dropout(eval) = identity. Final FC fused; only (B, O) is written to HBM.
        wfc = wfc_ref[...]                                     # (O, Hp) f32
        bfc = bfc_ref[...]                                     # (1, O)  f32
        if O == 1:
            # VPU multiply + lane reduction instead of a 1-lane-wide MXU result.
            out = jnp.sum(h * wfc, axis=-1, keepdims=True) + bfc
        else:
            out = jax.lax.dot_general(
                h.astype(jnp.bfloat16), wfc.astype(jnp.bfloat16),
                dimension_numbers=(((1,), (1,)), ((), ())),
                preferred_element_type=jnp.float32) + bfc
        out_ref[...] = out.astype(out_ref.dtype)

    return kernel


# --------------------------------- Wrapper -----------------------------------

def _full_spec(arr):
    nd = arr.ndim
    return pl.BlockSpec(arr.shape, lambda *_: (0,) * nd)


@functools.partial(jax.jit, static_argnames=("num_layers",))
def price_prediction_lstm_forward(x, kparams, num_layers):
    """x: (batch, seq, input_size), batch_first — same contract as the PyTorch module.
    Returns (batch, output_size). Dropout is identity (eval / inference mode)."""
    x = x.astype(jnp.float32)
    B, S, In = x.shape
    Hp = kparams["lstm"][0]["w_hh_t"].shape[0]   # padded hidden size (multiple of 128)
    O = kparams["fc"]["w"].shape[0]

    # batch-first -> time-major, flattened to one 2-D slab (free XLA ops). Timestep t of
    # every layer's gpre is then the contiguous sublane block [t*B, (t+1)*B).
    x2d = jnp.transpose(x, (1, 0, 2)).reshape(S * B, In)

    inputs = [x2d]
    for l in range(num_layers):
        p = kparams["lstm"][l]
        inputs += [p["w_ih_t"], p["w_hh_t"], p["b"]]
    inputs += [kparams["fc"]["w"], kparams["fc"]["b"]]

    kernel = _make_fused_kernel(num_layers, S, B, Hp, O)

    # Scoped-VMEM limit sized to the real resident set, capped at v7x's 64 MiB VMEM.
    # TODO(synk): at production H/num_layers on v7x, stream W_ih/W_hh per layer from HBM
    # (memory_space=pl.ANY + double-buffered make_async_copy) instead of all-resident.
    in_bytes = sum(a.size * a.dtype.itemsize for a in inputs)
    work_bytes = (2 * in_bytes
                  + 2 * S * B * 4 * Hp * 4      # gpre slabs (f32)
                  + S * B * Hp * 4              # inter-layer scratch
                  + (2 << 20))                  # headroom
    vmem_limit = int(min(max(work_bytes, 16 << 20), 64 << 20))

    return pl.pallas_call(
        kernel,
        out_shape=jax.ShapeDtypeStruct((B, O), jnp.float32),
        in_specs=[_full_spec(a) for a in inputs],
        out_specs=pl.BlockSpec((B, O), lambda *_: (0, 0)),
        scratch_shapes=[pltpu.VMEM((S * B, Hp), jnp.float32)],
        compiler_params=pltpu.CompilerParams(vmem_limit_bytes=vmem_limit),
    )(*inputs)


# ------------------------- Parameter construction ----------------------------

def init_params(key, input_size, hidden_size, num_layers, output_size):
    """Raw PyTorch-convention parameters: w_ih (4H, in), w_hh (4H, H), b_ih/b_hh (4H,)
    with gates stacked [i, f, g, o]; uniform(-1/sqrt(H), 1/sqrt(H))."""
    bound = 1.0 / float(hidden_size ** 0.5)
    lstm_layers = []
    for layer in range(num_layers):
        in_sz = input_size if layer == 0 else hidden_size
        key, k1, k2, k3, k4 = jax.random.split(key, 5)
        lstm_layers.append({
            "w_ih": jax.random.uniform(k1, (4 * hidden_size, in_sz), jnp.float32, -bound, bound),
            "w_hh": jax.random.uniform(k2, (4 * hidden_size, hidden_size), jnp.float32, -bound, bound),
            "b_ih": jax.random.uniform(k3, (4 * hidden_size,), jnp.float32, -bound, bound),
            "b_hh": jax.random.uniform(k4, (4 * hidden_size,), jnp.float32, -bound, bound),
        })
    key, k5, k6 = jax.random.split(key, 3)
    w_fc = jax.random.uniform(k5, (output_size, hidden_size), jnp.float32, -bound, bound)
    b_fc = jax.random.uniform(k6, (output_size,), jnp.float32, -bound, bound)
    return {"lstm": lstm_layers, "fc": {"w": w_fc, "b": b_fc}}


def prepare_kernel_params(raw):
    """Kernel-friendly layout:
      * gate rows reordered [i, f, g, o] -> [i, f, o, g],
      * each gate block zero-padded to Hp = round_up(H, 128) so every gate slab is an
        independent 128-lane tile inside the kernel (padded gates stay exactly zero in
        c/h because padded weights AND padded biases are zero),
      * weights pre-transposed ((in, 4Hp) / (Hp, 4Hp)) and cast to bf16 (1-pass MXU),
      * biases fused (b_ih + b_hh), kept f32 (added after f32 accumulation),
      * fc weight padded to (O, Hp), kept f32 (VPU epilogue)."""
    H = raw["lstm"][0]["w_hh"].shape[1]
    Hp = _round_up(H, 128)
    order = (0, 1, 3, 2)                         # i, f, o, g
    lstm = []
    for li, p in enumerate(raw["lstm"]):
        in_sz = p["w_ih"].shape[1]
        b_all = p["b_ih"] + p["b_hh"]
        wih_blocks, whh_blocks, b_blocks = [], [], []
        for g in order:
            wih_blocks.append(jnp.pad(p["w_ih"][g * H:(g + 1) * H], ((0, Hp - H), (0, 0))))
            whh_blocks.append(jnp.pad(p["w_hh"][g * H:(g + 1) * H], ((0, Hp - H), (0, Hp - H))))
            b_blocks.append(jnp.pad(b_all[g * H:(g + 1) * H], (0, Hp - H)))
        w_ih_t = jnp.concatenate(wih_blocks, axis=0).T        # (in_sz, 4Hp)
        if li > 0:
            # layers > 0 consume the padded (B, Hp) hidden state of the layer below
            w_ih_t = jnp.pad(w_ih_t, ((0, Hp - in_sz), (0, 0)))
        lstm.append({
            "w_ih_t": w_ih_t.astype(jnp.bfloat16),
            "w_hh_t": jnp.concatenate(whh_blocks, axis=0).T.astype(jnp.bfloat16),  # (Hp, 4Hp)
            "b": jnp.concatenate(b_blocks).reshape(1, 4 * Hp).astype(jnp.float32),
        })
    O = raw["fc"]["w"].shape[0]
    w_fc = jnp.pad(raw["fc"]["w"], ((0, 0), (0, Hp - H))).astype(jnp.float32)       # (O, Hp)
    return {"lstm": lstm,
            "fc": {"w": w_fc, "b": raw["fc"]["b"].reshape(1, O).astype(jnp.float32)}}


# ----------------------------- Pure-JAX reference ----------------------------

def _reference_forward(x, raw, num_layers):
    """Reference using the raw PyTorch [i, f, g, o] convention (f32, no padding)."""
    B = x.shape[0]
    x_sbf = jnp.transpose(x, (1, 0, 2)).astype(jnp.float32)   # (S, B, F)
    for layer in range(num_layers):
        p = raw["lstm"][layer]
        H = p["w_hh"].shape[1]
        w_ih_t = p["w_ih"].T
        w_hh_t = p["w_hh"].T
        b = (p["b_ih"] + p["b_hh"]).reshape(1, 4 * H)

        def step(carry, x_t, w_ih_t=w_ih_t, w_hh_t=w_hh_t, b=b, H=H):
            h, c = carry
            gates = x_t @ w_ih_t + h @ w_hh_t + b
            i_g = jax.nn.sigmoid(gates[:, 0 * H:1 * H])
            f_g = jax.nn.sigmoid(gates[:, 1 * H:2 * H])
            g_g = jnp.tanh(gates[:, 2 * H:3 * H])
            o_g = jax.nn.sigmoid(gates[:, 3 * H:4 * H])
            c_new = f_g * c + i_g * g_g
            h_new = o_g * jnp.tanh(c_new)
            return (h_new, c_new), h_new

        init = (jnp.zeros((B, H), jnp.float32), jnp.zeros((B, H), jnp.float32))
        _, ys = jax.lax.scan(step, init, x_sbf)
        x_sbf = ys
    h_last = x_sbf[-1]
    return h_last @ raw["fc"]["w"].T + raw["fc"]["b"].reshape(1, -1)


# ---------------------------------- Main --------------------------------------

if __name__ == "__main__":
    # Small shapes consistent with the module's forward contract.
    batch, seq, input_size = 2, 8, 4
    hidden_size, num_layers, output_size = 32, 2, 1

    key = jax.random.PRNGKey(0)
    key, kx, kp = jax.random.split(key, 3)
    x = jax.random.normal(kx, (batch, seq, input_size), jnp.float32)

    raw_params = init_params(kp, input_size, hidden_size, num_layers, output_size)
    kparams = prepare_kernel_params(raw_params)

    out = price_prediction_lstm_forward(x, kparams, num_layers)
    out = jax.block_until_ready(out)

    ref = _reference_forward(x, raw_params, num_layers)
    assert out.shape == (batch, output_size)
    # bf16 MXU operands (f32 accumulation) -> slightly looser tolerance than pure f32.
    assert jnp.allclose(out, ref, atol=2e-2, rtol=2e-2), (out, ref)

    print("KERNEL_OK")
</pallas_src>

<mosaic_0001>
module attributes {stable_mosaic.version = 11 : i64} {
  func.func @kernel(%arg0: memref<16x4xf32, #tpu.memory_space<vmem>>, %arg1: memref<4x512xbf16, #tpu.memory_space<vmem>>, %arg2: memref<128x512xbf16, #tpu.memory_space<vmem>>, %arg3: memref<1x512xf32, #tpu.memory_space<vmem>>, %arg4: memref<128x512xbf16, #tpu.memory_space<vmem>>, %arg5: memref<128x512xbf16, #tpu.memory_space<vmem>>, %arg6: memref<1x512xf32, #tpu.memory_space<vmem>>, %arg7: memref<1x128xf32, #tpu.memory_space<vmem>>, %arg8: memref<1x1xf32, #tpu.memory_space<vmem>>, %arg9: memref<2x1xf32, #tpu.memory_space<vmem>>, %arg10: memref<16x128xf32, #tpu.memory_space<vmem>>) attributes {dimension_semantics = [], scalar_prefetch = 0 : i64, scratch_operands = 1 : i64, tpu.core_type = #tpu.core_type<tc>} {
    %c0 = arith.constant 0 : index
    %c0_0 = arith.constant 0 : index
    %0 = vector.load %arg2[%c0, %c0_0] : memref<128x512xbf16, #tpu.memory_space<vmem>>, vector<128x512xbf16>
    %c0_1 = arith.constant 0 : index
    %c0_2 = arith.constant 0 : index
    %1 = vector.load %arg0[%c0_1, %c0_2] : memref<16x4xf32, #tpu.memory_space<vmem>>, vector<16x4xf32>
    %2 = arith.truncf %1 : vector<16x4xf32> to vector<16x4xbf16>
    %c0_3 = arith.constant 0 : index
    %c0_4 = arith.constant 0 : index
    %3 = vector.load %arg1[%c0_3, %c0_4] : memref<4x512xbf16, #tpu.memory_space<vmem>>, vector<4x512xbf16>
    %cst = arith.constant dense<0.000000e+00> : vector<16x512xf32>
    %4 = tpu.matmul %2, %3, %cst {dimension_numbers = #tpu.dot_dimension_numbers<[1], [0], [0], [1], [0, 0, 1, 1], [], []>} : vector<16x4xbf16>, vector<4x512xbf16>, vector<16x512xf32> -> vector<16x512xf32>
    %c0_5 = arith.constant 0 : index
    %c0_6 = arith.constant 0 : index
    %5 = vector.load %arg3[%c0_5, %c0_6] : memref<1x512xf32, #tpu.memory_space<vmem>>, vector<1x512xf32>
    %6 = vector.broadcast %5 : vector<1x512xf32> to vector<16x512xf32>
    %7 = arith.addf %4, %6 : vector<16x512xf32>
    %cst_7 = arith.constant 0.000000e+00 : f32
    %8 = vector.broadcast %cst_7 : f32 to vector<2x128xf32>
    %cst_8 = arith.constant 0.000000e+00 : f32
    %9 = vector.broadcast %cst_8 : f32 to vector<2x128xf32>
    %10 = vector.extract_strided_slice %7 {offsets = [0, 0], sizes = [2, 512], strides = [1, 1]} : vector<16x512xf32> to vector<2x512xf32>
    %11 = arith.truncf %8 : vector<2x128xf32> to vector<2x128xbf16>
    %cst_9 = arith.constant dense<0.000000e+00> : vector<2x512xf32>
    %12 = tpu.matmul %11, %0, %cst_9 {dimension_numbers = #tpu.dot_dimension_numbers<[1], [0], [0], [1], [0, 0, 1, 1], [], []>} : vector<2x128xbf16>, vector<128x512xbf16>, vector<2x512xf32> -> vector<2x512xf32>
    %13 = arith.addf %10, %12 : vector<2x512xf32>
    %14 = vector.extract_strided_slice %13 {offsets = [0, 0], sizes = [2, 384], strides = [1, 1]} : vector<2x512xf32> to vector<2x384xf32>
    %15 = arith.negf %14 : vector<2x384xf32>
    %16 = math.exp %15 : vector<2x384xf32>
    %cst_10 = arith.constant 1.000000e+00 : f32
    %17 = vector.broadcast %cst_10 : f32 to vector<2x384xf32>
    %18 = arith.addf %17, %16 : vector<2x384xf32>
    %19 = arith.divf %17, %18 : vector<2x384xf32>
    %20 = vector.extract_strided_slice %13 {offsets = [0, 384], sizes = [2, 128], strides = [1, 1]} : vector<2x512xf32> to vector<2x128xf32>
    %21 = math.tanh %20 : vector<2x128xf32>
    %22 = vector.extract_strided_slice %19 {offsets = [0, 0], sizes = [2, 128], strides = [1, 1]} : vector<2x384xf32> to vector<2x128xf32>
    %23 = vector.extract_strided_slice %19 {offsets = [0, 128], sizes = [2, 128], strides = [1, 1]} : vector<2x384xf32> to vector<2x128xf32>
    %24 = vector.extract_strided_slice %19 {offsets = [0, 256], sizes = [2, 128], strides = [1, 1]} : vector<2x384xf32> to vector<2x128xf32>
    %25 = arith.mulf %23, %9 : vector<2x128xf32>
    %26 = arith.mulf %22, %21 : vector<2x128xf32>
    %27 = arith.addf %25, %26 : vector<2x128xf32>
    %28 = math.tanh %27 : vector<2x128xf32>
    %29 = arith.mulf %24, %28 : vector<2x128xf32>
    %c0_11 = arith.constant 0 : index
    %c0_12 = arith.constant 0 : index
    %30 = vector.load %arg10[%c0_11, %c0_12] : memref<16x128xf32, #tpu.memory_space<vmem>>, vector<2x128xf32>
    tpu.vector_store %arg10[%c0_11, %c0_12], %29 {strides = array<i32>} : memref<16x128xf32, #tpu.memory_space<vmem>>, vector<2x128xf32>,
    %31 = vector.extract_strided_slice %7 {offsets = [2, 0], sizes = [2, 512], strides = [1, 1]} : vector<16x512xf32> to vector<2x512xf32>
    %32 = arith.truncf %29 : vector<2x128xf32> to vector<2x128xbf16>
    %cst_13 = arith.constant dense<0.000000e+00> : vector<2x512xf32>
    %33 = tpu.matmul %32, %0, %cst_13 {dimension_numbers = #tpu.dot_dimension_numbers<[1], [0], [0], [1], [0, 0, 1, 1], [], []>} : vector<2x128xbf16>, vector<128x512xbf16>, vector<2x512xf32> -> vector<2x512xf32>
    %34 = arith.addf %31, %33 : vector<2x512xf32>
    %35 = vector.extract_strided_slice %34 {offsets = [0, 0], sizes = [2, 384], strides = [1, 1]} : vector<2x512xf32> to vector<2x384xf32>
    %36 = arith.negf %35 : vector<2x384xf32>
    %37 = math.exp %36 : vector<2x384xf32>
    %cst_14 = arith.constant 1.000000e+00 : f32
    %38 = vector.broadcast %cst_14 : f32 to vector<2x384xf32>
    %39 = arith.addf %38, %37 : vector<2x384xf32>
    %40 = arith.divf %38, %39 : vector<2x384xf32>
    %41 = vector.extract_strided_slice %34 {offsets = [0, 384], sizes = [2, 128], strides = [1, 1]} : vector<2x512xf32> to vector<2x128xf32>
    %42 = math.tanh %41 : vector<2x128xf32>
    %43 = vector.extract_strided_slice %40 {offsets = [0, 0], sizes = [2, 128], strides = [1, 1]} : vector<2x384xf32> to vector<2x128xf32>
    %44 = vector.extract_strided_slice %40 {offsets = [0, 128], sizes = [2, 128], strides = [1, 1]} : vector<2x384xf32> to vector<2x128xf32>
    %45 = vector.extract_strided_slice %40 {offsets = [0, 256], sizes = [2, 128], strides = [1, 1]} : vector<2x384xf32> to vector<2x128xf32>
    %46 = arith.mulf %44, %27 : vector<2x128xf32>
    %47 = arith.mulf %43, %42 : vector<2x128xf32>
    %48 = arith.addf %46, %47 : vector<2x128xf32>
    %49 = math.tanh %48 : vector<2x128xf32>
    %50 = arith.mulf %45, %49 : vector<2x128xf32>
    %c2 = arith.constant 2 : index
    %c0_15 = arith.constant 0 : index
    %51 = vector.load %arg10[%c2, %c0_15] : memref<16x128xf32, #tpu.memory_space<vmem>>, vector<2x128xf32>
    tpu.vector_store %arg10[%c2, %c0_15], %50 {strides = array<i32>} : memref<16x128xf32, #tpu.memory_space<vmem>>, vector<2x128xf32>,
    %52 = vector.extract_strided_slice %7 {offsets = [4, 0], sizes = [2, 512], strides = [1, 1]} : vector<16x512xf32> to vector<2x512xf32>
    %53 = arith.truncf %50 : vector<2x128xf32> to vector<2x128xbf16>
    %cst_16 = arith.constant dense<0.000000e+00> : vector<2x512xf32>
    %54 = tpu.matmul %53, %0, %cst_16 {dimension_numbers = #tpu.dot_dimension_numbers<[1], [0], [0], [1], [0, 0, 1, 1], [], []>} : vector<2x128xbf16>, vector<128x512xbf16>, vector<2x512xf32> -> vector<2x512xf32>
    %55 = arith.addf %52, %54 : vector<2x512xf32>
    %56 = vector.extract_strided_slice %55 {offsets = [0, 0], sizes = [2, 384], strides = [1, 1]} : vector<2x512xf32> to vector<2x384xf32>
    %57 = arith.negf %56 : vector<2x384xf32>
    %58 = math.exp %57 : vector<2x384xf32>
    %cst_17 = arith.constant 1.000000e+00 : f32
    %59 = vector.broadcast %cst_17 : f32 to vector<2x384xf32>
    %60 = arith.addf %59, %58 : vector<2x384xf32>
    %61 = arith.divf %59, %60 : vector<2x384xf32>
    %62 = vector.extract_strided_slice %55 {offsets = [0, 384], sizes = [2, 128], strides = [1, 1]} : vector<2x512xf32> to vector<2x128xf32>
    %63 = math.tanh %62 : vector<2x128xf32>
    %64 = vector.extract_strided_slice %61 {offsets = [0, 0], sizes = [2, 128], strides = [1, 1]} : vector<2x384xf32> to vector<2x128xf32>
    %65 = vector.extract_strided_slice %61 {offsets = [0, 128], sizes = [2, 128], strides = [1, 1]} : vector<2x384xf32> to vector<2x128xf32>
    %66 = vector.extract_strided_slice %61 {offsets = [0, 256], sizes = [2, 128], strides = [1, 1]} : vector<2x384xf32> to vector<2x128xf32>
    %67 = arith.mulf %65, %48 : vector<2x128xf32>
    %68 = arith.mulf %64, %63 : vector<2x128xf32>
    %69 = arith.addf %67, %68 : vector<2x128xf32>
    %70 = math.tanh %69 : vector<2x128xf32>
    %71 = arith.mulf %66, %70 : vector<2x128xf32>
    %c4 = arith.constant 4 : index
    %c0_18 = arith.constant 0 : index
    %72 = vector.load %arg10[%c4, %c0_18] : memref<16x128xf32, #tpu.memory_space<vmem>>, vector<2x128xf32>
    tpu.vector_store %arg10[%c4, %c0_18], %71 {strides = array<i32>} : memref<16x128xf32, #tpu.memory_space<vmem>>, vector<2x128xf32>,
    %73 = vector.extract_strided_slice %7 {offsets = [6, 0], sizes = [2, 512], strides = [1, 1]} : vector<16x512xf32> to vector<2x512xf32>
    %74 = arith.truncf %71 : vector<2x128xf32> to vector<2x128xbf16>
    %cst_19 = arith.constant dense<0.000000e+00> : vector<2x512xf32>
    %75 = tpu.matmul %74, %0, %cst_19 {dimension_numbers = #tpu.dot_dimension_numbers<[1], [0], [0], [1], [0, 0, 1, 1], [], []>} : vector<2x128xbf16>, vector<128x512xbf16>, vector<2x512xf32> -> vector<2x512xf32>
    %76 = arith.addf %73, %75 : vector<2x512xf32>
    %77 = vector.extract_strided_slice %76 {offsets = [0, 0], sizes = [2, 384], strides = [1, 1]} : vector<2x512xf32> to vector<2x384xf32>
    %78 = arith.negf %77 : vector<2x384xf32>
    %79 = math.exp %78 : vector<2x384xf32>
    %cst_20 = arith.constant 1.000000e+00 : f32
    %80 = vector.broadcast %cst_20 : f32 to vector<2x384xf32>
    %81 = arith.addf %80, %79 : vector<2x384xf32>
    %82 = arith.divf %80, %81 : vector<2x384xf32>
    %83 = vector.extract_strided_slice %76 {offsets = [0, 384], sizes = [2, 128], strides = [1, 1]} : vector<2x512xf32> to vector<2x128xf32>
    %84 = math.tanh %83 : vector<2x128xf32>
    %85 = vector.extract_strided_slice %82 {offsets = [0, 0], sizes = [2, 128], strides = [1, 1]} : vector<2x384xf32> to vector<2x128xf32>
    %86 = vector.extract_strided_slice %82 {offsets = [0, 128], sizes = [2, 128], strides = [1, 1]} : vector<2x384xf32> to vector<2x128xf32>
    %87 = vector.extract_strided_slice %82 {offsets = [0, 256], sizes = [2, 128], strides = [1, 1]} : vector<2x384xf32> to vector<2x128xf32>
    %88 = arith.mulf %86, %69 : vector<2x128xf32>
    %89 = arith.mulf %85, %84 : vector<2x128xf32>
    %90 = arith.addf %88, %89 : vector<2x128xf32>
    %91 = math.tanh %90 : vector<2x128xf32>
    %92 = arith.mulf %87, %91 : vector<2x128xf32>
    %c6 = arith.constant 6 : index
    %c0_21 = arith.constant 0 : index
    %93 = vector.load %arg10[%c6, %c0_21] : memref<16x128xf32, #tpu.memory_space<vmem>>, vector<2x128xf32>
    tpu.vector_store %arg10[%c6, %c0_21], %92 {strides = array<i32>} : memref<16x128xf32, #tpu.memory_space<vmem>>, vector<2x128xf32>,
    %94 = vector.extract_strided_slice %7 {offsets = [8, 0], sizes = [2, 512], strides = [1, 1]} : vector<16x512xf32> to vector<2x512xf32>
    %95 = arith.truncf %92 : vector<2x128xf32> to vector<2x128xbf16>
    %cst_22 = arith.constant dense<0.000000e+00> : vector<2x512xf32>
    %96 = tpu.matmul %95, %0, %cst_22 {dimension_numbers = #tpu.dot_dimension_numbers<[1], [0], [0], [1], [0, 0, 1, 1], [], []>} : vector<2x128xbf16>, vector<128x512xbf16>, vector<2x512xf32> -> vector<2x512xf32>
    %97 = arith.addf %94, %96 : vector<2x512xf32>
    %98 = vector.extract_strided_slice %97 {offsets = [0, 0], sizes = [2, 384], strides = [1, 1]} : vector<2x512xf32> to vector<2x384xf32>
    %99 = arith.negf %98 : vector<2x384xf32>
    %100 = math.exp %99 : vector<2x384xf32>
    %cst_23 = arith.constant 1.000000e+00 : f32
    %101 = vector.broadcast %cst_23 : f32 to vector<2x384xf32>
    %102 = arith.addf %101, %100 : vector<2x384xf32>
    %103 = arith.divf %101, %102 : vector<2x384xf32>
    %104 = vector.extract_strided_slice %97 {offsets = [0, 384], sizes = [2, 128], strides = [1, 1]} : vector<2x512xf32> to vector<2x128xf32>
    %105 = math.tanh %104 : vector<2x128xf32>
    %106 = vector.extract_strided_slice %103 {offsets = [0, 0], sizes = [2, 128], strides = [1, 1]} : vector<2x384xf32> to vector<2x128xf32>
    %107 = vector.extract_strided_slice %103 {offsets = [0, 128], sizes = [2, 128], strides = [1, 1]} : vector<2x384xf32> to vector<2x128xf32>
    %108 = vector.extract_strided_slice %103 {offsets = [0, 256], sizes = [2, 128], strides = [1, 1]} : vector<2x384xf32> to vector<2x128xf32>
    %109 = arith.mulf %107, %90 : vector<2x128xf32>
    %110 = arith.mulf %106, %105 : vector<2x128xf32>
    %111 = arith.addf %109, %110 : vector<2x128xf32>
    %112 = math.tanh %111 : vector<2x128xf32>
    %113 = arith.mulf %108, %112 : vector<2x128xf32>
    %c8 = arith.constant 8 : index
    %c0_24 = arith.constant 0 : index
    %114 = vector.load %arg10[%c8, %c0_24] : memref<16x128xf32, #tpu.memory_space<vmem>>, vector<2x128xf32>
    tpu.vector_store %arg10[%c8, %c0_24], %113 {strides = array<i32>} : memref<16x128xf32, #tpu.memory_space<vmem>>, vector<2x128xf32>,
    %115 = vector.extract_strided_slice %7 {offsets = [10, 0], sizes = [2, 512], strides = [1, 1]} : vector<16x512xf32> to vector<2x512xf32>
    %116 = arith.truncf %113 : vector<2x128xf32> to vector<2x128xbf16>
    %cst_25 = arith.constant dense<0.000000e+00> : vector<2x512xf32>
    %117 = tpu.matmul %116, %0, %cst_25 {dimension_numbers = #tpu.dot_dimension_numbers<[1], [0], [0], [1], [0, 0, 1, 1], [], []>} : vector<2x128xbf16>, vector<128x512xbf16>, vector<2x512xf32> -> vector<2x512xf32>
    %118 = arith.addf %115, %117 : vector<2x512xf32>
    %119 = vector.extract_strided_slice %118 {offsets = [0, 0], sizes = [2, 384], strides = [1, 1]} : vector<2x512xf32> to vector<2x384xf32>
    %120 = arith.negf %119 : vector<2x384xf32>
    %121 = math.exp %120 : vector<2x384xf32>
    %cst_26 = arith.constant 1.000000e+00 : f32
    %122 = vector.broadcast %cst_26 : f32 to vector<2x384xf32>
    %123 = arith.addf %122, %121 : vector<2x384xf32>
    %124 = arith.divf %122, %123 : vector<2x384xf32>
    %125 = vector.extract_strided_slice %118 {offsets = [0, 384], sizes = [2, 128], strides = [1, 1]} : vector<2x512xf32> to vector<2x128xf32>
    %126 = math.tanh %125 : vector<2x128xf32>
    %127 = vector.extract_strided_slice %124 {offsets = [0, 0], sizes = [2, 128], strides = [1, 1]} : vector<2x384xf32> to vector<2x128xf32>
    %128 = vector.extract_strided_slice %124 {offsets = [0, 128], sizes = [2, 128], strides = [1, 1]} : vector<2x384xf32> to vector<2x128xf32>
    %129 = vector.extract_strided_slice %124 {offsets = [0, 256], sizes = [2, 128], strides = [1, 1]} : vector<2x384xf32> to vector<2x128xf32>
    %130 = arith.mulf %128, %111 : vector<2x128xf32>
    %131 = arith.mulf %127, %126 : vector<2x128xf32>
    %132 = arith.addf %130, %131 : vector<2x128xf32>
    %133 = math.tanh %132 : vector<2x128xf32>
    %134 = arith.mulf %129, %133 : vector<2x128xf32>
    %c10 = arith.constant 10 : index
    %c0_27 = arith.constant 0 : index
    %135 = vector.load %arg10[%c10, %c0_27] : memref<16x128xf32, #tpu.memory_space<vmem>>, vector<2x128xf32>
    tpu.vector_store %arg10[%c10, %c0_27], %134 {strides = array<i32>} : memref<16x128xf32, #tpu.memory_space<vmem>>, vector<2x128xf32>,
    %136 = vector.extract_strided_slice %7 {offsets = [12, 0], sizes = [2, 512], strides = [1, 1]} : vector<16x512xf32> to vector<2x512xf32>
    %137 = arith.truncf %134 : vector<2x128xf32> to vector<2x128xbf16>
    %cst_28 = arith.constant dense<0.000000e+00> : vector<2x512xf32>
    %138 = tpu.matmul %137, %0, %cst_28 {dimension_numbers = #tpu.dot_dimension_numbers<[1], [0], [0], [1], [0, 0, 1, 1], [], []>} : vector<2x128xbf16>, vector<128x512xbf16>, vector<2x512xf32> -> vector<2x512xf32>
    %139 = arith.addf %136, %138 : vector<2x512xf32>
    %140 = vector.extract_strided_slice %139 {offsets = [0, 0], sizes = [2, 384], strides = [1, 1]} : vector<2x512xf32> to vector<2x384xf32>
    %141 = arith.negf %140 : vector<2x384xf32>
    %142 = math.exp %141 : vector<2x384xf32>
    %cst_29 = arith.constant 1.000000e+00 : f32
    %143 = vector.broadcast %cst_29 : f32 to vector<2x384xf32>
    %144 = arith.addf %143, %142 : vector<2x384xf32>
    %145 = arith.divf %143, %144 : vector<2x384xf32>
    %146 = vector.extract_strided_slice %139 {offsets = [0, 384], sizes = [2, 128], strides = [1, 1]} : vector<2x512xf32> to vector<2x128xf32>
    %147 = math.tanh %146 : vector<2x128xf32>
    %148 = vector.extract_strided_slice %145 {offsets = [0, 0], sizes = [2, 128], strides = [1, 1]} : vector<2x384xf32> to vector<2x128xf32>
    %149 = vector.extract_strided_slice %145 {offsets = [0, 128], sizes = [2, 128], strides = [1, 1]} : vector<2x384xf32> to vector<2x128xf32>
    %150 = vector.extract_strided_slice %145 {offsets = [0, 256], sizes = [2, 128], strides = [1, 1]} : vector<2x384xf32> to vector<2x128xf32>
    %151 = arith.mulf %149, %132 : vector<2x128xf32>
    %152 = arith.mulf %148, %147 : vector<2x128xf32>
    %153 = arith.addf %151, %152 : vector<2x128xf32>
    %154 = math.tanh %153 : vector<2x128xf32>
    %155 = arith.mulf %150, %154 : vector<2x128xf32>
    %c12 = arith.constant 12 : index
    %c0_30 = arith.constant 0 : index
    %156 = vector.load %arg10[%c12, %c0_30] : memref<16x128xf32, #tpu.memory_space<vmem>>, vector<2x128xf32>
    tpu.vector_store %arg10[%c12, %c0_30], %155 {strides = array<i32>} : memref<16x128xf32, #tpu.memory_space<vmem>>, vector<2x128xf32>,
    %157 = vector.extract_strided_slice %7 {offsets = [14, 0], sizes = [2, 512], strides = [1, 1]} : vector<16x512xf32> to vector<2x512xf32>
    %158 = arith.truncf %155 : vector<2x128xf32> to vector<2x128xbf16>
    %cst_31 = arith.constant dense<0.000000e+00> : vector<2x512xf32>
    %159 = tpu.matmul %158, %0, %cst_31 {dimension_numbers = #tpu.dot_dimension_numbers<[1], [0], [0], [1], [0, 0, 1, 1], [], []>} : vector<2x128xbf16>, vector<128x512xbf16>, vector<2x512xf32> -> vector<2x512xf32>
    %160 = arith.addf %157, %159 : vector<2x512xf32>
    %161 = vector.extract_strided_slice %160 {offsets = [0, 0], sizes = [2, 384], strides = [1, 1]} : vector<2x512xf32> to vector<2x384xf32>
    %162 = arith.negf %161 : vector<2x384xf32>
    %163 = math.exp %162 : vector<2x384xf32>
    %cst_32 = arith.constant 1.000000e+00 : f32
    %164 = vector.broadcast %cst_32 : f32 to vector<2x384xf32>
    %165 = arith.addf %164, %163 : vector<2x384xf32>
    %166 = arith.divf %164, %165 : vector<2x384xf32>
    %167 = vector.extract_strided_slice %160 {offsets = [0, 384], sizes = [2, 128], strides = [1, 1]} : vector<2x512xf32> to vector<2x128xf32>
    %168 = math.tanh %167 : vector<2x128xf32>
    %169 = vector.extract_strided_slice %166 {offsets = [0, 0], sizes = [2, 128], strides = [1, 1]} : vector<2x384xf32> to vector<2x128xf32>
    %170 = vector.extract_strided_slice %166 {offsets = [0, 128], sizes = [2, 128], strides = [1, 1]} : vector<2x384xf32> to vector<2x128xf32>
    %171 = vector.extract_strided_slice %166 {offsets = [0, 256], sizes = [2, 128], strides = [1, 1]} : vector<2x384xf32> to vector<2x128xf32>
    %172 = arith.mulf %170, %153 : vector<2x128xf32>
    %173 = arith.mulf %169, %168 : vector<2x128xf32>
    %174 = arith.addf %172, %173 : vector<2x128xf32>
    %175 = math.tanh %174 : vector<2x128xf32>
    %176 = arith.mulf %171, %175 : vector<2x128xf32>
    %c14 = arith.constant 14 : index
    %c0_33 = arith.constant 0 : index
    %177 = vector.load %arg10[%c14, %c0_33] : memref<16x128xf32, #tpu.memory_space<vmem>>, vector<2x128xf32>
    tpu.vector_store %arg10[%c14, %c0_33], %176 {strides = array<i32>} : memref<16x128xf32, #tpu.memory_space<vmem>>, vector<2x128xf32>,
    %c0_34 = arith.constant 0 : index
    %c0_35 = arith.constant 0 : index
    %178 = vector.load %arg5[%c0_34, %c0_35] : memref<128x512xbf16, #tpu.memory_space<vmem>>, vector<128x512xbf16>
    %c0_36 = arith.constant 0 : index
    %c0_37 = arith.constant 0 : index
    %179 = vector.load %arg10[%c0_36, %c0_37] : memref<16x128xf32, #tpu.memory_space<vmem>>, vector<16x128xf32>
    %180 = arith.truncf %179 : vector<16x128xf32> to vector<16x128xbf16>
    %c0_38 = arith.constant 0 : index
    %c0_39 = arith.constant 0 : index
    %181 = vector.load %arg4[%c0_38, %c0_39] : memref<128x512xbf16, #tpu.memory_space<vmem>>, vector<128x512xbf16>
    %cst_40 = arith.constant dense<0.000000e+00> : vector<16x512xf32>
    %182 = tpu.matmul %180, %181, %cst_40 {dimension_numbers = #tpu.dot_dimension_numbers<[1], [0], [0], [1], [0, 0, 1, 1], [], []>} : vector<16x128xbf16>, vector<128x512xbf16>, vector<16x512xf32> -> vector<16x512xf32>
    %c0_41 = arith.constant 0 : index
    %c0_42 = arith.constant 0 : index
    %183 = vector.load %arg6[%c0_41, %c0_42] : memref<1x512xf32, #tpu.memory_space<vmem>>, vector<1x512xf32>
    %184 = vector.broadcast %183 : vector<1x512xf32> to vector<16x512xf32>
    %185 = arith.addf %182, %184 : vector<16x512xf32>
    %cst_43 = arith.constant 0.000000e+00 : f32
    %186 = vector.broadcast %cst_43 : f32 to vector<2x128xf32>
    %cst_44 = arith.constant 0.000000e+00 : f32
    %187 = vector.broadcast %cst_44 : f32 to vector<2x128xf32>
    %188 = vector.extract_strided_slice %185 {offsets = [0, 0], sizes = [2, 512], strides = [1, 1]} : vector<16x512xf32> to vector<2x512xf32>
    %189 = arith.truncf %186 : vector<2x128xf32> to vector<2x128xbf16>
    %cst_45 = arith.constant dense<0.000000e+00> : vector<2x512xf32>
    %190 = tpu.matmul %189, %178, %cst_45 {dimension_numbers = #tpu.dot_dimension_numbers<[1], [0], [0], [1], [0, 0, 1, 1], [], []>} : vector<2x128xbf16>, vector<128x512xbf16>, vector<2x512xf32> -> vector<2x512xf32>
    %191 = arith.addf %188, %190 : vector<2x512xf32>
    %192 = vector.extract_strided_slice %191 {offsets = [0, 0], sizes = [2, 384], strides = [1, 1]} : vector<2x512xf32> to vector<2x384xf32>
    %193 = arith.negf %192 : vector<2x384xf32>
    %194 = math.exp %193 : vector<2x384xf32>
    %cst_46 = arith.constant 1.000000e+00 : f32
    %195 = vector.broadcast %cst_46 : f32 to vector<2x384xf32>
    %196 = arith.addf %195, %194 : vector<2x384xf32>
    %197 = arith.divf %195, %196 : vector<2x384xf32>
    %198 = vector.extract_strided_slice %191 {offsets = [0, 384], sizes = [2, 128], strides = [1, 1]} : vector<2x512xf32> to vector<2x128xf32>
    %199 = math.tanh %198 : vector<2x128xf32>
    %200 = vector.extract_strided_slice %197 {offsets = [0, 0], sizes = [2, 128], strides = [1, 1]} : vector<2x384xf32> to vector<2x128xf32>
    %201 = vector.extract_strided_slice %197 {offsets = [0, 128], sizes = [2, 128], strides = [1, 1]} : vector<2x384xf32> to vector<2x128xf32>
    %202 = vector.extract_strided_slice %197 {offsets = [0, 256], sizes = [2, 128], strides = [1, 1]} : vector<2x384xf32> to vector<2x128xf32>
    %203 = arith.mulf %201, %187 : vector<2x128xf32>
    %204 = arith.mulf %200, %199 : vector<2x128xf32>
    %205 = arith.addf %203, %204 : vector<2x128xf32>
    %206 = math.tanh %205 : vector<2x128xf32>
    %207 = arith.mulf %202, %206 : vector<2x128xf32>
    %208 = vector.extract_strided_slice %185 {offsets = [2, 0], sizes = [2, 512], strides = [1, 1]} : vector<16x512xf32> to vector<2x512xf32>
    %209 = arith.truncf %207 : vector<2x128xf32> to vector<2x128xbf16>
    %cst_47 = arith.constant dense<0.000000e+00> : vector<2x512xf32>
    %210 = tpu.matmul %209, %178, %cst_47 {dimension_numbers = #tpu.dot_dimension_numbers<[1], [0], [0], [1], [0, 0, 1, 1], [], []>} : vector<2x128xbf16>, vector<128x512xbf16>, vector<2x512xf32> -> vector<2x512xf32>
    %211 = arith.addf %208, %210 : vector<2x512xf32>
    %212 = vector.extract_strided_slice %211 {offsets = [0, 0], sizes = [2, 384], strides = [1, 1]} : vector<2x512xf32> to vector<2x384xf32>
    %213 = arith.negf %212 : vector<2x384xf32>
    %214 = math.exp %213 : vector<2x384xf32>
    %cst_48 = arith.constant 1.000000e+00 : f32
    %215 = vector.broadcast %cst_48 : f32 to vector<2x384xf32>
    %216 = arith.addf %215, %214 : vector<2x384xf32>
    %217 = arith.divf %215, %216 : vector<2x384xf32>
    %218 = vector.extract_strided_slice %211 {offsets = [0, 384], sizes = [2, 128], strides = [1, 1]} : vector<2x512xf32> to vector<2x128xf32>
    %219 = math.tanh %218 : vector<2x128xf32>
    %220 = vector.extract_strided_slice %217 {offsets = [0, 0], sizes = [2, 128], strides = [1, 1]} : vector<2x384xf32> to vector<2x128xf32>
    %221 = vector.extract_strided_slice %217 {offsets = [0, 128], sizes = [2, 128], strides = [1, 1]} : vector<2x384xf32> to vector<2x128xf32>
    %222 = vector.extract_strided_slice %217 {offsets = [0, 256], sizes = [2, 128], strides = [1, 1]} : vector<2x384xf32> to vector<2x128xf32>
    %223 = arith.mulf %221, %205 : vector<2x128xf32>
    %224 = arith.mulf %220, %219 : vector<2x128xf32>
    %225 = arith.addf %223, %224 : vector<2x128xf32>
    %226 = math.tanh %225 : vector<2x128xf32>
    %227 = arith.mulf %222, %226 : vector<2x128xf32>
    %228 = vector.extract_strided_slice %185 {offsets = [4, 0], sizes = [2, 512], strides = [1, 1]} : vector<16x512xf32> to vector<2x512xf32>
    %229 = arith.truncf %227 : vector<2x128xf32> to vector<2x128xbf16>
    %cst_49 = arith.constant dense<0.000000e+00> : vector<2x512xf32>
    %230 = tpu.matmul %229, %178, %cst_49 {dimension_numbers = #tpu.dot_dimension_numbers<[1], [0], [0], [1], [0, 0, 1, 1], [], []>} : vector<2x128xbf16>, vector<128x512xbf16>, vector<2x512xf32> -> vector<2x512xf32>
    %231 = arith.addf %228, %230 : vector<2x512xf32>
    %232 = vector.extract_strided_slice %231 {offsets = [0, 0], sizes = [2, 384], strides = [1, 1]} : vector<2x512xf32> to vector<2x384xf32>
    %233 = arith.negf %232 : vector<2x384xf32>
    %234 = math.exp %233 : vector<2x384xf32>
    %cst_50 = arith.constant 1.000000e+00 : f32
    %235 = vector.broadcast %cst_50 : f32 to vector<2x384xf32>
    %236 = arith.addf %235, %234 : vector<2x384xf32>
    %237 = arith.divf %235, %236 : vector<2x384xf32>
    %238 = vector.extract_strided_slice %231 {offsets = [0, 384], sizes = [2, 128], strides = [1, 1]} : vector<2x512xf32> to vector<2x128xf32>
    %239 = math.tanh %238 : vector<2x128xf32>
    %240 = vector.extract_strided_slice %237 {offsets = [0, 0], sizes = [2, 128], strides = [1, 1]} : vector<2x384xf32> to vector<2x128xf32>
    %241 = vector.extract_strided_slice %237 {offsets = [0, 128], sizes = [2, 128], strides = [1, 1]} : vector<2x384xf32> to vector<2x128xf32>
    %242 = vector.extract_strided_slice %237 {offsets = [0, 256], sizes = [2, 128], strides = [1, 1]} : vector<2x384xf32> to vector<2x128xf32>
    %243 = arith.mulf %241, %225 : vector<2x128xf32>
    %244 = arith.mulf %240, %239 : vector<2x128xf32>
    %245 = arith.addf %243, %244 : vector<2x128xf32>
    %246 = math.tanh %245 : vector<2x128xf32>
    %247 = arith.mulf %242, %246 : vector<2x128xf32>
    %248 = vector.extract_strided_slice %185 {offsets = [6, 0], sizes = [2, 512], strides = [1, 1]} : vector<16x512xf32> to vector<2x512xf32>
    %249 = arith.truncf %247 : vector<2x128xf32> to vector<2x128xbf16>
    %cst_51 = arith.constant dense<0.000000e+00> : vector<2x512xf32>
    %250 = tpu.matmul %249, %178, %cst_51 {dimension_numbers = #tpu.dot_dimension_numbers<[1], [0], [0], [1], [0, 0, 1, 1], [], []>} : vector<2x128xbf16>, vector<128x512xbf16>, vector<2x512xf32> -> vector<2x512xf32>
    %251 = arith.addf %248, %250 : vector<2x512xf32>
    %252 = vector.extract_strided_slice %251 {offsets = [0, 0], sizes = [2, 384], strides = [1, 1]} : vector<2x512xf32> to vector<2x384xf32>
    %253 = arith.negf %252 : vector<2x384xf32>
    %254 = math.exp %253 : vector<2x384xf32>
    %cst_52 = arith.constant 1.000000e+00 : f32
    %255 = vector.broadcast %cst_52 : f32 to vector<2x384xf32>
    %256 = arith.addf %255, %254 : vector<2x384xf32>
    %257 = arith.divf %255, %256 : vector<2x384xf32>
    %258 = vector.extract_strided_slice %251 {offsets = [0, 384], sizes = [2, 128], strides = [1, 1]} : vector<2x512xf32> to vector<2x128xf32>
    %259 = math.tanh %258 : vector<2x128xf32>
    %260 = vector.extract_strided_slice %257 {offsets = [0, 0], sizes = [2, 128], strides = [1, 1]} : vector<2x384xf32> to vector<2x128xf32>
    %261 = vector.extract_strided_slice %257 {offsets = [0, 128], sizes = [2, 128], strides = [1, 1]} : vector<2x384xf32> to vector<2x128xf32>
    %262 = vector.extract_strided_slice %257 {offsets = [0, 256], sizes = [2, 128], strides = [1, 1]} : vector<2x384xf32> to vector<2x128xf32>
    %263 = arith.mulf %261, %245 : vector<2x128xf32>
    %264 = arith.mulf %260, %259 : vector<2x128xf32>
    %265 = arith.addf %263, %264 : vector<2x128xf32>
    %266 = math.tanh %265 : vector<2x128xf32>
    %267 = arith.mulf %262, %266 : vector<2x128xf32>
    %268 = vector.extract_strided_slice %185 {offsets = [8, 0], sizes = [2, 512], strides = [1, 1]} : vector<16x512xf32> to vector<2x512xf32>
    %269 = arith.truncf %267 : vector<2x128xf32> to vector<2x128xbf16>
    %cst_53 = arith.constant dense<0.000000e+00> : vector<2x512xf32>
    %270 = tpu.matmul %269, %178, %cst_53 {dimension_numbers = #tpu.dot_dimension_numbers<[1], [0], [0], [1], [0, 0, 1, 1], [], []>} : vector<2x128xbf16>, vector<128x512xbf16>, vector<2x512xf32> -> vector<2x512xf32>
    %271 = arith.addf %268, %270 : vector<2x512xf32>
    %272 = vector.extract_strided_slice %271 {offsets = [0, 0], sizes = [2, 384], strides = [1, 1]} : vector<2x512xf32> to vector<2x384xf32>
    %273 = arith.negf %272 : vector<2x384xf32>
    %274 = math.exp %273 : vector<2x384xf32>
    %cst_54 = arith.constant 1.000000e+00 : f32
    %275 = vector.broadcast %cst_54 : f32 to vector<2x384xf32>
    %276 = arith.addf %275, %274 : vector<2x384xf32>
    %277 = arith.divf %275, %276 : vector<2x384xf32>
    %278 = vector.extract_strided_slice %271 {offsets = [0, 384], sizes = [2, 128], strides = [1, 1]} : vector<2x512xf32> to vector<2x128xf32>
    %279 = math.tanh %278 : vector<2x128xf32>
    %280 = vector.extract_strided_slice %277 {offsets = [0, 0], sizes = [2, 128], strides = [1, 1]} : vector<2x384xf32> to vector<2x128xf32>
    %281 = vector.extract_strided_slice %277 {offsets = [0, 128], sizes = [2, 128], strides = [1, 1]} : vector<2x384xf32> to vector<2x128xf32>
    %282 = vector.extract_strided_slice %277 {offsets = [0, 256], sizes = [2, 128], strides = [1, 1]} : vector<2x384xf32> to vector<2x128xf32>
    %283 = arith.mulf %281, %265 : vector<2x128xf32>
    %284 = arith.mulf %280, %279 : vector<2x128xf32>
    %285 = arith.addf %283, %284 : vector<2x128xf32>
    %286 = math.tanh %285 : vector<2x128xf32>
    %287 = arith.mulf %282, %286 : vector<2x128xf32>
    %288 = vector.extract_strided_slice %185 {offsets = [10, 0], sizes = [2, 512], strides = [1, 1]} : vector<16x512xf32> to vector<2x512xf32>
    %289 = arith.truncf %287 : vector<2x128xf32> to vector<2x128xbf16>
    %cst_55 = arith.constant dense<0.000000e+00> : vector<2x512xf32>
    %290 = tpu.matmul %289, %178, %cst_55 {dimension_numbers = #tpu.dot_dimension_numbers<[1], [0], [0], [1], [0, 0, 1, 1], [], []>} : vector<2x128xbf16>, vector<128x512xbf16>, vector<2x512xf32> -> vector<2x512xf32>
    %291 = arith.addf %288, %290 : vector<2x512xf32>
    %292 = vector.extract_strided_slice %291 {offsets = [0, 0], sizes = [2, 384], strides = [1, 1]} : vector<2x512xf32> to vector<2x384xf32>
    %293 = arith.negf %292 : vector<2x384xf32>
    %294 = math.exp %293 : vector<2x384xf32>
    %cst_56 = arith.constant 1.000000e+00 : f32
    %295 = vector.broadcast %cst_56 : f32 to vector<2x384xf32>
    %296 = arith.addf %295, %294 : vector<2x384xf32>
    %297 = arith.divf %295, %296 : vector<2x384xf32>
    %298 = vector.extract_strided_slice %291 {offsets = [0, 384], sizes = [2, 128], strides = [1, 1]} : vector<2x512xf32> to vector<2x128xf32>
    %299 = math.tanh %298 : vector<2x128xf32>
    %300 = vector.extract_strided_slice %297 {offsets = [0, 0], sizes = [2, 128], strides = [1, 1]} : vector<2x384xf32> to vector<2x128xf32>
    %301 = vector.extract_strided_slice %297 {offsets = [0, 128], sizes = [2, 128], strides = [1, 1]} : vector<2x384xf32> to vector<2x128xf32>
    %302 = vector.extract_strided_slice %297 {offsets = [0, 256], sizes = [2, 128], strides = [1, 1]} : vector<2x384xf32> to vector<2x128xf32>
    %303 = arith.mulf %301, %285 : vector<2x128xf32>
    %304 = arith.mulf %300, %299 : vector<2x128xf32>
    %305 = arith.addf %303, %304 : vector<2x128xf32>
    %306 = math.tanh %305 : vector<2x128xf32>
    %307 = arith.mulf %302, %306 : vector<2x128xf32>
    %308 = vector.extract_strided_slice %185 {offsets = [12, 0], sizes = [2, 512], strides = [1, 1]} : vector<16x512xf32> to vector<2x512xf32>
    %309 = arith.truncf %307 : vector<2x128xf32> to vector<2x128xbf16>
    %cst_57 = arith.constant dense<0.000000e+00> : vector<2x512xf32>
    %310 = tpu.matmul %309, %178, %cst_57 {dimension_numbers = #tpu.dot_dimension_numbers<[1], [0], [0], [1], [0, 0, 1, 1], [], []>} : vector<2x128xbf16>, vector<128x512xbf16>, vector<2x512xf32> -> vector<2x512xf32>
    %311 = arith.addf %308, %310 : vector<2x512xf32>
    %312 = vector.extract_strided_slice %311 {offsets = [0, 0], sizes = [2, 384], strides = [1, 1]} : vector<2x512xf32> to vector<2x384xf32>
    %313 = arith.negf %312 : vector<2x384xf32>
    %314 = math.exp %313 : vector<2x384xf32>
    %cst_58 = arith.constant 1.000000e+00 : f32
    %315 = vector.broadcast %cst_58 : f32 to vector<2x384xf32>
    %316 = arith.addf %315, %314 : vector<2x384xf32>
    %317 = arith.divf %315, %316 : vector<2x384xf32>
    %318 = vector.extract_strided_slice %311 {offsets = [0, 384], sizes = [2, 128], strides = [1, 1]} : vector<2x512xf32> to vector<2x128xf32>
    %319 = math.tanh %318 : vector<2x128xf32>
    %320 = vector.extract_strided_slice %317 {offsets = [0, 0], sizes = [2, 128], strides = [1, 1]} : vector<2x384xf32> to vector<2x128xf32>
    %321 = vector.extract_strided_slice %317 {offsets = [0, 128], sizes = [2, 128], strides = [1, 1]} : vector<2x384xf32> to vector<2x128xf32>
    %322 = vector.extract_strided_slice %317 {offsets = [0, 256], sizes = [2, 128], strides = [1, 1]} : vector<2x384xf32> to vector<2x128xf32>
    %323 = arith.mulf %321, %305 : vector<2x128xf32>
    %324 = arith.mulf %320, %319 : vector<2x128xf32>
    %325 = arith.addf %323, %324 : vector<2x128xf32>
    %326 = math.tanh %325 : vector<2x128xf32>
    %327 = arith.mulf %322, %326 : vector<2x128xf32>
    %328 = vector.extract_strided_slice %185 {offsets = [14, 0], sizes = [2, 512], strides = [1, 1]} : vector<16x512xf32> to vector<2x512xf32>
    %329 = arith.truncf %327 : vector<2x128xf32> to vector<2x128xbf16>
    %cst_59 = arith.constant dense<0.000000e+00> : vector<2x512xf32>
    %330 = tpu.matmul %329, %178, %cst_59 {dimension_numbers = #tpu.dot_dimension_numbers<[1], [0], [0], [1], [0, 0, 1, 1], [], []>} : vector<2x128xbf16>, vector<128x512xbf16>, vector<2x512xf32> -> vector<2x512xf32>
    %331 = arith.addf %328, %330 : vector<2x512xf32>
    %332 = vector.extract_strided_slice %331 {offsets = [0, 0], sizes = [2, 384], strides = [1, 1]} : vector<2x512xf32> to vector<2x384xf32>
    %333 = arith.negf %332 : vector<2x384xf32>
    %334 = math.exp %333 : vector<2x384xf32>
    %cst_60 = arith.constant 1.000000e+00 : f32
    %335 = vector.broadcast %cst_60 : f32 to vector<2x384xf32>
    %336 = arith.addf %335, %334 : vector<2x384xf32>
    %337 = arith.divf %335, %336 : vector<2x384xf32>
    %338 = vector.extract_strided_slice %331 {offsets = [0, 384], sizes = [2, 128], strides = [1, 1]} : vector<2x512xf32> to vector<2x128xf32>
    %339 = math.tanh %338 : vector<2x128xf32>
    %340 = vector.extract_strided_slice %337 {offsets = [0, 0], sizes = [2, 128], strides = [1, 1]} : vector<2x384xf32> to vector<2x128xf32>
    %341 = vector.extract_strided_slice %337 {offsets = [0, 128], sizes = [2, 128], strides = [1, 1]} : vector<2x384xf32> to vector<2x128xf32>
    %342 = vector.extract_strided_slice %337 {offsets = [0, 256], sizes = [2, 128], strides = [1, 1]} : vector<2x384xf32> to vector<2x128xf32>
    %343 = arith.mulf %341, %325 : vector<2x128xf32>
    %344 = arith.mulf %340, %339 : vector<2x128xf32>
    %345 = arith.addf %343, %344 : vector<2x128xf32>
    %346 = math.tanh %345 : vector<2x128xf32>
    %347 = arith.mulf %342, %346 : vector<2x128xf32>
    %c0_61 = arith.constant 0 : index
    %c0_62 = arith.constant 0 : index
    %348 = vector.load %arg7[%c0_61, %c0_62] : memref<1x128xf32, #tpu.memory_space<vmem>>, vector<1x128xf32>
    %c0_63 = arith.constant 0 : index
    %c0_64 = arith.constant 0 : index
    %349 = vector.load %arg8[%c0_63, %c0_64] : memref<1x1xf32, #tpu.memory_space<vmem>>, vector<1x1xf32>
    %350 = vector.broadcast %348 : vector<1x128xf32> to vector<2x128xf32>
    %351 = arith.mulf %347, %350 : vector<2x128xf32>
    %cst_65 = arith.constant dense<0.000000e+00> : vector<2xf32>
    %352 = vector.multi_reduction <add>, %351, %cst_65 [1] : vector<2x128xf32> to vector<2xf32>
    %353 = vector.shape_cast %352 : vector<2xf32> to vector<2x1xf32>
    %354 = vector.broadcast %349 : vector<1x1xf32> to vector<2x1xf32>
    %355 = arith.addf %353, %354 : vector<2x1xf32>
    %c0_66 = arith.constant 0 : index
    %c0_67 = arith.constant 0 : index
    %356 = vector.load %arg9[%c0_66, %c0_67] : memref<2x1xf32, #tpu.memory_space<vmem>>, vector<2x1xf32>
    tpu.vector_store %arg9[%c0_66, %c0_67], %355 {strides = array<i32>} : memref<2x1xf32, #tpu.memory_space<vmem>>, vector<2x1xf32>,
    return
  }
}

</mosaic_0001>

<bundles_post_ra>
// kernel: price_prediction_lstm_forward.1
= control target key start
LH: loop header
LB: loop body
LE: loop exit
PB: predicated region body
PF: predicated region fallthrough
CT: control target
= control target key end

     0   :  { %s4636_s0 = inlined_call_operand.vmem [shape: f32[16,4], index: 0, kind: input, shape index: {}]   ;;  %s4637_s1 = inlined_call_operand.vmem [shape: bf16[4,512], index: 1, kind: input, shape index: {}]   ;;  %s4638_s2 = inlined_call_operand.hbm [shape: bf16[128,512], index: 2, kind: input, shape index: {}]   ;;  %s4639_s3 = inlined_call_operand.vmem [shape: f32[1,512], index: 3, kind: input, shape index: {}]   ;;  %s4640_s4 = inlined_call_operand.hbm [shape: bf16[128,512], index: 4, kind: input, shape index: {}]   ;;  %s4641_s5 = inlined_call_operand.hbm [shape: bf16[128,512], index: 5, kind: input, shape index: {}]   ;;  %s4642_s6 = inlined_call_operand.vmem [shape: f32[1,512], index: 6, kind: input, shape index: {}]   ;;  %s4643_s7 = inlined_call_operand.vmem [shape: f32[1,128], index: 7, kind: input, shape index: {}]   ;;  %s4644_s8 = inlined_call_operand.<no memory space> [shape: f32[1,1], index: 8, kind: input, shape index: {}]   ;;  %s4645_s9 = inlined_call_operand.vmem [shape: f32[2,1], index: 9, kind: output, shape index: {}]  }
   0x1   :  { %v14_v0 = vstv %s4644_s8 }
   0x2   :  { %15 = vst [vmem:[#allocation3] sm:$0x1] %v14_v0 }
   0x3   :  { %16 = vsyncpa [#allocation5], 0 }
   0x4   :  { %17 = vsyncpa [#allocation7], 0  ;;  %s3628_s11 = smov [#allocation6]   ;;  %s3629_s13 = smov [#allocation4]  }
   0x5   :  { %s41_s12 = sshll.u32 %s3628_s11, 4  ;;  %s27_s14 = sshll.u32 %s3629_s13, 4  ;;  %s42_s12 = int_to_ptr.vmem [resolvable:$true] %s41_s12  ;;  %s3688_s14 = int_to_ptr.vmem [resolvable:$true] %s27_s14 }
   0x6   :  { %s3558_s17 = scalar_lea.hbm %s4640_s4, 4096 }
   0x7   :  { %p3559_p0 = scmp.ne.s32.totalorder %s4640_s4, %s3558_s17  ;;  %p3562_p1 = scmp.lt.u32.totalorder %s3558_s17, %s4640_s4 }
   0x9   :  { %p3564_p2 = pnand %p3562_p1, %p3559_p0 }
   0xb   :  { %3567 = shalt.err (!%p3564_p2)
}
   0xc   :  { %s3568_s21 = scalar_lea.vmem %s42_s12, 4096  ;;  %p3573_p4 = scmp.lt.s32.totalorder %s42_s12, %s42_s12 }
   0xd   :  { %p3569_p3 = scmp.ne.s32.totalorder %s42_s12, %s3568_s21  ;;  %p3574_p5 = scmp.lt.s32.totalorder %s3568_s21, %s3568_s21 }
   0xf   :  { %p3575_p6 = por %p3574_p5, %p3573_p4 }
  0x11   :  { %p3576_p7 = pnand %p3575_p6, %p3569_p3 }
  0x13   :  { %3579 = shalt.err (!%p3576_p7)
}
  0x14   :  { %s3630_s22 = smov 256   ;;  %s3631_s23 = smov 16  }
  0x15   :  { %47 = dma.hbm_to_vmem [thread:$0]  %s4640_s4, 4096, %s42_s12, [#allocation7], %s3630_s22, %s3630_s22, %s3631_s23  }
  0x16   :  { %s3580_s28 = scalar_lea.hbm %s4638_s2, 4096 }
  0x17   :  { %p3581_p8 = scmp.ne.s32.totalorder %s4638_s2, %s3580_s28  ;;  %p3584_p9 = scmp.lt.u32.totalorder %s3580_s28, %s4638_s2 }
  0x19   :  { %p3586_p10 = pnand %p3584_p9, %p3581_p8 }
  0x1b   :  { %3589 = shalt.err (!%p3586_p10)
}
  0x1c   :  { %s3590_s13 = scalar_lea.vmem %s3688_s14, 4096  ;;  %p3595_p12 = scmp.lt.s32.totalorder %s3688_s14, %s3688_s14 }
  0x1d   :  { %p3591_p11 = scmp.ne.s32.totalorder %s3688_s14, %s3590_s13  ;;  %p3596_p13 = scmp.lt.s32.totalorder %s3590_s13, %s3590_s13 }
  0x1f   :  { %p3597_p0 = por %p3596_p13, %p3595_p12 }
  0x21   :  { %p3598_p1 = pnand %p3597_p0, %p3591_p11 }
  0x23   :  { %3601 = shalt.err (!%p3598_p1)
}
  0x24   :  { %33 = dma.hbm_to_vmem [thread:$0]  %s4638_s2, 4096, %s3688_s14, [#allocation5], %s3630_s22, %s3630_s22, %s3631_s23  }
  0x25   :  { %s3632_s15 = smov [#allocation8]   ;;  %s3602_s19 = scalar_lea.hbm %s4641_s5, 4096 }
  0x26   :  { %s53_s16 = sshll.u32 %s3632_s15, 4  ;;  %p3603_p2 = scmp.ne.s32.totalorder %s4641_s5, %s3602_s19  ;;  %s54_s16 = int_to_ptr.vmem [resolvable:$true] %s53_s16 }
  0x27   :  { %p3606_p3 = scmp.lt.u32.totalorder %s3602_s19, %s4641_s5 }
  0x29   :  { %p3608_p4 = pnand %p3606_p3, %p3603_p2 }
  0x2b   :  { %3611 = shalt.err (!%p3608_p4)
}
  0x2c   :  { %s3612_s25 = scalar_lea.vmem %s54_s16, 4096  ;;  %p3617_p6 = scmp.lt.s32.totalorder %s54_s16, %s54_s16 }
  0x2d   :  { %p3613_p5 = scmp.ne.s32.totalorder %s54_s16, %s3612_s25  ;;  %p3618_p7 = scmp.lt.s32.totalorder %s3612_s25, %s3612_s25 }
  0x2f   :  { %p3619_p8 = por %p3618_p7, %p3617_p6 }
  0x31   :  { %p3620_p9 = pnand %p3619_p8, %p3613_p5 }
  0x33   :  { %3623 = shalt.err (!%p3620_p9)
}
  0x34   :  { %59 = dma.hbm_to_vmem [thread:$0]  %s4641_s5, 4096, %s54_s16, [#allocation7], %s3630_s22, %s3630_s22, %s3631_s23  }
  0x35   :  { %3624 = dma.done.wait [#allocation5], 4096  }
  0x36   :  { %3625 = vsyncadd [#allocation5], 4294963200 }
  0x37   :  { %3626 = dma.done.wait [#allocation7], 8192  }
  0x38   :  { %3627 = vsyncadd [#allocation7], 4294959104  ;;  %v114_v1 = vlaneseq  ;;  %v3633_v2 = vmov 1983009808   ;;  %v3634_v4 = vmov 0   ;;  %v111_v8 = vld [vmem:[%s4637_s1] sm:$0xff] }
  0x39   :  { %v137_v3 = vunpack.c.l.s4 %v3633_v2  ;;  %201 = vmatprep.mubr.bf16.mxu0 %v3634_v4  ;;  %244 = vmatprep.mubr.bf16.mxu1 %v3634_v4  ;;  %vm156_vm0 = vcmask 1041408   ;;  %v135_v10 = vcombine.high %v111_v8, %v111_v8  ;;  %v108_v11 = vld [vmem:[%s4636_s0] sm:$0xff]  ;;  %v109_v12 = vld [vmem:[%s4636_s0 + $0x8] sm:$0xff]  ;;  %vm152_vm1 = vcmask 31744  }
  0x3a   :  { %v3742_v5 = vshrl.u32 %v114_v1, 7  ;;  %v3755_v16 = vld [vmem:[#allocation4 + $0x4] ss:$16 sps:$4 sm:$0xff]   ;;  %v110_v19 = vpack.c.bf16 %v109_v12, %v108_v11  ;;  %v3759_v20 = vld [vmem:[#allocation4 + $0xc] ss:$16 sps:$4 sm:$0xff]   ;;  %vm2917_vm2 = vcmask 1047558  }
  0x3b   :  { %v138_v6 = vunpack.c.0.s8 %v137_v3  ;;  %v3761_v21 = vld [vmem:[#allocation4] ss:$16 sps:$4 sm:$0xff]   ;;  %v3765_v22 = vld [vmem:[#allocation4 + $0x24] ss:$16 sps:$4 sm:$0xff]   ;;  %v3767_v23 = vld [vmem:[#allocation4 + $0x8] ss:$16 sps:$4 sm:$0xff]  }
  0x3c   :  { %v3770_v24 = vld [vmem:[#allocation4 + $0x2c] ss:$16 sps:$4 sm:$0xff]   ;;  %v3773_v25 = vld [vmem:[#allocation4 + $0x20] ss:$16 sps:$4 sm:$0xff]   ;;  %v3777_v26 = vld [vmem:[#allocation4 + $0x44] ss:$16 sps:$4 sm:$0xff]  }
  0x3d   :  { %v141_v7 = vsub.s32 %v138_v6, %v3742_v5  ;;  %v3780_v27 = vld [vmem:[#allocation4 + $0x28] ss:$16 sps:$4 sm:$0xff]   ;;  %v3784_v28 = vld [vmem:[#allocation4 + $0x4c] ss:$16 sps:$4 sm:$0xff]   ;;  %v3787_v29 = vld [vmem:[#allocation4 + $0x40] ss:$16 sps:$4 sm:$0xff]  }
  0x3e   :  { %v3790_v30 = vld [vmem:[#allocation4 + $0x64] ss:$16 sps:$4 sm:$0xff]   ;;  %v3793_v31 = vld [vmem:[#allocation4 + $0x48] ss:$16 sps:$4 sm:$0xff]   ;;  %v3796_v32 = vld [vmem:[#allocation4 + $0x6c] ss:$16 sps:$4 sm:$0xff]  }
  0x3f   :  { %v142_v9 = vrot.slane %v111_v8, %v141_v7  ;;  %v149_v15 = vrot.slane %v135_v10, %v141_v7  ;;  %v3799_v33 = vld [vmem:[#allocation4 + $0x60] ss:$16 sps:$4 sm:$0xff]   ;;  %v3802_v34 = vld [vmem:[#allocation4 + $0x84] ss:$16 sps:$4 sm:$0xff]   ;;  %v3805_v35 = vld [vmem:[#allocation4 + $0x68] ss:$16 sps:$4 sm:$0xff]  }
  0x40   :  { %v3807_v36 = vld [vmem:[#allocation4 + $0x80] ss:$16 sps:$4 sm:$0xff]   ;;  %v3810_v37 = vld [vmem:[#allocation4 + $0x8c] ss:$16 sps:$4 sm:$0xff]   ;;  %v3813_v38 = vld [vmem:[#allocation4 + $0x88] ss:$16 sps:$4 sm:$0xff]  }
  0x41   :  { %v150_v13 = vcombine.high %v142_v9, %v142_v9  ;;  %v158_v14 = vsel %vm156_vm0, %v142_v9, 0  ;;  %v151_v17 = vcombine.high %v149_v15, %v149_v15  ;;  %v164_v18 = vsel %vm156_vm0, %v149_v15, 0  ;;  %v3815_v39 = vld [vmem:[#allocation4 + $0xa4] ss:$16 sps:$4 sm:$0xff]   ;;  %v3818_v40 = vld [vmem:[#allocation4 + $0xac] ss:$16 sps:$4 sm:$0xff]  }
  0x42   :  { %v3821_v41 = vld [vmem:[#allocation4 + $0xa0] ss:$16 sps:$4 sm:$0xff]   ;;  %v3824_v42 = vld [vmem:[#allocation4 + $0xc4] ss:$16 sps:$4 sm:$0xff]   ;;  %v3827_v43 = vld [vmem:[#allocation4 + $0xa8] ss:$16 sps:$4 sm:$0xff]  }
  0x43   :  { %2936 = vmatprep.subr.msk.bf16.mxu0 %vm156_vm0, %v150_v13  ;;  %2938 = vmatprep.subr.msk.bf16.mxu1 %vm156_vm0, %v151_v17  ;;  %v3830_v44 = vld [vmem:[#allocation4 + $0xcc] ss:$16 sps:$4 sm:$0xff]   ;;  %v3833_v45 = vld [vmem:[#allocation4 + $0xc0] ss:$16 sps:$4 sm:$0xff]   ;;  %v3836_v46 = vld [vmem:[#allocation4 + $0xe4] ss:$16 sps:$4 sm:$0xff]  }
  0x44   :  { %170 = vmatpush1.bf16.msra.mxu0 %v158_v14  ;;  %213 = vmatpush1.bf16.msra.mxu1 %v164_v18  ;;  %v3839_v47 = vld [vmem:[#allocation4 + $0xc8] ss:$16 sps:$4 sm:$0xff]   ;;  %v3842_v48 = vld [vmem:[#allocation4 + $0xec] ss:$16 sps:$4 sm:$0xff]   ;;  %v3845_v49 = vld [vmem:[#allocation4 + $0xe0] ss:$16 sps:$4 sm:$0xff]  }
  0x45   :  { %415 = vmatprep.subr.bf16.mxu0 %v3755_v16  ;;  %456 = vmatprep.subr.bf16.mxu1 %v3759_v20  ;;  %v3849_v50 = vld [vmem:[#allocation4 + $0xe8] ss:$16 sps:$4 sm:$0xff]   ;;  %v116_v51 = vsub.s32 0, %v3742_v5  ;;  %v112_v52 = vld [vmem:[%s4639_s3] sm:$0xf]  ;;  %v124_v53 = vsub.s32 2, %v3742_v5 }
  0x46   :  { %v120_v54 = vsub.s32 1, %v3742_v5  ;;  %v4646_v55 = vsub.s32 3, %v3742_v5  ;;  %vm2928_vm3 = vcmask 7174  }
  0x47   :  { %2937 = vmatmul.mubr.msk.bf16.vlgmr.msra.gmra.mrb[0].mxu0 %vm152_vm1, %v110_v19  ;;  %2939 = vmatmul.mubr.msk.bf16.vlgmr.msra.gmra.mrb[0].mxu1 %vm152_vm1, %v110_v19  ;;  %v117_v56 = vrot.slane %v112_v52, %v116_v51  ;;  %v125_v59 = vrot.slane %v112_v52, %v124_v53 }
  0x48   :  { %416 = vmatpush1.bf16.msra.mxu0 %v3761_v21  ;;  %447 = vmatprep.mubr.bf16.mxu0 %v3634_v4  ;;  %v121_v60 = vrot.slane %v112_v52, %v120_v54  ;;  %v129_v63 = vrot.slane %v112_v52, %v4646_v55 }
  0x49   :  { %417 = vmatprep.subr.bf16.mxu0 %v3765_v22  ;;  %457 = vmatpush1.bf16.msra.mxu1 %v3767_v23 }
  0x4a   :  { %488 = vmatprep.mubr.bf16.mxu1 %v3634_v4  ;;  %458 = vmatprep.subr.bf16.mxu1 %v3770_v24 }
  0x4c   :  { %418 = vmatpush1.bf16.msra.mxu0 %v3773_v25 }
  0x4d   :  { %419 = vmatprep.subr.bf16.mxu0 %v3777_v26  ;;  %459 = vmatpush1.bf16.msra.mxu1 %v3780_v27 }
  0x4e   :  { %460 = vmatprep.subr.bf16.mxu1 %v3784_v28 }
  0x50   :  { %420 = vmatpush1.bf16.msra.mxu0 %v3787_v29 }
  0x51   :  { %421 = vmatprep.subr.bf16.mxu0 %v3790_v30  ;;  %461 = vmatpush1.bf16.msra.mxu1 %v3793_v31 }
  0x52   :  { %462 = vmatprep.subr.bf16.mxu1 %v3796_v32 }
  0x54   :  { %422 = vmatpush1.bf16.msra.mxu0 %v3799_v33 }
  0x55   :  { %423 = vmatprep.subr.bf16.mxu0 %v3802_v34  ;;  %463 = vmatpush1.bf16.msra.mxu1 %v3805_v35 }
  0x56   :  { %464 = vmatprep.subr.bf16.mxu1 %v3810_v37 }
  0x58   :  { %424 = vmatpush1.bf16.msra.mxu0 %v3807_v36 }
  0x59   :  { %425 = vmatprep.subr.bf16.mxu0 %v3815_v39  ;;  %465 = vmatpush1.bf16.msra.mxu1 %v3813_v38 }
  0x5a   :  { %466 = vmatprep.subr.bf16.mxu1 %v3818_v40 }
  0x5c   :  { %426 = vmatpush1.bf16.msra.mxu0 %v3821_v41 }
  0x5d   :  { %427 = vmatprep.subr.bf16.mxu0 %v3824_v42  ;;  %467 = vmatpush1.bf16.msra.mxu1 %v3827_v43 }
  0x5e   :  { %468 = vmatprep.subr.bf16.mxu1 %v3830_v44 }
  0x60   :  { %428 = vmatpush1.bf16.msra.mxu0 %v3833_v45 }
  0x61   :  { %429 = vmatprep.subr.bf16.mxu0 %v3836_v46  ;;  %469 = vmatpush1.bf16.msra.mxu1 %v3839_v47 }
  0x62   :  { %470 = vmatprep.subr.bf16.mxu1 %v3842_v48 }
  0x64   :  { %430 = vmatpush1.bf16.msra.mxu0 %v3845_v49 }
  0x65   :  { %527 = vmatprep.subr.bf16.mxu0 %v3755_v16  ;;  %471 = vmatpush1.bf16.msra.mxu1 %v3849_v50 }
  0x66   :  { %568 = vmatprep.subr.bf16.mxu1 %v3759_v20 }
  0x67   :  { %448 = vmatmul.mubr.bf16.vlgmr.msra.gmra.mrb[4].mxu0 %v3634_v4 }
  0x68   :  { %528 = vmatpush1.bf16.msra.mxu0 %v3761_v21  ;;  %559 = vmatprep.mubr.bf16.mxu0 %v3634_v4 }
  0x69   :  { %489 = vmatmul.mubr.bf16.vlgmr.msra.gmra.mrb[4].mxu1 %v3634_v4  ;;  %529 = vmatprep.subr.bf16.mxu0 %v3765_v22 }
  0x6a   :  { %569 = vmatpush1.bf16.msra.mxu1 %v3767_v23  ;;  %600 = vmatprep.mubr.bf16.mxu1 %v3634_v4 }
  0x6b   :  { %570 = vmatprep.subr.bf16.mxu1 %v3770_v24 }
  0x6c   :  { %530 = vmatpush1.bf16.msra.mxu0 %v3773_v25 }
  0x6d   :  { %531 = vmatprep.subr.bf16.mxu0 %v3777_v26 }
  0x6e   :  { %571 = vmatpush1.bf16.msra.mxu1 %v3780_v27 }
  0x6f   :  { %572 = vmatprep.subr.bf16.mxu1 %v3784_v28 }
  0x70   :  { %532 = vmatpush1.bf16.msra.mxu0 %v3787_v29 }
  0x71   :  { %533 = vmatprep.subr.bf16.mxu0 %v3790_v30 }
  0x72   :  { %573 = vmatpush1.bf16.msra.mxu1 %v3793_v31 }
  0x73   :  { %574 = vmatprep.subr.bf16.mxu1 %v3796_v32 }
  0x74   :  { %534 = vmatpush1.bf16.msra.mxu0 %v3799_v33 }
  0x75   :  { %535 = vmatprep.subr.bf16.mxu0 %v3802_v34 }
  0x76   :  { %575 = vmatpush1.bf16.msra.mxu1 %v3805_v35 }
  0x77   :  { %576 = vmatprep.subr.bf16.mxu1 %v3810_v37 }
  0x78   :  { %536 = vmatpush1.bf16.msra.mxu0 %v3807_v36 }
  0x79   :  { %537 = vmatprep.subr.bf16.mxu0 %v3815_v39 }
  0x7a   :  { %577 = vmatpush1.bf16.msra.mxu1 %v3813_v38 }
  0x7b   :  { %578 = vmatprep.subr.bf16.mxu1 %v3818_v40 }
  0x7c   :  { %538 = vmatpush1.bf16.msra.mxu0 %v3821_v41 }
  0x7d   :  { %539 = vmatprep.subr.bf16.mxu0 %v3824_v42 }
  0x7e   :  { %579 = vmatpush1.bf16.msra.mxu1 %v3827_v43 }
  0x7f   :  { %580 = vmatprep.subr.bf16.mxu1 %v3830_v44 }
  0x80   :  { %540 = vmatpush1.bf16.msra.mxu0 %v3833_v45 }
  0x81   :  { %541 = vmatprep.subr.bf16.mxu0 %v3836_v46 }
  0x82   :  { %581 = vmatpush1.bf16.msra.mxu1 %v3839_v47 }
  0x83   :  { %582 = vmatprep.subr.bf16.mxu1 %v3842_v48 }
  0x84   :  { %542 = vmatpush1.bf16.msra.mxu0 %v3845_v49 }
  0x85   :  { %657 = vmatprep.subr.bf16.mxu0 %v3755_v16 }
  0x86   :  { %583 = vmatpush1.bf16.msra.mxu1 %v3849_v50 }
  0x87   :  { %698 = vmatprep.subr.bf16.mxu1 %v3759_v20 }
 0x11a   :  { %v203_v57 = vpop.f32.mrb[0].mxu0  ;;  %v246_v62 = vpop.f32.mrb[0].mxu1 }
 0x11b   :  { %v205_v58 = vpop.f32.mrb[1].mxu0  ;;  %v248_v2 = vpop.f32.mrb[1].mxu1  ;;  %v3917_v10 = vadd.f32 %v203_v57, %v117_v56  ;;  %v3923_v55 = vadd.f32 %v246_v62, %v125_v59 }
 0x11c   :  { %v207_v61 = vpop.f32.mrb[2].mxu0  ;;  %v250_v6 = vpop.f32.mrb[2].mxu1  ;;  %v3919_v11 = vadd.f32 %v205_v58, %v121_v60  ;;  %v3926_v57 = vadd.f32 %v248_v2, %v129_v63 }
 0x11d   :  { %v3909_v0 = vadd.f32 %v207_v61, %v117_v56  ;;  %v209_v1 = vpop.f32.mrb[3].mxu0  ;;  %v3913_v7 = vadd.f32 %v250_v6, %v125_v59  ;;  %v252_v8 = vpop.f32.mrb[3].mxu1 }
 0x11e   :  { %v3911_v3 = vadd.f32 %v209_v1, %v121_v60  ;;  %v3915_v9 = vadd.f32 %v252_v8, %v129_v63 }
 0x13a   :  { %v449_v12 = vpop.f32.mrb[4].mxu0 }
 0x13b   :  { %v497_v13 = vadd.f32 %v449_v12, %v3917_v10  ;;  %v451_v14 = vpop.f32.mrb[5].mxu0 }
 0x13c   :  { %v498_v15 = vadd.f32 %v451_v14, %v3919_v11  ;;  %v453_v17 = vpop.f32.mrb[6].mxu0  ;;  %v490_v18 = vpop.f32.mrb[4].mxu1 }
 0x13d   :  { %v2972_v19 = vmul.f32 -1.442695, %v497_v13  ;;  %v454_v52 = vpop.f32.mrb[7].mxu0  ;;  %v492_v61 = vpop.f32.mrb[5].mxu1  ;;  %v499_v56 = vadd.f32 %v490_v18, %v3923_v55 }
 0x13e   :  { %v2973_v1 = vmul.f32 -1.442695, %v498_v15  ;;  %v494_v6 = vpop.f32.mrb[6].mxu1  ;;  %v500_v60 = vadd.f32 %v492_v61, %v3926_v57 }
 0x13f   :  { %3238 = vpow2.f32 %v2972_v19  ;;  %v495_v8 = vpop.f32.mrb[7].mxu1  ;;  %v2974_v58 = vmul.f32 -1.442695, %v499_v56 }
 0x140   :  { %3240 = vpow2.f32 %v2973_v1 }
 0x141   :  { %3242 = vpow2.f32 %v2974_v58 }
 0x142   :  { %3244 = vtanh.f32 %v500_v60 }
 0x149   :  { %v3239_v12 = vpop.eup %3238 }
 0x14a   :  { %v3241_v14 = vpop.eup %3240  ;;  %v510_v17 = vadd.f32 1.0, %v3239_v12 }
 0x14b   :  { %v511_v13 = vadd.f32 1.0, %v3241_v14  ;;  %v3243_v15 = vpop.eup %3242 }
 0x14c   :  { %3246 = vrcp.f32 %v510_v17  ;;  %v3245_v19 = vpop.eup %3244  ;;  %v512_v52 = vadd.f32 1.0, %v3243_v15 }
 0x14d   :  { %3248 = vrcp.f32 %v511_v13 }
 0x14e   :  { %3250 = vrcp.f32 %v512_v52 }
 0x156   :  { %v3247_v59 = vpop.eup %3246 }
 0x157   :  { %v3249_v62 = vpop.eup %3248  ;;  %v521_v1 = vmul.f32 %v3247_v59, %v3245_v19 }
 0x158   :  { %v520_v18 = vmul.f32 0.0, %v3249_v62  ;;  %v3251_v2 = vpop.eup %3250 }
 0x15a   :  { %v3929_v63 = vadd.f32 %v521_v1, %v520_v18 }
 0x15c   :  { %3252 = vtanh.f32 %v3929_v63 }
 0x166   :  { %v3253_v61 = vpop.eup %3252 }
 0x167   :  { %v524_v6 = vmul.f32 %v3253_v61, %v3251_v2 }
 0x169   :  { %525 = vst [vmem:[#allocation2] sm:$0x3] %v524_v6  ;;  %v526_v8 = vpack.c.bf16 %v524_v6, %v524_v6 }
 0x16b   :  { %560 = vmatmul.mubr.bf16.vlgmr.msra.gmra.mrb[8].mxu0 %v526_v8  ;;  %601 = vmatmul.mubr.bf16.vlgmr.msra.gmra.mrb[8].mxu1 %v526_v8 }
 0x16c   :  { %658 = vmatpush1.bf16.msra.mxu0 %v3761_v21  ;;  %699 = vmatpush1.bf16.msra.mxu1 %v3767_v23 }
 0x16d   :  { %659 = vmatprep.subr.bf16.mxu0 %v3765_v22  ;;  %700 = vmatprep.subr.bf16.mxu1 %v3770_v24 }
 0x16e   :  { %689 = vmatprep.mubr.bf16.mxu0 %v3634_v4  ;;  %730 = vmatprep.mubr.bf16.mxu1 %v3634_v4 }
 0x170   :  { %660 = vmatpush1.bf16.msra.mxu0 %v3773_v25  ;;  %701 = vmatpush1.bf16.msra.mxu1 %v3780_v27 }
 0x171   :  { %661 = vmatprep.subr.bf16.mxu0 %v3777_v26  ;;  %702 = vmatprep.subr.bf16.mxu1 %v3784_v28 }
 0x174   :  { %662 = vmatpush1.bf16.msra.mxu0 %v3787_v29  ;;  %703 = vmatpush1.bf16.msra.mxu1 %v3793_v31 }
 0x175   :  { %663 = vmatprep.subr.bf16.mxu0 %v3790_v30  ;;  %704 = vmatprep.subr.bf16.mxu1 %v3796_v32 }
 0x178   :  { %664 = vmatpush1.bf16.msra.mxu0 %v3799_v33  ;;  %705 = vmatpush1.bf16.msra.mxu1 %v3805_v35 }
 0x179   :  { %665 = vmatprep.subr.bf16.mxu0 %v3802_v34  ;;  %706 = vmatprep.subr.bf16.mxu1 %v3810_v37 }
 0x17c   :  { %666 = vmatpush1.bf16.msra.mxu0 %v3807_v36  ;;  %707 = vmatpush1.bf16.msra.mxu1 %v3813_v38 }
 0x17d   :  { %667 = vmatprep.subr.bf16.mxu0 %v3815_v39  ;;  %708 = vmatprep.subr.bf16.mxu1 %v3818_v40 }
 0x180   :  { %668 = vmatpush1.bf16.msra.mxu0 %v3821_v41  ;;  %709 = vmatpush1.bf16.msra.mxu1 %v3827_v43 }
 0x181   :  { %669 = vmatprep.subr.bf16.mxu0 %v3824_v42  ;;  %710 = vmatprep.subr.bf16.mxu1 %v3830_v44 }
 0x184   :  { %670 = vmatpush1.bf16.msra.mxu0 %v3833_v45  ;;  %711 = vmatpush1.bf16.msra.mxu1 %v3839_v47 }
 0x185   :  { %671 = vmatprep.subr.bf16.mxu0 %v3836_v46  ;;  %712 = vmatprep.subr.bf16.mxu1 %v3842_v48 }
 0x188   :  { %672 = vmatpush1.bf16.msra.mxu0 %v3845_v49  ;;  %713 = vmatpush1.bf16.msra.mxu1 %v3849_v50 }
 0x189   :  { %787 = vmatprep.subr.bf16.mxu0 %v3755_v16  ;;  %828 = vmatprep.subr.bf16.mxu1 %v3759_v20 }
 0x23e   :  { %v561_v56 = vpop.f32.mrb[8].mxu0  ;;  %v602_v58 = vpop.f32.mrb[8].mxu1 }
 0x23f   :  { %v613_v60 = vrot.slane %v561_v56, 6  ;;  %v563_v12 = vpop.f32.mrb[9].mxu0  ;;  %v604_v14 = vpop.f32.mrb[9].mxu1  ;;  %v615_v2 = vrot.slane %v602_v58, 6  ;;  %v645_v58 = vrot.slane %v3929_v63, 6 }
 0x240   :  { %v614_v17 = vrot.slane %v563_v12, 6  ;;  %v565_v13 = vpop.f32.mrb[10].mxu0  ;;  %v606_v15 = vpop.f32.mrb[10].mxu1  ;;  %v616_v61 = vrot.slane %v604_v14, 6 }
 0x241   :  { %v621_v19 = vadd.f32 %v613_v60, %v3917_v10  ;;  %v566_v59 = vpop.f32.mrb[11].mxu0  ;;  %v607_v62 = vpop.f32.mrb[11].mxu1  ;;  %v623_v6 = vadd.f32 %v615_v2, %v3923_v55 }
 0x242   :  { %v622_v52 = vadd.f32 %v614_v17, %v3919_v11  ;;  %v624_v8 = vadd.f32 %v616_v61, %v3926_v57 }
 0x243   :  { %v2975_v1 = vmul.f32 -1.442695, %v621_v19  ;;  %v2977_v56 = vmul.f32 -1.442695, %v623_v6 }
 0x244   :  { %v2976_v18 = vmul.f32 -1.442695, %v622_v52 }
 0x245   :  { %3254 = vpow2.f32 %v2975_v1 }
 0x246   :  { %3256 = vpow2.f32 %v2976_v18 }
 0x247   :  { %3258 = vtanh.f32 %v624_v8 }
 0x248   :  { %3260 = vpow2.f32 %v2977_v56 }
 0x24f   :  { %v3255_v12 = vpop.eup %3254 }
 0x250   :  { %v634_v13 = vadd.f32 1.0, %v3255_v12  ;;  %v3257_v15 = vpop.eup %3256 }
 0x251   :  { %v635_v60 = vadd.f32 1.0, %v3257_v15  ;;  %v3259_v17 = vpop.eup %3258 }
 0x252   :  { %3262 = vrcp.f32 %v634_v13  ;;  %v3261_v19 = vpop.eup %3260 }
 0x253   :  { %3264 = vrcp.f32 %v635_v60  ;;  %v636_v52 = vadd.f32 1.0, %v3261_v19 }
 0x255   :  { %3266 = vrcp.f32 %v636_v52 }
 0x25c   :  { %v3263_v59 = vpop.eup %3262 }
 0x25d   :  { %v648_v62 = vmul.f32 %v3263_v59, %v3259_v17  ;;  %v3265_v14 = vpop.eup %3264 }
 0x25e   :  { %v647_v1 = vmul.f32 %v3265_v14, %v645_v58 }
 0x25f   :  { %v3267_v2 = vpop.eup %3266 }
 0x260   :  { %v3971_v18 = vadd.f32 %v648_v62, %v647_v1 }
 0x262   :  { %3268 = vtanh.f32 %v3971_v18 }
 0x26c   :  { %v3269_v61 = vpop.eup %3268 }
 0x26d   :  { %v651_v6 = vmul.f32 %v3269_v61, %v3267_v2 }
 0x26f   :  { %652 = vst [vmem:[#allocation2] sm:$0xc] %v651_v6  ;;  %v653_v8 = vpack.c.bf16 %v651_v6, %v651_v6 }
 0x271   :  { %v655_v56 = vrot.slane %v653_v8, 1 }
 0x273   :  { %690 = vmatmul.mubr.bf16.vlgmr.msra.gmra.mrb[12].mxu0 %v655_v56  ;;  %731 = vmatmul.mubr.bf16.vlgmr.msra.gmra.mrb[12].mxu1 %v655_v56 }
 0x274   :  { %788 = vmatpush1.bf16.msra.mxu0 %v3761_v21  ;;  %829 = vmatpush1.bf16.msra.mxu1 %v3767_v23 }
 0x275   :  { %789 = vmatprep.subr.bf16.mxu0 %v3765_v22  ;;  %830 = vmatprep.subr.bf16.mxu1 %v3770_v24 }
 0x276   :  { %819 = vmatprep.mubr.bf16.mxu0 %v3634_v4  ;;  %860 = vmatprep.mubr.bf16.mxu1 %v3634_v4 }
 0x278   :  { %790 = vmatpush1.bf16.msra.mxu0 %v3773_v25  ;;  %831 = vmatpush1.bf16.msra.mxu1 %v3780_v27 }
 0x279   :  { %791 = vmatprep.subr.bf16.mxu0 %v3777_v26  ;;  %832 = vmatprep.subr.bf16.mxu1 %v3784_v28 }
 0x27c   :  { %792 = vmatpush1.bf16.msra.mxu0 %v3787_v29  ;;  %833 = vmatpush1.bf16.msra.mxu1 %v3793_v31 }
 0x27d   :  { %793 = vmatprep.subr.bf16.mxu0 %v3790_v30  ;;  %834 = vmatprep.subr.bf16.mxu1 %v3796_v32 }
 0x280   :  { %794 = vmatpush1.bf16.msra.mxu0 %v3799_v33  ;;  %835 = vmatpush1.bf16.msra.mxu1 %v3805_v35 }
 0x281   :  { %795 = vmatprep.subr.bf16.mxu0 %v3802_v34  ;;  %836 = vmatprep.subr.bf16.mxu1 %v3810_v37 }
 0x284   :  { %796 = vmatpush1.bf16.msra.mxu0 %v3807_v36  ;;  %837 = vmatpush1.bf16.msra.mxu1 %v3813_v38 }
 0x285   :  { %797 = vmatprep.subr.bf16.mxu0 %v3815_v39  ;;  %838 = vmatprep.subr.bf16.mxu1 %v3818_v40 }
 0x288   :  { %798 = vmatpush1.bf16.msra.mxu0 %v3821_v41  ;;  %839 = vmatpush1.bf16.msra.mxu1 %v3827_v43 }
 0x289   :  { %799 = vmatprep.subr.bf16.mxu0 %v3824_v42  ;;  %840 = vmatprep.subr.bf16.mxu1 %v3830_v44 }
 0x28c   :  { %800 = vmatpush1.bf16.msra.mxu0 %v3833_v45  ;;  %841 = vmatpush1.bf16.msra.mxu1 %v3839_v47 }
 0x28d   :  { %801 = vmatprep.subr.bf16.mxu0 %v3836_v46  ;;  %842 = vmatprep.subr.bf16.mxu1 %v3842_v48 }
 0x290   :  { %802 = vmatpush1.bf16.msra.mxu0 %v3845_v49  ;;  %843 = vmatpush1.bf16.msra.mxu1 %v3849_v50 }
 0x291   :  { %917 = vmatprep.subr.bf16.mxu0 %v3755_v16  ;;  %958 = vmatprep.subr.bf16.mxu1 %v3759_v20 }
 0x346   :  { %v691_v63 = vpop.f32.mrb[12].mxu0  ;;  %v732_v12 = vpop.f32.mrb[12].mxu1 }
 0x347   :  { %v743_v13 = vrot.slane %v691_v63, 4  ;;  %v693_v15 = vpop.f32.mrb[13].mxu0  ;;  %v734_v60 = vpop.f32.mrb[13].mxu1  ;;  %v745_v61 = vrot.slane %v732_v12, 4  ;;  %v775_v12 = vrot.slane %v3971_v18, 6 }
 0x348   :  { %v744_v17 = vrot.slane %v693_v15, 4  ;;  %v695_v19 = vpop.f32.mrb[14].mxu0  ;;  %v736_v59 = vpop.f32.mrb[14].mxu1  ;;  %v746_v6 = vrot.slane %v734_v60, 4 }
 0x349   :  { %v751_v58 = vadd.f32 %v743_v13, %v3917_v10  ;;  %v696_v62 = vpop.f32.mrb[15].mxu0  ;;  %v737_v14 = vpop.f32.mrb[15].mxu1  ;;  %v753_v8 = vadd.f32 %v745_v61, %v3923_v55 }
 0x34a   :  { %v752_v52 = vadd.f32 %v744_v17, %v3919_v11  ;;  %v754_v56 = vadd.f32 %v746_v6, %v3926_v57 }
 0x34b   :  { %v2978_v1 = vmul.f32 -1.442695, %v751_v58  ;;  %v2980_v63 = vmul.f32 -1.442695, %v753_v8 }
 0x34c   :  { %v2979_v2 = vmul.f32 -1.442695, %v752_v52 }
 0x34d   :  { %3270 = vpow2.f32 %v2978_v1 }
 0x34e   :  { %3272 = vpow2.f32 %v2979_v2 }
 0x34f   :  { %3274 = vtanh.f32 %v754_v56 }
 0x350   :  { %3276 = vpow2.f32 %v2980_v63 }
 0x357   :  { %v3271_v15 = vpop.eup %3270 }
 0x358   :  { %v764_v19 = vadd.f32 1.0, %v3271_v15  ;;  %v3273_v59 = vpop.eup %3272 }
 0x359   :  { %v765_v13 = vadd.f32 1.0, %v3273_v59  ;;  %v3275_v17 = vpop.eup %3274 }
 0x35a   :  { %3278 = vrcp.f32 %v764_v19  ;;  %v3277_v58 = vpop.eup %3276 }
 0x35b   :  { %3280 = vrcp.f32 %v765_v13  ;;  %v766_v52 = vadd.f32 1.0, %v3277_v58 }
 0x35d   :  { %3282 = vrcp.f32 %v766_v52 }
 0x364   :  { %v3279_v62 = vpop.eup %3278 }
 0x365   :  { %v778_v14 = vmul.f32 %v3279_v62, %v3275_v17  ;;  %v3281_v60 = vpop.eup %3280 }
 0x366   :  { %v777_v1 = vmul.f32 %v3281_v60, %v775_v12 }
 0x367   :  { %v3283_v61 = vpop.eup %3282 }
 0x368   :  { %v4013_v2 = vadd.f32 %v778_v14, %v777_v1 }
 0x36a   :  { %3284 = vtanh.f32 %v4013_v2 }
 0x374   :  { %v3285_v6 = vpop.eup %3284 }
 0x375   :  { %v781_v8 = vmul.f32 %v3285_v6, %v3283_v61 }
 0x377   :  { %782 = vst [vmem:[#allocation2] sm:$0x30] %v781_v8  ;;  %v783_v56 = vpack.c.bf16 %v781_v8, %v781_v8 }
 0x379   :  { %v785_v63 = vrot.slane %v783_v56, 2 }
 0x37b   :  { %820 = vmatmul.mubr.bf16.vlgmr.msra.gmra.mrb[16].mxu0 %v785_v63  ;;  %861 = vmatmul.mubr.bf16.vlgmr.msra.gmra.mrb[16].mxu1 %v785_v63 }
 0x37c   :  { %918 = vmatpush1.bf16.msra.mxu0 %v3761_v21  ;;  %959 = vmatpush1.bf16.msra.mxu1 %v3767_v23 }
 0x37d   :  { %919 = vmatprep.subr.bf16.mxu0 %v3765_v22  ;;  %960 = vmatprep.subr.bf16.mxu1 %v3770_v24 }
 0x37e   :  { %949 = vmatprep.mubr.bf16.mxu0 %v3634_v4  ;;  %990 = vmatprep.mubr.bf16.mxu1 %v3634_v4 }
 0x380   :  { %920 = vmatpush1.bf16.msra.mxu0 %v3773_v25  ;;  %961 = vmatpush1.bf16.msra.mxu1 %v3780_v27 }
 0x381   :  { %921 = vmatprep.subr.bf16.mxu0 %v3777_v26  ;;  %962 = vmatprep.subr.bf16.mxu1 %v3784_v28 }
 0x384   :  { %922 = vmatpush1.bf16.msra.mxu0 %v3787_v29  ;;  %963 = vmatpush1.bf16.msra.mxu1 %v3793_v31 }
 0x385   :  { %923 = vmatprep.subr.bf16.mxu0 %v3790_v30  ;;  %964 = vmatprep.subr.bf16.mxu1 %v3796_v32 }
 0x388   :  { %924 = vmatpush1.bf16.msra.mxu0 %v3799_v33  ;;  %965 = vmatpush1.bf16.msra.mxu1 %v3805_v35 }
 0x389   :  { %925 = vmatprep.subr.bf16.mxu0 %v3802_v34  ;;  %966 = vmatprep.subr.bf16.mxu1 %v3810_v37 }
 0x38c   :  { %926 = vmatpush1.bf16.msra.mxu0 %v3807_v36  ;;  %967 = vmatpush1.bf16.msra.mxu1 %v3813_v38 }
 0x38d   :  { %927 = vmatprep.subr.bf16.mxu0 %v3815_v39  ;;  %968 = vmatprep.subr.bf16.mxu1 %v3818_v40 }
 0x390   :  { %928 = vmatpush1.bf16.msra.mxu0 %v3821_v41  ;;  %969 = vmatpush1.bf16.msra.mxu1 %v3827_v43 }
 0x391   :  { %929 = vmatprep.subr.bf16.mxu0 %v3824_v42  ;;  %970 = vmatprep.subr.bf16.mxu1 %v3830_v44 }
 0x394   :  { %930 = vmatpush1.bf16.msra.mxu0 %v3833_v45  ;;  %971 = vmatpush1.bf16.msra.mxu1 %v3839_v47 }
 0x395   :  { %931 = vmatprep.subr.bf16.mxu0 %v3836_v46  ;;  %972 = vmatprep.subr.bf16.mxu1 %v3842_v48 }
 0x398   :  { %932 = vmatpush1.bf16.msra.mxu0 %v3845_v49  ;;  %973 = vmatpush1.bf16.msra.mxu1 %v3849_v50 }
 0x399   :  { %1032 = vmatprep.subr.bf16.mxu0 %v3755_v16  ;;  %1073 = vmatprep.subr.bf16.mxu1 %v3759_v20 }
 0x44e   :  { %v821_v18 = vpop.f32.mrb[16].mxu0  ;;  %v862_v15 = vpop.f32.mrb[16].mxu1 }
 0x44f   :  { %v873_v19 = vrot.slane %v821_v18, 2  ;;  %v823_v59 = vpop.f32.mrb[17].mxu0  ;;  %v864_v13 = vpop.f32.mrb[17].mxu1  ;;  %v875_v16 = vrot.slane %v862_v15, 2  ;;  %v905_v15 = vrot.slane %v4013_v2, 6 }
 0x450   :  { %v874_v17 = vrot.slane %v823_v59, 2  ;;  %v825_v58 = vpop.f32.mrb[18].mxu0  ;;  %v866_v62 = vpop.f32.mrb[18].mxu1  ;;  %v876_v20 = vrot.slane %v864_v13, 2 }
 0x451   :  { %v881_v12 = vadd.f32 %v873_v19, %v3917_v10  ;;  %v826_v14 = vpop.f32.mrb[19].mxu0  ;;  %v867_v60 = vpop.f32.mrb[19].mxu1  ;;  %v883_v6 = vadd.f32 %v875_v16, %v3923_v55 }
 0x452   :  { %v882_v52 = vadd.f32 %v874_v17, %v3919_v11  ;;  %v884_v8 = vadd.f32 %v876_v20, %v3926_v57 }
 0x453   :  { %v2981_v1 = vmul.f32 -1.442695, %v881_v12  ;;  %v2983_v56 = vmul.f32 -1.442695, %v883_v6 }
 0x454   :  { %v2982_v61 = vmul.f32 -1.442695, %v882_v52 }
 0x455   :  { %3286 = vpow2.f32 %v2981_v1 }
 0x456   :  { %3288 = vpow2.f32 %v2982_v61 }
 0x457   :  { %3290 = vtanh.f32 %v884_v8 }
 0x458   :  { %3292 = vpow2.f32 %v2983_v56 }
 0x45f   :  { %v3287_v63 = vpop.eup %3286 }
 0x460   :  { %v894_v18 = vadd.f32 1.0, %v3287_v63  ;;  %v3289_v59 = vpop.eup %3288 }
 0x461   :  { %v895_v10 = vadd.f32 1.0, %v3289_v59  ;;  %v3291_v11 = vpop.eup %3290  ;;  %v4107_v59 = vld [vmem:[#allocation4 + $0x8] ss:$16 sps:$4 sm:$0xff]  }
 0x462   :  { %3294 = vrcp.f32 %v894_v18  ;;  %v3293_v19 = vpop.eup %3292  ;;  %v4104_v18 = vld [vmem:[#allocation4] ss:$16 sps:$4 sm:$0xff]  }
 0x463   :  { %3296 = vrcp.f32 %v895_v10  ;;  %v896_v62 = vadd.f32 1.0, %v3293_v19  ;;  %v4110_v10 = vld [vmem:[#allocation4 + $0x24] ss:$16 sps:$4 sm:$0xff]   ;;  %v4118_v19 = vld [vmem:[#allocation4 + $0x20] ss:$16 sps:$4 sm:$0xff]  }
 0x465   :  { %3298 = vrcp.f32 %v896_v62  ;;  %v4133_v62 = vld [vmem:[#allocation4 + $0x48] ss:$16 sps:$4 sm:$0xff]  }
 0x46c   :  { %v3295_v17 = vpop.eup %3294 }
 0x46d   :  { %v908_v58 = vmul.f32 %v3295_v17, %v3291_v11  ;;  %v3297_v13 = vpop.eup %3296  ;;  %v4113_v11 = vld [vmem:[#allocation4 + $0x2c] ss:$16 sps:$4 sm:$0xff]   ;;  %v4121_v17 = vld [vmem:[#allocation4 + $0x28] ss:$16 sps:$4 sm:$0xff]  }
 0x46e   :  { %v907_v55 = vmul.f32 %v3297_v13, %v905_v15  ;;  %v4124_v15 = vld [vmem:[#allocation4 + $0x44] ss:$16 sps:$4 sm:$0xff]   ;;  %v4130_v13 = vld [vmem:[#allocation4 + $0x40] ss:$16 sps:$4 sm:$0xff]  }
 0x46f   :  { %v3299_v57 = vpop.eup %3298 }
 0x470   :  { %v4055_v12 = vadd.f32 %v908_v58, %v907_v55  ;;  %v4127_v58 = vld [vmem:[#allocation4 + $0x4c] ss:$16 sps:$4 sm:$0xff]   ;;  %v4136_v55 = vld [vmem:[#allocation4 + $0x64] ss:$16 sps:$4 sm:$0xff]  }
 0x472   :  { %3300 = vtanh.f32 %v4055_v12 }
 0x47c   :  { %v3301_v14 = vpop.eup %3300 }
 0x47d   :  { %v911_v60 = vmul.f32 %v3301_v14, %v3299_v57  ;;  %v4142_v57 = vld [vmem:[#allocation4 + $0x60] ss:$16 sps:$4 sm:$0xff]   ;;  %v4145_v14 = vld [vmem:[#allocation4 + $0x68] ss:$16 sps:$4 sm:$0xff]  }
 0x47f   :  { %912 = vst [vmem:[#allocation2] sm:$0xc0] %v911_v60  ;;  %v913_v52 = vpack.c.bf16 %v911_v60, %v911_v60  ;;  %v4148_v60 = vld [vmem:[#allocation4 + $0x84] ss:$16 sps:$4 sm:$0xff]  }
 0x481   :  { %v915_v1 = vrot.slane %v913_v52, 3  ;;  %v4151_v52 = vld [vmem:[#allocation4 + $0x8c] ss:$16 sps:$4 sm:$0xff]  }
 0x483   :  { %950 = vmatmul.mubr.bf16.vlgmr.msra.gmra.mrb[20].mxu0 %v915_v1  ;;  %991 = vmatmul.mubr.bf16.vlgmr.msra.gmra.mrb[20].mxu1 %v915_v1  ;;  %v4154_v1 = vld [vmem:[#allocation4 + $0x80] ss:$16 sps:$4 sm:$0xff]  }
 0x484   :  { %1033 = vmatpush1.bf16.msra.mxu0 %v3761_v21  ;;  %1074 = vmatpush1.bf16.msra.mxu1 %v3767_v23  ;;  %v4090_v21 = vld [vmem:[#allocation4 + $0x4] ss:$16 sps:$4 sm:$0xff]  }
 0x485   :  { %1034 = vmatprep.subr.bf16.mxu0 %v3765_v22  ;;  %1075 = vmatprep.subr.bf16.mxu1 %v3770_v24  ;;  %v4093_v22 = vld [vmem:[#allocation4 + $0xc] ss:$16 sps:$4 sm:$0xff]  }
 0x486   :  { %1064 = vmatprep.mubr.bf16.mxu0 %v3634_v4  ;;  %1105 = vmatprep.mubr.bf16.mxu1 %v3634_v4 }
 0x488   :  { %1035 = vmatpush1.bf16.msra.mxu0 %v3773_v25  ;;  %1076 = vmatpush1.bf16.msra.mxu1 %v3780_v27 }
 0x489   :  { %1036 = vmatprep.subr.bf16.mxu0 %v3777_v26  ;;  %1077 = vmatprep.subr.bf16.mxu1 %v3784_v28 }
 0x48c   :  { %1037 = vmatpush1.bf16.msra.mxu0 %v3787_v29  ;;  %1078 = vmatpush1.bf16.msra.mxu1 %v3793_v31 }
 0x48d   :  { %1038 = vmatprep.subr.bf16.mxu0 %v3790_v30  ;;  %1079 = vmatprep.subr.bf16.mxu1 %v3796_v32 }
 0x490   :  { %1039 = vmatpush1.bf16.msra.mxu0 %v3799_v33  ;;  %1080 = vmatpush1.bf16.msra.mxu1 %v3805_v35 }
 0x491   :  { %1040 = vmatprep.subr.bf16.mxu0 %v3802_v34  ;;  %1081 = vmatprep.subr.bf16.mxu1 %v3810_v37 }
 0x494   :  { %1041 = vmatpush1.bf16.msra.mxu0 %v3807_v36  ;;  %1082 = vmatpush1.bf16.msra.mxu1 %v3813_v38 }
 0x495   :  { %1042 = vmatprep.subr.bf16.mxu0 %v3815_v39  ;;  %1083 = vmatprep.subr.bf16.mxu1 %v3818_v40 }
 0x498   :  { %1043 = vmatpush1.bf16.msra.mxu0 %v3821_v41  ;;  %1084 = vmatpush1.bf16.msra.mxu1 %v3827_v43 }
 0x499   :  { %1044 = vmatprep.subr.bf16.mxu0 %v3824_v42  ;;  %1085 = vmatprep.subr.bf16.mxu1 %v3830_v44 }
 0x49c   :  { %1045 = vmatpush1.bf16.msra.mxu0 %v3833_v45  ;;  %1086 = vmatpush1.bf16.msra.mxu1 %v3839_v47  ;;  %v1023_v45 = vrot.slane %v4055_v12, 6  ;;  %v4139_v12 = vld [vmem:[#allocation4 + $0x6c] ss:$16 sps:$4 sm:$0xff]  }
 0x49d   :  { %1046 = vmatprep.subr.bf16.mxu0 %v3836_v46  ;;  %1087 = vmatprep.subr.bf16.mxu1 %v3842_v48 }
 0x4a0   :  { %1047 = vmatpush1.bf16.msra.mxu0 %v3845_v49  ;;  %1088 = vmatpush1.bf16.msra.mxu1 %v3849_v50 }
 0x4a1   :  { %1162 = vmatprep.subr.bf16.mxu0 %v4090_v21  ;;  %1203 = vmatprep.subr.bf16.mxu1 %v4093_v22 }
 0x556   :  { %v951_v23 = vpop.f32.mrb[20].mxu0  ;;  %v992_v24 = vpop.f32.mrb[20].mxu1 }
 0x557   :  { %v999_v25 = vadd.f32 %v951_v23, %v3909_v0  ;;  %v953_v26 = vpop.f32.mrb[21].mxu0  ;;  %v994_v27 = vpop.f32.mrb[21].mxu1  ;;  %v1001_v35 = vadd.f32 %v992_v24, %v3913_v7  ;;  %v4157_v23 = vld [vmem:[#allocation4 + $0x88] ss:$16 sps:$4 sm:$0xff]   ;;  %v4160_v24 = vld [vmem:[#allocation4 + $0xa4] ss:$16 sps:$4 sm:$0xff]  }
 0x558   :  { %v1000_v28 = vadd.f32 %v953_v26, %v3911_v3  ;;  %v955_v29 = vpop.f32.mrb[22].mxu0  ;;  %v996_v30 = vpop.f32.mrb[22].mxu1  ;;  %v1002_v36 = vadd.f32 %v994_v27, %v3915_v9  ;;  %v4166_v26 = vld [vmem:[#allocation4 + $0xa0] ss:$16 sps:$4 sm:$0xff]   ;;  %v4169_v27 = vld [vmem:[#allocation4 + $0xa8] ss:$16 sps:$4 sm:$0xff]  }
 0x559   :  { %v2984_v31 = vmul.f32 -1.442695, %v999_v25  ;;  %v956_v32 = vpop.f32.mrb[23].mxu0  ;;  %v997_v33 = vpop.f32.mrb[23].mxu1  ;;  %v2986_v37 = vmul.f32 -1.442695, %v1001_v35 }
 0x55a   :  { %v2985_v34 = vmul.f32 -1.442695, %v1000_v28  ;;  %v4163_v25 = vld [vmem:[#allocation4 + $0xac] ss:$16 sps:$4 sm:$0xff]   ;;  %v4172_v28 = vld [vmem:[#allocation4 + $0xc4] ss:$16 sps:$4 sm:$0xff]  }
 0x55b   :  { %3302 = vpow2.f32 %v2984_v31  ;;  %v4175_v29 = vld [vmem:[#allocation4 + $0xcc] ss:$16 sps:$4 sm:$0xff]   ;;  %v4178_v30 = vld [vmem:[#allocation4 + $0xc0] ss:$16 sps:$4 sm:$0xff]   ;;  %v4182_v31 = vld [vmem:[#allocation4 + $0xe4] ss:$16 sps:$4 sm:$0xff]  }
 0x55c   :  { %3304 = vpow2.f32 %v2985_v34 }
 0x55d   :  { %3306 = vtanh.f32 %v1002_v36 }
 0x55e   :  { %3308 = vpow2.f32 %v2986_v37 }
 0x565   :  { %v3303_v38 = vpop.eup %3302 }
 0x566   :  { %v1012_v39 = vadd.f32 1.0, %v3303_v38  ;;  %v3305_v40 = vpop.eup %3304 }
 0x567   :  { %v1013_v41 = vadd.f32 1.0, %v3305_v40  ;;  %v3307_v42 = vpop.eup %3306 }
 0x568   :  { %3310 = vrcp.f32 %v1012_v39  ;;  %v3309_v43 = vpop.eup %3308 }
 0x569   :  { %3312 = vrcp.f32 %v1013_v41  ;;  %v1014_v61 = vadd.f32 1.0, %v3309_v43 }
 0x56b   :  { %3314 = vrcp.f32 %v1014_v61 }
 0x572   :  { %v3311_v44 = vpop.eup %3310 }
 0x573   :  { %v1026_v46 = vmul.f32 %v3311_v44, %v3307_v42  ;;  %v3313_v2 = vpop.eup %3312 }
 0x574   :  { %v1025_v16 = vmul.f32 %v3313_v2, %v1023_v45 }
 0x575   :  { %v3315_v6 = vpop.eup %3314 }
 0x576   :  { %v4101_v20 = vadd.f32 %v1026_v46, %v1025_v16 }
 0x578   :  { %3316 = vtanh.f32 %v4101_v20 }
 0x582   :  { %v3317_v8 = vpop.eup %3316 }
 0x583   :  { %v1029_v56 = vmul.f32 %v3317_v8, %v3315_v6 }
 0x585   :  { %1030 = vst [vmem:[#allocation2 + $0x8] sm:$0x3] %v1029_v56  ;;  %v1031_v63 = vpack.c.bf16 %v1029_v56, %v1029_v56  ;;  %v1150_v56 = vrot.slane %v4101_v20, 6  ;;  %v3522_v20 = vld [vmem:[#allocation4 + $0xc8] ss:$16 sps:$4 sm:$0xff]  }
 0x587   :  { %1065 = vmatmul.mubr.bf16.vlgmr.msra.gmra.mrb[24].mxu0 %v1031_v63  ;;  %1106 = vmatmul.mubr.bf16.vlgmr.msra.gmra.mrb[24].mxu1 %v1031_v63 }
 0x588   :  { %1163 = vmatpush1.bf16.msra.mxu0 %v4104_v18  ;;  %1204 = vmatpush1.bf16.msra.mxu1 %v4107_v59 }
 0x589   :  { %1164 = vmatprep.subr.bf16.mxu0 %v4110_v10  ;;  %1205 = vmatprep.subr.bf16.mxu1 %v4113_v11 }
 0x58a   :  { %1194 = vmatprep.mubr.bf16.mxu0 %v3634_v4  ;;  %1235 = vmatprep.mubr.bf16.mxu1 %v3634_v4 }
 0x58c   :  { %1165 = vmatpush1.bf16.msra.mxu0 %v4118_v19  ;;  %1206 = vmatpush1.bf16.msra.mxu1 %v4121_v17 }
 0x58d   :  { %1166 = vmatprep.subr.bf16.mxu0 %v4124_v15  ;;  %1207 = vmatprep.subr.bf16.mxu1 %v4127_v58 }
 0x590   :  { %1167 = vmatpush1.bf16.msra.mxu0 %v4130_v13  ;;  %1208 = vmatpush1.bf16.msra.mxu1 %v4133_v62 }
 0x591   :  { %1168 = vmatprep.subr.bf16.mxu0 %v4136_v55  ;;  %1209 = vmatprep.subr.bf16.mxu1 %v4139_v12 }
 0x594   :  { %1169 = vmatpush1.bf16.msra.mxu0 %v4142_v57  ;;  %1210 = vmatpush1.bf16.msra.mxu1 %v4145_v14 }
 0x595   :  { %1170 = vmatprep.subr.bf16.mxu0 %v4148_v60  ;;  %1211 = vmatprep.subr.bf16.mxu1 %v4151_v52 }
 0x598   :  { %1171 = vmatpush1.bf16.msra.mxu0 %v4154_v1  ;;  %1212 = vmatpush1.bf16.msra.mxu1 %v4157_v23 }
 0x599   :  { %1172 = vmatprep.subr.bf16.mxu0 %v4160_v24  ;;  %1213 = vmatprep.subr.bf16.mxu1 %v4163_v25 }
 0x59c   :  { %1173 = vmatpush1.bf16.msra.mxu0 %v4166_v26  ;;  %1214 = vmatpush1.bf16.msra.mxu1 %v4169_v27 }
 0x59d   :  { %1174 = vmatprep.subr.bf16.mxu0 %v4172_v28  ;;  %1215 = vmatprep.subr.bf16.mxu1 %v4175_v29 }
 0x5a0   :  { %1175 = vmatpush1.bf16.msra.mxu0 %v4178_v30  ;;  %1216 = vmatpush1.bf16.msra.mxu1 %v3839_v47 }
 0x5a1   :  { %1176 = vmatprep.subr.bf16.mxu0 %v4182_v31  ;;  %1217 = vmatprep.subr.bf16.mxu1 %v3842_v48 }
 0x5a4   :  { %1177 = vmatpush1.bf16.msra.mxu0 %v3845_v49  ;;  %1218 = vmatpush1.bf16.msra.mxu1 %v3849_v50 }
 0x5a5   :  { %1292 = vmatprep.subr.bf16.mxu0 %v4090_v21  ;;  %1333 = vmatprep.subr.bf16.mxu1 %v4093_v22 }
 0x65a   :  { %v1066_v32 = vpop.f32.mrb[24].mxu0  ;;  %v1107_v33 = vpop.f32.mrb[24].mxu1 }
 0x65b   :  { %v1118_v34 = vrot.slane %v1066_v32, 6  ;;  %v1068_v35 = vpop.f32.mrb[25].mxu0  ;;  %v1109_v36 = vpop.f32.mrb[25].mxu1  ;;  %v1120_v21 = vrot.slane %v1107_v33, 6 }
 0x65c   :  { %v1119_v47 = vrot.slane %v1068_v35, 6  ;;  %v1070_v37 = vpop.f32.mrb[26].mxu0  ;;  %v1111_v38 = vpop.f32.mrb[26].mxu1  ;;  %v1121_v22 = vrot.slane %v1109_v36, 6 }
 0x65d   :  { %v1126_v39 = vadd.f32 %v1118_v34, %v3909_v0  ;;  %v1071_v40 = vpop.f32.mrb[27].mxu0  ;;  %v1112_v48 = vpop.f32.mrb[27].mxu1  ;;  %v1128_v42 = vadd.f32 %v1120_v21, %v3913_v7 }
 0x65e   :  { %v1127_v49 = vadd.f32 %v1119_v47, %v3911_v3  ;;  %v1129_v43 = vadd.f32 %v1121_v22, %v3915_v9 }
 0x65f   :  { %v2987_v41 = vmul.f32 -1.442695, %v1126_v39  ;;  %v2989_v44 = vmul.f32 -1.442695, %v1128_v42 }
 0x660   :  { %v2988_v50 = vmul.f32 -1.442695, %v1127_v49 }
 0x661   :  { %3318 = vpow2.f32 %v2987_v41 }
 0x662   :  { %3320 = vpow2.f32 %v2988_v50 }
 0x663   :  { %3322 = vtanh.f32 %v1129_v43 }
 0x664   :  { %3324 = vpow2.f32 %v2989_v44 }
 0x66b   :  { %v3319_v45 = vpop.eup %3318 }
 0x66c   :  { %v1139_v46 = vadd.f32 1.0, %v3319_v45  ;;  %v3321_v2 = vpop.eup %3320 }
 0x66d   :  { %v1140_v61 = vadd.f32 1.0, %v3321_v2  ;;  %v3323_v16 = vpop.eup %3322 }
 0x66e   :  { %3326 = vrcp.f32 %v1139_v46  ;;  %v3325_v6 = vpop.eup %3324 }
 0x66f   :  { %3328 = vrcp.f32 %v1140_v61  ;;  %v1141_v33 = vadd.f32 1.0, %v3325_v6  ;;  %v3147_v6 = vld [vmem:[#allocation6 + $0xc] ss:$16 sps:$4 sm:$0xff]  }
 0x671   :  { %3330 = vrcp.f32 %v1141_v33  ;;  %v3148_v33 = vld [vmem:[#allocation6 + $0x20] ss:$16 sps:$4 sm:$0xff]  }
 0x678   :  { %v3327_v8 = vpop.eup %3326 }
 0x679   :  { %v1153_v63 = vmul.f32 %v3327_v8, %v3323_v16  ;;  %v3329_v32 = vpop.eup %3328  ;;  %v3144_v16 = vld [vmem:[#allocation6 + $0x4] ss:$16 sps:$4 sm:$0xff]   ;;  %v3142_v8 = vld [vmem:[#allocation6] ss:$16 sps:$4 sm:$0xff]  }
 0x67a   :  { %v1152_v34 = vmul.f32 %v3329_v32, %v1150_v56  ;;  %v3145_v56 = vld [vmem:[#allocation6 + $0x8] ss:$16 sps:$4 sm:$0xff]   ;;  %v3153_v32 = vld [vmem:[#allocation6 + $0x2c] ss:$16 sps:$4 sm:$0xff]  }
 0x67b   :  { %v3331_v36 = vpop.eup %3330 }
 0x67c   :  { %v4195_v35 = vadd.f32 %v1153_v63, %v1152_v34  ;;  %v3150_v63 = vld [vmem:[#allocation6 + $0x24] ss:$16 sps:$4 sm:$0xff]   ;;  %v3151_v34 = vld [vmem:[#allocation6 + $0x28] ss:$16 sps:$4 sm:$0xff]  }
 0x67e   :  { %3332 = vtanh.f32 %v4195_v35  ;;  %v1280_v41 = vrot.slane %v4195_v35, 6  ;;  %v3156_v35 = vld [vmem:[#allocation6 + $0x44] ss:$16 sps:$4 sm:$0xff]  }
 0x688   :  { %v3333_v47 = vpop.eup %3332 }
 0x689   :  { %v1156_v37 = vmul.f32 %v3333_v47, %v3331_v36  ;;  %v3159_v36 = vld [vmem:[#allocation6 + $0x4c] ss:$16 sps:$4 sm:$0xff]   ;;  %v3154_v47 = vld [vmem:[#allocation6 + $0x40] ss:$16 sps:$4 sm:$0xff]  }
 0x68b   :  { %1157 = vst [vmem:[#allocation2 + $0x8] sm:$0xc] %v1156_v37  ;;  %v1158_v38 = vpack.c.bf16 %v1156_v37, %v1156_v37  ;;  %v3157_v37 = vld [vmem:[#allocation6 + $0x48] ss:$16 sps:$4 sm:$0xff]  }
 0x68d   :  { %v1160_v39 = vrot.slane %v1158_v38, 1  ;;  %v3162_v38 = vld [vmem:[#allocation6 + $0x64] ss:$16 sps:$4 sm:$0xff]  }
 0x68f   :  { %1195 = vmatmul.mubr.bf16.vlgmr.msra.gmra.mrb[28].mxu0 %v1160_v39  ;;  %1236 = vmatmul.mubr.bf16.vlgmr.msra.gmra.mrb[28].mxu1 %v1160_v39  ;;  %v3165_v39 = vld [vmem:[#allocation6 + $0x6c] ss:$16 sps:$4 sm:$0xff]  }
 0x690   :  { %1293 = vmatpush1.bf16.msra.mxu0 %v4104_v18  ;;  %1334 = vmatpush1.bf16.msra.mxu1 %v4107_v59  ;;  %v3523_v18 = vld [vmem:[#allocation4 + $0xec] ss:$16 sps:$4 sm:$0xff]   ;;  %v3524_v59 = vld [vmem:[#allocation4 + $0xe0] ss:$16 sps:$4 sm:$0xff]  }
 0x691   :  { %1294 = vmatprep.subr.bf16.mxu0 %v4110_v10  ;;  %1335 = vmatprep.subr.bf16.mxu1 %v4113_v11  ;;  %v3525_v10 = vld [vmem:[#allocation4 + $0xe8] ss:$16 sps:$4 sm:$0xff]  }
 0x692   :  { %1324 = vmatprep.mubr.bf16.mxu0 %v3634_v4  ;;  %1365 = vmatprep.mubr.bf16.mxu1 %v3634_v4 }
 0x694   :  { %1295 = vmatpush1.bf16.msra.mxu0 %v4118_v19  ;;  %1336 = vmatpush1.bf16.msra.mxu1 %v4121_v17 }
 0x695   :  { %1296 = vmatprep.subr.bf16.mxu0 %v4124_v15  ;;  %1337 = vmatprep.subr.bf16.mxu1 %v4127_v58 }
 0x698   :  { %1297 = vmatpush1.bf16.msra.mxu0 %v4130_v13  ;;  %1338 = vmatpush1.bf16.msra.mxu1 %v4133_v62 }
 0x699   :  { %1298 = vmatprep.subr.bf16.mxu0 %v4136_v55  ;;  %1339 = vmatprep.subr.bf16.mxu1 %v4139_v12 }
 0x69c   :  { %1299 = vmatpush1.bf16.msra.mxu0 %v4142_v57  ;;  %1340 = vmatpush1.bf16.msra.mxu1 %v4145_v14 }
 0x69d   :  { %1300 = vmatprep.subr.bf16.mxu0 %v4148_v60  ;;  %1341 = vmatprep.subr.bf16.mxu1 %v4151_v52 }
 0x6a0   :  { %1301 = vmatpush1.bf16.msra.mxu0 %v4154_v1  ;;  %1342 = vmatpush1.bf16.msra.mxu1 %v4157_v23 }
 0x6a1   :  { %1302 = vmatprep.subr.bf16.mxu0 %v4160_v24  ;;  %1343 = vmatprep.subr.bf16.mxu1 %v4163_v25 }
 0x6a4   :  { %1303 = vmatpush1.bf16.msra.mxu0 %v4166_v26  ;;  %1344 = vmatpush1.bf16.msra.mxu1 %v4169_v27 }
 0x6a5   :  { %1304 = vmatprep.subr.bf16.mxu0 %v4172_v28  ;;  %1345 = vmatprep.subr.bf16.mxu1 %v4175_v29 }
 0x6a8   :  { %1305 = vmatpush1.bf16.msra.mxu0 %v4178_v30  ;;  %1346 = vmatpush1.bf16.msra.mxu1 %v3522_v20  ;;  %v3160_v20 = vld [vmem:[#allocation6 + $0x60] ss:$16 sps:$4 sm:$0xff]  }
 0x6a9   :  { %1306 = vmatprep.subr.bf16.mxu0 %v4182_v31  ;;  %1347 = vmatprep.subr.bf16.mxu1 %v3523_v18  ;;  %v3163_v18 = vld [vmem:[#allocation6 + $0x68] ss:$16 sps:$4 sm:$0xff]  }
 0x6ac   :  { %1307 = vmatpush1.bf16.msra.mxu0 %v3524_v59  ;;  %1348 = vmatpush1.bf16.msra.mxu1 %v3525_v10  ;;  %v3168_v59 = vld [vmem:[#allocation6 + $0x84] ss:$16 sps:$4 sm:$0xff]   ;;  %v3171_v10 = vld [vmem:[#allocation6 + $0x8c] ss:$16 sps:$4 sm:$0xff]  }
 0x6ad   :  { %1667 = vmatprep.subr.bf16.mxu0 %v3144_v16  ;;  %1710 = vmatprep.subr.bf16.mxu1 %v3147_v6 }
 0x762   :  { %v1196_v11 = vpop.f32.mrb[28].mxu0  ;;  %v1237_v19 = vpop.f32.mrb[28].mxu1 }
 0x763   :  { %v1248_v17 = vrot.slane %v1196_v11, 4  ;;  %v1198_v15 = vpop.f32.mrb[29].mxu0  ;;  %v1239_v58 = vpop.f32.mrb[29].mxu1  ;;  %v1250_v23 = vrot.slane %v1237_v19, 4  ;;  %v3166_v11 = vld [vmem:[#allocation6 + $0x80] ss:$16 sps:$4 sm:$0xff]  }
 0x764   :  { %v1249_v13 = vrot.slane %v1198_v15, 4  ;;  %v1200_v62 = vpop.f32.mrb[30].mxu0  ;;  %v1241_v55 = vpop.f32.mrb[30].mxu1  ;;  %v1251_v24 = vrot.slane %v1239_v58, 4  ;;  %v3169_v19 = vld [vmem:[#allocation6 + $0x88] ss:$16 sps:$4 sm:$0xff]  }
 0x765   :  { %v1256_v12 = vadd.f32 %v1248_v17, %v3909_v0  ;;  %v1201_v57 = vpop.f32.mrb[31].mxu0  ;;  %v1242_v14 = vpop.f32.mrb[31].mxu1  ;;  %v1258_v25 = vadd.f32 %v1250_v23, %v3913_v7  ;;  %v3174_v17 = vld [vmem:[#allocation6 + $0xa4] ss:$16 sps:$4 sm:$0xff]   ;;  %v3177_v15 = vld [vmem:[#allocation6 + $0xac] ss:$16 sps:$4 sm:$0xff]  }
 0x766   :  { %v1257_v60 = vadd.f32 %v1249_v13, %v3911_v3  ;;  %v1259_v26 = vadd.f32 %v1251_v24, %v3915_v9  ;;  %v3172_v58 = vld [vmem:[#allocation6 + $0xa0] ss:$16 sps:$4 sm:$0xff]   ;;  %v3175_v13 = vld [vmem:[#allocation6 + $0xa8] ss:$16 sps:$4 sm:$0xff]   ;;  %v3180_v62 = vld [vmem:[#allocation6 + $0xc4] ss:$16 sps:$4 sm:$0xff]  }
 0x767   :  { %v2990_v52 = vmul.f32 -1.442695, %v1256_v12  ;;  %v2992_v27 = vmul.f32 -1.442695, %v1258_v25  ;;  %v3183_v55 = vld [vmem:[#allocation6 + $0xcc] ss:$16 sps:$4 sm:$0xff]  }
 0x768   :  { %v2991_v1 = vmul.f32 -1.442695, %v1257_v60  ;;  %v3178_v12 = vld [vmem:[#allocation6 + $0xc0] ss:$16 sps:$4 sm:$0xff]   ;;  %v3181_v57 = vld [vmem:[#allocation6 + $0xc8] ss:$16 sps:$4 sm:$0xff]  }
 0x769   :  { %3334 = vpow2.f32 %v2990_v52  ;;  %v3186_v14 = vld [vmem:[#allocation6 + $0xe4] ss:$16 sps:$4 sm:$0xff]   ;;  %v3189_v60 = vld [vmem:[#allocation6 + $0xec] ss:$16 sps:$4 sm:$0xff]   ;;  %v3184_v52 = vld [vmem:[#allocation6 + $0xe0] ss:$16 sps:$4 sm:$0xff]  }
 0x76a   :  { %3336 = vpow2.f32 %v2991_v1  ;;  %v3187_v1 = vld [vmem:[#allocation6 + $0xe8] ss:$16 sps:$4 sm:$0xff]   ;;  %v4236_v23 = vld [vmem:[#allocation8 + $0x4] ss:$16 sps:$4 sm:$0xff]   ;;  %v4238_v24 = vld [vmem:[#allocation8 + $0xc] ss:$16 sps:$4 sm:$0xff]  }
 0x76b   :  { %3338 = vtanh.f32 %v1259_v26 }
 0x76c   :  { %3340 = vpow2.f32 %v2992_v27 }
 0x773   :  { %v3335_v28 = vpop.eup %3334 }
 0x774   :  { %v1269_v29 = vadd.f32 1.0, %v3335_v28  ;;  %v3337_v30 = vpop.eup %3336 }
 0x775   :  { %v1270_v31 = vadd.f32 1.0, %v3337_v30  ;;  %v3339_v40 = vpop.eup %3338 }
 0x776   :  { %3342 = vrcp.f32 %v1269_v29  ;;  %v3341_v48 = vpop.eup %3340 }
 0x777   :  { %3344 = vrcp.f32 %v1270_v31  ;;  %v1271_v22 = vadd.f32 1.0, %v3341_v48 }
 0x779   :  { %3346 = vrcp.f32 %v1271_v22 }
 0x780   :  { %v3343_v49 = vpop.eup %3342 }
 0x781   :  { %v1283_v50 = vmul.f32 %v3343_v49, %v3339_v40  ;;  %v3345_v21 = vpop.eup %3344 }
 0x782   :  { %v1282_v42 = vmul.f32 %v3345_v21, %v1280_v41 }
 0x783   :  { %v3347_v44 = vpop.eup %3346 }
 0x784   :  { %v4231_v43 = vadd.f32 %v1283_v50, %v1282_v42 }
 0x786   :  { %3348 = vtanh.f32 %v4231_v43 }
 0x790   :  { %v3349_v45 = vpop.eup %3348 }
 0x791   :  { %v1286_v46 = vmul.f32 %v3349_v45, %v3347_v44 }
 0x793   :  { %1287 = vst [vmem:[#allocation2 + $0x8] sm:$0x30] %v1286_v46  ;;  %v1288_v2 = vpack.c.bf16 %v1286_v46, %v1286_v46 }
 0x795   :  { %v1290_v61 = vrot.slane %v1288_v2, 2 }
 0x797   :  { %1325 = vmatmul.mubr.bf16.vlgmr.msra.gmra.mrb[32].mxu0 %v1290_v61  ;;  %1366 = vmatmul.mubr.bf16.vlgmr.msra.gmra.mrb[32].mxu1 %v1290_v61 }
 0x798   :  { %1699 = vmatprep.mubr.bf16.mxu0 %v3634_v4  ;;  %1742 = vmatprep.mubr.bf16.mxu1 %v3634_v4 }
 0x799   :  { %1668 = vmatpush1.bf16.msra.mxu0 %v3142_v8  ;;  %1711 = vmatpush1.bf16.msra.mxu1 %v3145_v56 }
 0x79a   :  { %1669 = vmatprep.subr.bf16.mxu0 %v3150_v63  ;;  %1712 = vmatprep.subr.bf16.mxu1 %v3153_v32  ;;  %v1410_v63 = vrot.slane %v4231_v43, 6  ;;  %v4253_v43 = vld [vmem:[#allocation8 + $0x2c] ss:$16 sps:$4 sm:$0xff]  }
 0x79d   :  { %1670 = vmatpush1.bf16.msra.mxu0 %v3148_v33  ;;  %1713 = vmatpush1.bf16.msra.mxu1 %v3151_v34 }
 0x79e   :  { %1671 = vmatprep.subr.bf16.mxu0 %v3156_v35  ;;  %1714 = vmatprep.subr.bf16.mxu1 %v3159_v36 }
 0x7a1   :  { %1672 = vmatpush1.bf16.msra.mxu0 %v3154_v47  ;;  %1715 = vmatpush1.bf16.msra.mxu1 %v3157_v37  ;;  %v1450_v37 = vld [vmem:[#allocation2] sm:$0xff] }
 0x7a2   :  { %1673 = vmatprep.subr.bf16.mxu0 %v3162_v38  ;;  %1716 = vmatprep.subr.bf16.mxu1 %v3165_v39  ;;  %v4247_v39 = vld [vmem:[#allocation8] ss:$16 sps:$4 sm:$0xff]  }
 0x7a5   :  { %1674 = vmatpush1.bf16.msra.mxu0 %v3160_v20  ;;  %1717 = vmatpush1.bf16.msra.mxu1 %v3163_v18  ;;  %v4249_v20 = vld [vmem:[#allocation8 + $0x8] ss:$16 sps:$4 sm:$0xff]  }
 0x7a6   :  { %1675 = vmatprep.subr.bf16.mxu0 %v3168_v59  ;;  %1718 = vmatprep.subr.bf16.mxu1 %v3171_v10  ;;  %v4251_v59 = vld [vmem:[#allocation8 + $0x24] ss:$16 sps:$4 sm:$0xff]   ;;  %v4257_v10 = vld [vmem:[#allocation8 + $0x20] ss:$16 sps:$4 sm:$0xff]  }
 0x7a9   :  { %1676 = vmatpush1.bf16.msra.mxu0 %v3166_v11  ;;  %1719 = vmatpush1.bf16.msra.mxu1 %v3169_v19  ;;  %v4259_v11 = vld [vmem:[#allocation8 + $0x28] ss:$16 sps:$4 sm:$0xff]   ;;  %v4263_v19 = vld [vmem:[#allocation8 + $0x44] ss:$16 sps:$4 sm:$0xff]  }
 0x7aa   :  { %1677 = vmatprep.subr.bf16.mxu0 %v3174_v17  ;;  %1720 = vmatprep.subr.bf16.mxu1 %v3177_v15  ;;  %v4265_v17 = vld [vmem:[#allocation8 + $0x4c] ss:$16 sps:$4 sm:$0xff]   ;;  %v4271_v15 = vld [vmem:[#allocation8 + $0x40] ss:$16 sps:$4 sm:$0xff]  }
 0x7ad   :  { %1678 = vmatpush1.bf16.msra.mxu0 %v3172_v58  ;;  %1721 = vmatpush1.bf16.msra.mxu1 %v3175_v13  ;;  %v4273_v58 = vld [vmem:[#allocation8 + $0x48] ss:$16 sps:$4 sm:$0xff]   ;;  %v4277_v13 = vld [vmem:[#allocation8 + $0x64] ss:$16 sps:$4 sm:$0xff]  }
 0x7ae   :  { %1679 = vmatprep.subr.bf16.mxu0 %v3180_v62  ;;  %1722 = vmatprep.subr.bf16.mxu1 %v3183_v55  ;;  %v4279_v62 = vld [vmem:[#allocation8 + $0x6c] ss:$16 sps:$4 sm:$0xff]   ;;  %v4283_v55 = vld [vmem:[#allocation8 + $0x60] ss:$16 sps:$4 sm:$0xff]  }
 0x7b1   :  { %1680 = vmatpush1.bf16.msra.mxu0 %v3178_v12  ;;  %1723 = vmatpush1.bf16.msra.mxu1 %v3181_v57  ;;  %v4285_v12 = vld [vmem:[#allocation8 + $0x68] ss:$16 sps:$4 sm:$0xff]   ;;  %v4289_v57 = vld [vmem:[#allocation8 + $0x84] ss:$16 sps:$4 sm:$0xff]  }
 0x7b2   :  { %1681 = vmatprep.subr.bf16.mxu0 %v3186_v14  ;;  %1724 = vmatprep.subr.bf16.mxu1 %v3189_v60  ;;  %v4291_v14 = vld [vmem:[#allocation8 + $0x8c] ss:$16 sps:$4 sm:$0xff]   ;;  %v4295_v60 = vld [vmem:[#allocation8 + $0x80] ss:$16 sps:$4 sm:$0xff]  }
 0x7b5   :  { %1682 = vmatpush1.bf16.msra.mxu0 %v3184_v52  ;;  %1725 = vmatpush1.bf16.msra.mxu1 %v3187_v1  ;;  %v4297_v52 = vld [vmem:[#allocation8 + $0x88] ss:$16 sps:$4 sm:$0xff]   ;;  %v4301_v1 = vld [vmem:[#allocation8 + $0xa4] ss:$16 sps:$4 sm:$0xff]  }
 0x7b6   :  { %1913 = vmatprep.subr.bf16.mxu0 %v4236_v23  ;;  %1954 = vmatprep.subr.bf16.mxu1 %v4238_v24 }
 0x86a   :  { %v1326_v25 = vpop.f32.mrb[32].mxu0  ;;  %v1367_v26 = vpop.f32.mrb[32].mxu1 }
 0x86b   :  { %v1378_v27 = vrot.slane %v1326_v25, 2  ;;  %v1328_v28 = vpop.f32.mrb[33].mxu0  ;;  %v1369_v29 = vpop.f32.mrb[33].mxu1  ;;  %v1380_v42 = vrot.slane %v1367_v26, 2  ;;  %v4303_v25 = vld [vmem:[#allocation8 + $0xac] ss:$16 sps:$4 sm:$0xff]  }
 0x86c   :  { %v1379_v30 = vrot.slane %v1328_v28, 2  ;;  %v1330_v31 = vpop.f32.mrb[34].mxu0  ;;  %v1371_v40 = vpop.f32.mrb[34].mxu1  ;;  %v1381_v44 = vrot.slane %v1369_v29, 2  ;;  %v4307_v26 = vld [vmem:[#allocation8 + $0xa0] ss:$16 sps:$4 sm:$0xff]  }
 0x86d   :  { %v1386_v48 = vadd.f32 %v1378_v27, %v3909_v0  ;;  %v1331_v49 = vpop.f32.mrb[35].mxu0  ;;  %v1372_v41 = vpop.f32.mrb[35].mxu1  ;;  %v1388_v45 = vadd.f32 %v1380_v42, %v3913_v7  ;;  %v4309_v27 = vld [vmem:[#allocation8 + $0xa8] ss:$16 sps:$4 sm:$0xff]   ;;  %v4313_v28 = vld [vmem:[#allocation8 + $0xc4] ss:$16 sps:$4 sm:$0xff]  }
 0x86e   :  { %v1387_v50 = vadd.f32 %v1379_v30, %v3911_v3  ;;  %v1389_v46 = vadd.f32 %v1381_v44, %v3915_v9  ;;  %v4315_v29 = vld [vmem:[#allocation8 + $0xcc] ss:$16 sps:$4 sm:$0xff]   ;;  %v4319_v30 = vld [vmem:[#allocation8 + $0xc0] ss:$16 sps:$4 sm:$0xff]   ;;  %v4321_v31 = vld [vmem:[#allocation8 + $0xc8] ss:$16 sps:$4 sm:$0xff]  }
 0x86f   :  { %v2993_v21 = vmul.f32 -1.442695, %v1386_v48  ;;  %v2995_v2 = vmul.f32 -1.442695, %v1388_v45  ;;  %v4325_v40 = vld [vmem:[#allocation8 + $0xe4] ss:$16 sps:$4 sm:$0xff]  }
 0x870   :  { %v2994_v22 = vmul.f32 -1.442695, %v1387_v50  ;;  %v4327_v48 = vld [vmem:[#allocation8 + $0xec] ss:$16 sps:$4 sm:$0xff]   ;;  %v4331_v49 = vld [vmem:[#allocation8 + $0xe0] ss:$16 sps:$4 sm:$0xff]  }
 0x871   :  { %3350 = vpow2.f32 %v2993_v21  ;;  %v4333_v41 = vld [vmem:[#allocation8 + $0xe8] ss:$16 sps:$4 sm:$0xff]   ;;  %v1485_v50 = vld [vmem:[%s4642_s6] sm:$0xf] }
 0x872   :  { %3352 = vpow2.f32 %v2994_v22  ;;  %v1490_v42 = vrot.slane %v1485_v50, %v116_v51  ;;  %v1498_v44 = vrot.slane %v1485_v50, %v124_v53 }
 0x873   :  { %3354 = vtanh.f32 %v1389_v46 }
 0x874   :  { %3356 = vpow2.f32 %v2995_v2  ;;  %v1494_v2 = vrot.slane %v1485_v50, %v120_v54 }
 0x87b   :  { %v3351_v61 = vpop.eup %3350 }
 0x87c   :  { %v1399_v16 = vadd.f32 1.0, %v3351_v61  ;;  %v3353_v6 = vpop.eup %3352  ;;  %v4647_v61 = vsub.s32 3, %v3742_v5 }
 0x87d   :  { %v1400_v0 = vadd.f32 1.0, %v3353_v6  ;;  %v3355_v3 = vpop.eup %3354 }
 0x87e   :  { %3358 = vrcp.f32 %v1399_v16  ;;  %v3357_v8 = vpop.eup %3356  ;;  %v1502_v16 = vrot.slane %v1485_v50, %v4647_v61 }
 0x87f   :  { %3360 = vrcp.f32 %v1400_v0  ;;  %v1401_v34 = vadd.f32 1.0, %v3357_v8 }
 0x881   :  { %3362 = vrcp.f32 %v1401_v34 }
 0x888   :  { %v3359_v56 = vpop.eup %3358 }
 0x889   :  { %v1413_v32 = vmul.f32 %v3359_v56, %v3355_v3  ;;  %v3361_v33 = vpop.eup %3360 }
 0x88a   :  { %v1412_v7 = vmul.f32 %v3361_v33, %v1410_v63 }
 0x88b   :  { %v3363_v9 = vpop.eup %3362 }
 0x88c   :  { %v1414_v35 = vadd.f32 %v1413_v32, %v1412_v7 }
 0x88e   :  { %3364 = vtanh.f32 %v1414_v35 }
 0x898   :  { %v3365_v36 = vpop.eup %3364 }
 0x899   :  { %v1416_v47 = vmul.f32 %v3365_v36, %v3363_v9 }
 0x89b   :  { %1417 = vst [vmem:[#allocation2 + $0x8] sm:$0xc0] %v1416_v47 }
 0x8a2   :  { %v1451_v38 = vld [vmem:[#allocation2 + $0x8] sm:$0xff] }
 0x8a3   :  { %v1452_v18 = vpack.c.bf16 %v1451_v38, %v1450_v37 }
 0x8a5   :  { %1700 = vmatmul.mubr.bf16.vlgmr.msra.gmra.mrb[36].mxu0 %v1452_v18  ;;  %1743 = vmatmul.mubr.bf16.vlgmr.msra.gmra.mrb[36].mxu1 %v1452_v18 }
 0x8a6   :  { %1914 = vmatpush1.bf16.msra.mxu0 %v4247_v39  ;;  %1955 = vmatpush1.bf16.msra.mxu1 %v4249_v20 }
 0x8a7   :  { %1915 = vmatprep.subr.bf16.mxu0 %v4251_v59  ;;  %1956 = vmatprep.subr.bf16.mxu1 %v4253_v43 }
 0x8a8   :  { %1945 = vmatprep.mubr.bf16.mxu0 %v3634_v4  ;;  %1986 = vmatprep.mubr.bf16.mxu1 %v3634_v4 }
 0x8aa   :  { %1916 = vmatpush1.bf16.msra.mxu0 %v4257_v10  ;;  %1957 = vmatpush1.bf16.msra.mxu1 %v4259_v11 }
 0x8ab   :  { %1917 = vmatprep.subr.bf16.mxu0 %v4263_v19  ;;  %1958 = vmatprep.subr.bf16.mxu1 %v4265_v17 }
 0x8ae   :  { %1918 = vmatpush1.bf16.msra.mxu0 %v4271_v15  ;;  %1959 = vmatpush1.bf16.msra.mxu1 %v4273_v58 }
 0x8af   :  { %1919 = vmatprep.subr.bf16.mxu0 %v4277_v13  ;;  %1960 = vmatprep.subr.bf16.mxu1 %v4279_v62 }
 0x8b2   :  { %1920 = vmatpush1.bf16.msra.mxu0 %v4283_v55  ;;  %1961 = vmatpush1.bf16.msra.mxu1 %v4285_v12 }
 0x8b3   :  { %1921 = vmatprep.subr.bf16.mxu0 %v4289_v57  ;;  %1962 = vmatprep.subr.bf16.mxu1 %v4291_v14 }
 0x8b6   :  { %1922 = vmatpush1.bf16.msra.mxu0 %v4295_v60  ;;  %1963 = vmatpush1.bf16.msra.mxu1 %v4297_v52 }
 0x8b7   :  { %1923 = vmatprep.subr.bf16.mxu0 %v4301_v1  ;;  %1964 = vmatprep.subr.bf16.mxu1 %v4303_v25 }
 0x8ba   :  { %1924 = vmatpush1.bf16.msra.mxu0 %v4307_v26  ;;  %1965 = vmatpush1.bf16.msra.mxu1 %v4309_v27 }
 0x8bb   :  { %1925 = vmatprep.subr.bf16.mxu0 %v4313_v28  ;;  %1966 = vmatprep.subr.bf16.mxu1 %v4315_v29 }
 0x8be   :  { %1926 = vmatpush1.bf16.msra.mxu0 %v4319_v30  ;;  %1967 = vmatpush1.bf16.msra.mxu1 %v4321_v31 }
 0x8bf   :  { %1927 = vmatprep.subr.bf16.mxu0 %v4325_v40  ;;  %1968 = vmatprep.subr.bf16.mxu1 %v4327_v48 }
 0x8c2   :  { %1928 = vmatpush1.bf16.msra.mxu0 %v4331_v49  ;;  %1969 = vmatpush1.bf16.msra.mxu1 %v4333_v41 }
 0x8c3   :  { %2024 = vmatprep.subr.bf16.mxu0 %v4236_v23  ;;  %2065 = vmatprep.subr.bf16.mxu1 %v4238_v24 }
 0x8c5   :  { %1946 = vmatmul.mubr.bf16.vlgmr.msra.gmra.mrb[40].mxu0 %v3634_v4  ;;  %1987 = vmatmul.mubr.bf16.vlgmr.msra.gmra.mrb[40].mxu1 %v3634_v4 }
 0x8c6   :  { %2025 = vmatpush1.bf16.msra.mxu0 %v4247_v39  ;;  %2066 = vmatpush1.bf16.msra.mxu1 %v4249_v20 }
 0x8c7   :  { %2026 = vmatprep.subr.bf16.mxu0 %v4251_v59  ;;  %2067 = vmatprep.subr.bf16.mxu1 %v4253_v43 }
 0x8c8   :  { %2056 = vmatprep.mubr.bf16.mxu0 %v3634_v4  ;;  %2097 = vmatprep.mubr.bf16.mxu1 %v3634_v4 }
 0x8ca   :  { %2027 = vmatpush1.bf16.msra.mxu0 %v4257_v10  ;;  %2068 = vmatpush1.bf16.msra.mxu1 %v4259_v11 }
 0x8cb   :  { %2028 = vmatprep.subr.bf16.mxu0 %v4263_v19  ;;  %2069 = vmatprep.subr.bf16.mxu1 %v4265_v17 }
 0x8ce   :  { %2029 = vmatpush1.bf16.msra.mxu0 %v4271_v15  ;;  %2070 = vmatpush1.bf16.msra.mxu1 %v4273_v58 }
 0x8cf   :  { %2030 = vmatprep.subr.bf16.mxu0 %v4277_v13  ;;  %2071 = vmatprep.subr.bf16.mxu1 %v4279_v62 }
 0x8d2   :  { %2031 = vmatpush1.bf16.msra.mxu0 %v4283_v55  ;;  %2072 = vmatpush1.bf16.msra.mxu1 %v4285_v12 }
 0x8d3   :  { %2032 = vmatprep.subr.bf16.mxu0 %v4289_v57  ;;  %2073 = vmatprep.subr.bf16.mxu1 %v4291_v14 }
 0x8d6   :  { %2033 = vmatpush1.bf16.msra.mxu0 %v4295_v60  ;;  %2074 = vmatpush1.bf16.msra.mxu1 %v4297_v52 }
 0x8d7   :  { %2034 = vmatprep.subr.bf16.mxu0 %v4301_v1  ;;  %2075 = vmatprep.subr.bf16.mxu1 %v4303_v25 }
 0x8da   :  { %2035 = vmatpush1.bf16.msra.mxu0 %v4307_v26  ;;  %2076 = vmatpush1.bf16.msra.mxu1 %v4309_v27 }
 0x8db   :  { %2036 = vmatprep.subr.bf16.mxu0 %v4313_v28  ;;  %2077 = vmatprep.subr.bf16.mxu1 %v4315_v29 }
 0x8de   :  { %2037 = vmatpush1.bf16.msra.mxu0 %v4319_v30  ;;  %2078 = vmatpush1.bf16.msra.mxu1 %v4321_v31 }
 0x8df   :  { %2038 = vmatprep.subr.bf16.mxu0 %v4325_v40  ;;  %2079 = vmatprep.subr.bf16.mxu1 %v4327_v48 }
 0x8e2   :  { %2039 = vmatpush1.bf16.msra.mxu0 %v4331_v49  ;;  %2080 = vmatpush1.bf16.msra.mxu1 %v4333_v41 }
 0x8e3   :  { %2153 = vmatprep.subr.bf16.mxu0 %v4236_v23  ;;  %2194 = vmatprep.subr.bf16.mxu1 %v4238_v24 }
 0x978   :  { %v1701_v21 = vpop.f32.mrb[36].mxu0  ;;  %v1744_v22 = vpop.f32.mrb[36].mxu1 }
 0x979   :  { %v1703_v45 = vpop.f32.mrb[37].mxu0  ;;  %v1746_v46 = vpop.f32.mrb[37].mxu1  ;;  %v4396_v53 = vadd.f32 %v1701_v21, %v1490_v42  ;;  %v4402_v61 = vadd.f32 %v1744_v22, %v1498_v44 }
 0x97a   :  { %v1705_v6 = vpop.f32.mrb[38].mxu0  ;;  %v1748_v0 = vpop.f32.mrb[38].mxu1  ;;  %v4398_v33 = vadd.f32 %v1703_v45, %v1494_v2 }
 0x97b   :  { %v4388_v3 = vadd.f32 %v1705_v6, %v1490_v42  ;;  %v4390_v8 = vadd.f32 %v1748_v0, %v1498_v44  ;;  %v1707_v56 = vpop.f32.mrb[39].mxu0  ;;  %v1750_v63 = vpop.f32.mrb[39].mxu1  ;;  %v4405_v42 = vadd.f32 %v1746_v46, %v1502_v16 }
 0x97c   :  { %v4392_v51 = vadd.f32 %v1707_v56, %v1494_v2  ;;  %v4394_v32 = vadd.f32 %v1750_v63, %v1502_v16 }
 0x998   :  { %v1947_v54 = vpop.f32.mrb[40].mxu0  ;;  %v1988_v34 = vpop.f32.mrb[40].mxu1 }
 0x999   :  { %v1995_v5 = vadd.f32 %v1947_v54, %v4396_v53  ;;  %v1949_v7 = vpop.f32.mrb[41].mxu0  ;;  %v1990_v35 = vpop.f32.mrb[41].mxu1  ;;  %v1997_v21 = vadd.f32 %v1988_v34, %v4402_v61 }
 0x99a   :  { %v1996_v9 = vadd.f32 %v1949_v7, %v4398_v33  ;;  %v1951_v36 = vpop.f32.mrb[42].mxu0  ;;  %v1992_v47 = vpop.f32.mrb[42].mxu1  ;;  %v1998_v45 = vadd.f32 %v1990_v35, %v4405_v42 }
 0x99b   :  { %v3060_v37 = vmul.f32 -1.442695, %v1995_v5  ;;  %v1952_v38 = vpop.f32.mrb[43].mxu0  ;;  %v1993_v18 = vpop.f32.mrb[43].mxu1  ;;  %v3062_v2 = vmul.f32 -1.442695, %v1997_v21 }
 0x99c   :  { %v3061_v50 = vmul.f32 -1.442695, %v1996_v9 }
 0x99d   :  { %3366 = vpow2.f32 %v3060_v37 }
 0x99e   :  { %3368 = vpow2.f32 %v3061_v50 }
 0x99f   :  { %3370 = vtanh.f32 %v1998_v45 }
 0x9a0   :  { %3372 = vpow2.f32 %v3062_v2 }
 0x9a7   :  { %v3367_v6 = vpop.eup %3366 }
 0x9a8   :  { %v2008_v0 = vadd.f32 1.0, %v3367_v6  ;;  %v3369_v56 = vpop.eup %3368 }
 0x9a9   :  { %v2009_v63 = vadd.f32 1.0, %v3369_v56  ;;  %v3371_v54 = vpop.eup %3370 }
 0x9aa   :  { %3374 = vrcp.f32 %v2008_v0  ;;  %v3373_v5 = vpop.eup %3372 }
 0x9ab   :  { %3376 = vrcp.f32 %v2009_v63  ;;  %v2010_v9 = vadd.f32 1.0, %v3373_v5 }
 0x9ad   :  { %3378 = vrcp.f32 %v2010_v9 }
 0x9b4   :  { %v3375_v22 = vpop.eup %3374 }
 0x9b5   :  { %v2019_v44 = vmul.f32 %v3375_v22, %v3371_v54  ;;  %v3377_v7 = vpop.eup %3376 }
 0x9b6   :  { %v2018_v34 = vmul.f32 0.0, %v3377_v7 }
 0x9b7   :  { %v3379_v16 = vpop.eup %3378 }
 0x9b8   :  { %v4408_v46 = vadd.f32 %v2019_v44, %v2018_v34 }
 0x9ba   :  { %3380 = vtanh.f32 %v4408_v46 }
 0x9c4   :  { %v3381_v35 = vpop.eup %3380 }
 0x9c5   :  { %v2022_v36 = vmul.f32 %v3381_v35, %v3379_v16 }
 0x9c7   :  { %v2023_v47 = vpack.c.bf16 %v2022_v36, %v2022_v36 }
 0x9c9   :  { %2057 = vmatmul.mubr.bf16.vlgmr.msra.gmra.mrb[44].mxu0 %v2023_v47  ;;  %2098 = vmatmul.mubr.bf16.vlgmr.msra.gmra.mrb[44].mxu1 %v2023_v47 }
 0x9ca   :  { %2154 = vmatpush1.bf16.msra.mxu0 %v4247_v39  ;;  %2195 = vmatpush1.bf16.msra.mxu1 %v4249_v20 }
 0x9cb   :  { %2155 = vmatprep.subr.bf16.mxu0 %v4251_v59  ;;  %2196 = vmatprep.subr.bf16.mxu1 %v4253_v43 }
 0x9cc   :  { %2185 = vmatprep.mubr.bf16.mxu0 %v3634_v4  ;;  %2226 = vmatprep.mubr.bf16.mxu1 %v3634_v4 }
 0x9ce   :  { %2156 = vmatpush1.bf16.msra.mxu0 %v4257_v10  ;;  %2197 = vmatpush1.bf16.msra.mxu1 %v4259_v11 }
 0x9cf   :  { %2157 = vmatprep.subr.bf16.mxu0 %v4263_v19  ;;  %2198 = vmatprep.subr.bf16.mxu1 %v4265_v17 }
 0x9d2   :  { %2158 = vmatpush1.bf16.msra.mxu0 %v4271_v15  ;;  %2199 = vmatpush1.bf16.msra.mxu1 %v4273_v58 }
 0x9d3   :  { %2159 = vmatprep.subr.bf16.mxu0 %v4277_v13  ;;  %2200 = vmatprep.subr.bf16.mxu1 %v4279_v62 }
 0x9d6   :  { %2160 = vmatpush1.bf16.msra.mxu0 %v4283_v55  ;;  %2201 = vmatpush1.bf16.msra.mxu1 %v4285_v12 }
 0x9d7   :  { %2161 = vmatprep.subr.bf16.mxu0 %v4289_v57  ;;  %2202 = vmatprep.subr.bf16.mxu1 %v4291_v14 }
 0x9da   :  { %2162 = vmatpush1.bf16.msra.mxu0 %v4295_v60  ;;  %2203 = vmatpush1.bf16.msra.mxu1 %v4297_v52 }
 0x9db   :  { %2163 = vmatprep.subr.bf16.mxu0 %v4301_v1  ;;  %2204 = vmatprep.subr.bf16.mxu1 %v4303_v25 }
 0x9de   :  { %2164 = vmatpush1.bf16.msra.mxu0 %v4307_v26  ;;  %2205 = vmatpush1.bf16.msra.mxu1 %v4309_v27 }
 0x9df   :  { %2165 = vmatprep.subr.bf16.mxu0 %v4313_v28  ;;  %2206 = vmatprep.subr.bf16.mxu1 %v4315_v29 }
 0x9e2   :  { %2166 = vmatpush1.bf16.msra.mxu0 %v4319_v30  ;;  %2207 = vmatpush1.bf16.msra.mxu1 %v4321_v31 }
 0x9e3   :  { %2167 = vmatprep.subr.bf16.mxu0 %v4325_v40  ;;  %2208 = vmatprep.subr.bf16.mxu1 %v4327_v48 }
 0x9e6   :  { %2168 = vmatpush1.bf16.msra.mxu0 %v4331_v49  ;;  %2209 = vmatpush1.bf16.msra.mxu1 %v4333_v41 }
 0x9e7   :  { %2282 = vmatprep.subr.bf16.mxu0 %v4236_v23  ;;  %2323 = vmatprep.subr.bf16.mxu1 %v4238_v24 }
 0xa9c   :  { %v2058_v37 = vpop.f32.mrb[44].mxu0  ;;  %v2099_v38 = vpop.f32.mrb[44].mxu1 }
 0xa9d   :  { %v2110_v18 = vrot.slane %v2058_v37, 6  ;;  %v2060_v50 = vpop.f32.mrb[45].mxu0  ;;  %v2101_v21 = vpop.f32.mrb[45].mxu1  ;;  %v2112_v44 = vrot.slane %v2099_v38, 6  ;;  %v2142_v38 = vrot.slane %v4408_v46, 6 }
 0xa9e   :  { %v2111_v45 = vrot.slane %v2060_v50, 6  ;;  %v2062_v2 = vpop.f32.mrb[46].mxu0  ;;  %v2103_v6 = vpop.f32.mrb[46].mxu1  ;;  %v2113_v7 = vrot.slane %v2101_v21, 6 }
 0xa9f   :  { %v2118_v0 = vadd.f32 %v2110_v18, %v4396_v53  ;;  %v2063_v56 = vpop.f32.mrb[47].mxu0  ;;  %v2104_v63 = vpop.f32.mrb[47].mxu1  ;;  %v2120_v9 = vadd.f32 %v2112_v44, %v4402_v61 }
 0xaa0   :  { %v2119_v54 = vadd.f32 %v2111_v45, %v4398_v33  ;;  %v2121_v34 = vadd.f32 %v2113_v7, %v4405_v42 }
 0xaa1   :  { %v3063_v5 = vmul.f32 -1.442695, %v2118_v0  ;;  %v3065_v16 = vmul.f32 -1.442695, %v2120_v9 }
 0xaa2   :  { %v3064_v22 = vmul.f32 -1.442695, %v2119_v54 }
 0xaa3   :  { %3382 = vpow2.f32 %v3063_v5 }
 0xaa4   :  { %3384 = vpow2.f32 %v3064_v22 }
 0xaa5   :  { %3386 = vtanh.f32 %v2121_v34 }
 0xaa6   :  { %3388 = vpow2.f32 %v3065_v16 }
 0xaad   :  { %v3383_v35 = vpop.eup %3382 }
 0xaae   :  { %v2131_v36 = vadd.f32 1.0, %v3383_v35  ;;  %v3385_v47 = vpop.eup %3384 }
 0xaaf   :  { %v2132_v37 = vadd.f32 1.0, %v3385_v47  ;;  %v3387_v18 = vpop.eup %3386 }
 0xab0   :  { %3390 = vrcp.f32 %v2131_v36  ;;  %v3389_v50 = vpop.eup %3388 }
 0xab1   :  { %3392 = vrcp.f32 %v2132_v37  ;;  %v2133_v6 = vadd.f32 1.0, %v3389_v50 }
 0xab3   :  { %3394 = vrcp.f32 %v2133_v6 }
 0xaba   :  { %v3391_v45 = vpop.eup %3390 }
 0xabb   :  { %v2145_v2 = vmul.f32 %v3391_v45, %v3387_v18  ;;  %v3393_v21 = vpop.eup %3392 }
 0xabc   :  { %v2144_v0 = vmul.f32 %v3393_v21, %v2142_v38 }
 0xabd   :  { %v3395_v63 = vpop.eup %3394 }
 0xabe   :  { %v4450_v56 = vadd.f32 %v2145_v2, %v2144_v0 }
 0xac0   :  { %3396 = vtanh.f32 %v4450_v56 }
 0xaca   :  { %v3397_v54 = vpop.eup %3396 }
 0xacb   :  { %v2148_v5 = vmul.f32 %v3397_v54, %v3395_v63 }
 0xacd   :  { %v2149_v22 = vpack.c.bf16 %v2148_v5, %v2148_v5 }
 0xacf   :  { %v2151_v44 = vrot.slane %v2149_v22, 1 }
 0xad1   :  { %2186 = vmatmul.mubr.bf16.vlgmr.msra.gmra.mrb[48].mxu0 %v2151_v44  ;;  %2227 = vmatmul.mubr.bf16.vlgmr.msra.gmra.mrb[48].mxu1 %v2151_v44 }
 0xad2   :  { %2283 = vmatpush1.bf16.msra.mxu0 %v4247_v39  ;;  %2324 = vmatpush1.bf16.msra.mxu1 %v4249_v20 }
 0xad3   :  { %2284 = vmatprep.subr.bf16.mxu0 %v4251_v59  ;;  %2325 = vmatprep.subr.bf16.mxu1 %v4253_v43 }
 0xad4   :  { %2314 = vmatprep.mubr.bf16.mxu0 %v3634_v4  ;;  %2355 = vmatprep.mubr.bf16.mxu1 %v3634_v4 }
 0xad6   :  { %2285 = vmatpush1.bf16.msra.mxu0 %v4257_v10  ;;  %2326 = vmatpush1.bf16.msra.mxu1 %v4259_v11 }
 0xad7   :  { %2286 = vmatprep.subr.bf16.mxu0 %v4263_v19  ;;  %2327 = vmatprep.subr.bf16.mxu1 %v4265_v17 }
 0xada   :  { %2287 = vmatpush1.bf16.msra.mxu0 %v4271_v15  ;;  %2328 = vmatpush1.bf16.msra.mxu1 %v4273_v58 }
 0xadb   :  { %2288 = vmatprep.subr.bf16.mxu0 %v4277_v13  ;;  %2329 = vmatprep.subr.bf16.mxu1 %v4279_v62 }
 0xade   :  { %2289 = vmatpush1.bf16.msra.mxu0 %v4283_v55  ;;  %2330 = vmatpush1.bf16.msra.mxu1 %v4285_v12 }
 0xadf   :  { %2290 = vmatprep.subr.bf16.mxu0 %v4289_v57  ;;  %2331 = vmatprep.subr.bf16.mxu1 %v4291_v14 }
 0xae2   :  { %2291 = vmatpush1.bf16.msra.mxu0 %v4295_v60  ;;  %2332 = vmatpush1.bf16.msra.mxu1 %v4297_v52 }
 0xae3   :  { %2292 = vmatprep.subr.bf16.mxu0 %v4301_v1  ;;  %2333 = vmatprep.subr.bf16.mxu1 %v4303_v25 }
 0xae6   :  { %2293 = vmatpush1.bf16.msra.mxu0 %v4307_v26  ;;  %2334 = vmatpush1.bf16.msra.mxu1 %v4309_v27 }
 0xae7   :  { %2294 = vmatprep.subr.bf16.mxu0 %v4313_v28  ;;  %2335 = vmatprep.subr.bf16.mxu1 %v4315_v29 }
 0xaea   :  { %2295 = vmatpush1.bf16.msra.mxu0 %v4319_v30  ;;  %2336 = vmatpush1.bf16.msra.mxu1 %v4321_v31 }
 0xaeb   :  { %2296 = vmatprep.subr.bf16.mxu0 %v4325_v40  ;;  %2337 = vmatprep.subr.bf16.mxu1 %v4327_v48 }
 0xaee   :  { %2297 = vmatpush1.bf16.msra.mxu0 %v4331_v49  ;;  %2338 = vmatpush1.bf16.msra.mxu1 %v4333_v41 }
 0xaef   :  { %2411 = vmatprep.subr.bf16.mxu0 %v4236_v23  ;;  %2452 = vmatprep.subr.bf16.mxu1 %v4238_v24 }
 0xba4   :  { %v2187_v46 = vpop.f32.mrb[48].mxu0  ;;  %v2228_v7 = vpop.f32.mrb[48].mxu1 }
 0xba5   :  { %v2239_v9 = vrot.slane %v2187_v46, 4  ;;  %v2189_v34 = vpop.f32.mrb[49].mxu0  ;;  %v2230_v16 = vpop.f32.mrb[49].mxu1  ;;  %v2241_v21 = vrot.slane %v2228_v7, 4  ;;  %v2271_v7 = vrot.slane %v4450_v56, 6 }
 0xba6   :  { %v2240_v35 = vrot.slane %v2189_v34, 4  ;;  %v2191_v36 = vpop.f32.mrb[50].mxu0  ;;  %v2232_v47 = vpop.f32.mrb[50].mxu1  ;;  %v2242_v6 = vrot.slane %v2230_v16, 4 }
 0xba7   :  { %v2247_v37 = vadd.f32 %v2239_v9, %v4396_v53  ;;  %v2192_v18 = vpop.f32.mrb[51].mxu0  ;;  %v2233_v50 = vpop.f32.mrb[51].mxu1  ;;  %v2249_v0 = vadd.f32 %v2241_v21, %v4402_v61 }
 0xba8   :  { %v2248_v45 = vadd.f32 %v2240_v35, %v4398_v33  ;;  %v2250_v63 = vadd.f32 %v2242_v6, %v4405_v42 }
 0xba9   :  { %v3066_v38 = vmul.f32 -1.442695, %v2247_v37  ;;  %v3068_v54 = vmul.f32 -1.442695, %v2249_v0 }
 0xbaa   :  { %v3067_v2 = vmul.f32 -1.442695, %v2248_v45 }
 0xbab   :  { %3398 = vpow2.f32 %v3066_v38 }
 0xbac   :  { %3400 = vpow2.f32 %v3067_v2 }
 0xbad   :  { %3402 = vtanh.f32 %v2250_v63 }
 0xbae   :  { %3404 = vpow2.f32 %v3068_v54 }
 0xbb5   :  { %v3399_v5 = vpop.eup %3398 }
 0xbb6   :  { %v2260_v22 = vadd.f32 1.0, %v3399_v5  ;;  %v3401_v44 = vpop.eup %3400 }
 0xbb7   :  { %v2261_v46 = vadd.f32 1.0, %v3401_v44  ;;  %v3403_v9 = vpop.eup %3402 }
 0xbb8   :  { %3406 = vrcp.f32 %v2260_v22  ;;  %v3405_v34 = vpop.eup %3404 }
 0xbb9   :  { %3408 = vrcp.f32 %v2261_v46  ;;  %v2262_v47 = vadd.f32 1.0, %v3405_v34 }
 0xbbb   :  { %3410 = vrcp.f32 %v2262_v47 }
 0xbc2   :  { %v3407_v35 = vpop.eup %3406 }
 0xbc3   :  { %v2274_v36 = vmul.f32 %v3407_v35, %v3403_v9  ;;  %v3409_v16 = vpop.eup %3408 }
 0xbc4   :  { %v2273_v37 = vmul.f32 %v3409_v16, %v2271_v7 }
 0xbc5   :  { %v3411_v50 = vpop.eup %3410 }
 0xbc6   :  { %v4492_v18 = vadd.f32 %v2274_v36, %v2273_v37 }
 0xbc8   :  { %3412 = vtanh.f32 %v4492_v18 }
 0xbd2   :  { %v3413_v45 = vpop.eup %3412 }
 0xbd3   :  { %v2277_v38 = vmul.f32 %v3413_v45, %v3411_v50 }
 0xbd5   :  { %v2278_v2 = vpack.c.bf16 %v2277_v38, %v2277_v38 }
 0xbd7   :  { %v2280_v21 = vrot.slane %v2278_v2, 2 }
 0xbd9   :  { %2315 = vmatmul.mubr.bf16.vlgmr.msra.gmra.mrb[52].mxu0 %v2280_v21  ;;  %2356 = vmatmul.mubr.bf16.vlgmr.msra.gmra.mrb[52].mxu1 %v2280_v21 }
 0xbda   :  { %2412 = vmatpush1.bf16.msra.mxu0 %v4247_v39  ;;  %2453 = vmatpush1.bf16.msra.mxu1 %v4249_v20 }
 0xbdb   :  { %2413 = vmatprep.subr.bf16.mxu0 %v4251_v59  ;;  %2454 = vmatprep.subr.bf16.mxu1 %v4253_v43 }
 0xbdc   :  { %2443 = vmatprep.mubr.bf16.mxu0 %v3634_v4  ;;  %2484 = vmatprep.mubr.bf16.mxu1 %v3634_v4 }
 0xbde   :  { %2414 = vmatpush1.bf16.msra.mxu0 %v4257_v10  ;;  %2455 = vmatpush1.bf16.msra.mxu1 %v4259_v11 }
 0xbdf   :  { %2415 = vmatprep.subr.bf16.mxu0 %v4263_v19  ;;  %2456 = vmatprep.subr.bf16.mxu1 %v4265_v17 }
 0xbe2   :  { %2416 = vmatpush1.bf16.msra.mxu0 %v4271_v15  ;;  %2457 = vmatpush1.bf16.msra.mxu1 %v4273_v58 }
 0xbe3   :  { %2417 = vmatprep.subr.bf16.mxu0 %v4277_v13  ;;  %2458 = vmatprep.subr.bf16.mxu1 %v4279_v62 }
 0xbe6   :  { %2418 = vmatpush1.bf16.msra.mxu0 %v4283_v55  ;;  %2459 = vmatpush1.bf16.msra.mxu1 %v4285_v12 }
 0xbe7   :  { %2419 = vmatprep.subr.bf16.mxu0 %v4289_v57  ;;  %2460 = vmatprep.subr.bf16.mxu1 %v4291_v14 }
 0xbea   :  { %2420 = vmatpush1.bf16.msra.mxu0 %v4295_v60  ;;  %2461 = vmatpush1.bf16.msra.mxu1 %v4297_v52 }
 0xbeb   :  { %2421 = vmatprep.subr.bf16.mxu0 %v4301_v1  ;;  %2462 = vmatprep.subr.bf16.mxu1 %v4303_v25 }
 0xbee   :  { %2422 = vmatpush1.bf16.msra.mxu0 %v4307_v26  ;;  %2463 = vmatpush1.bf16.msra.mxu1 %v4309_v27 }
 0xbef   :  { %2423 = vmatprep.subr.bf16.mxu0 %v4313_v28  ;;  %2464 = vmatprep.subr.bf16.mxu1 %v4315_v29 }
 0xbf2   :  { %2424 = vmatpush1.bf16.msra.mxu0 %v4319_v30  ;;  %2465 = vmatpush1.bf16.msra.mxu1 %v4321_v31 }
 0xbf3   :  { %2425 = vmatprep.subr.bf16.mxu0 %v4325_v40  ;;  %2466 = vmatprep.subr.bf16.mxu1 %v4327_v48 }
 0xbf6   :  { %2426 = vmatpush1.bf16.msra.mxu0 %v4331_v49  ;;  %2467 = vmatpush1.bf16.msra.mxu1 %v4333_v41 }
 0xbf7   :  { %2525 = vmatprep.subr.bf16.mxu0 %v4236_v23  ;;  %2566 = vmatprep.subr.bf16.mxu1 %v4238_v24 }
 0xcac   :  { %v2316_v56 = vpop.f32.mrb[52].mxu0  ;;  %v2357_v6 = vpop.f32.mrb[52].mxu1 }
 0xcad   :  { %v2368_v0 = vrot.slane %v2316_v56, 2  ;;  %v2318_v63 = vpop.f32.mrb[53].mxu0  ;;  %v2359_v54 = vpop.f32.mrb[53].mxu1  ;;  %v2370_v16 = vrot.slane %v2357_v6, 2  ;;  %v2400_v6 = vrot.slane %v4492_v18, 6 }
 0xcae   :  { %v2369_v5 = vrot.slane %v2318_v63, 2  ;;  %v2320_v22 = vpop.f32.mrb[54].mxu0  ;;  %v2361_v44 = vpop.f32.mrb[54].mxu1  ;;  %v2371_v47 = vrot.slane %v2359_v54, 2 }
 0xcaf   :  { %v2376_v46 = vadd.f32 %v2368_v0, %v4396_v53  ;;  %v2321_v9 = vpop.f32.mrb[55].mxu0  ;;  %v2362_v34 = vpop.f32.mrb[55].mxu1  ;;  %v2378_v37 = vadd.f32 %v2370_v16, %v4402_v61 }
 0xcb0   :  { %v2377_v35 = vadd.f32 %v2369_v5, %v4398_v33  ;;  %v2379_v50 = vadd.f32 %v2371_v47, %v4405_v42 }
 0xcb1   :  { %v3069_v7 = vmul.f32 -1.442695, %v2376_v46  ;;  %v3071_v45 = vmul.f32 -1.442695, %v2378_v37 }
 0xcb2   :  { %v3070_v36 = vmul.f32 -1.442695, %v2377_v35 }
 0xcb3   :  { %3414 = vpow2.f32 %v3069_v7 }
 0xcb4   :  { %3416 = vpow2.f32 %v3070_v36 }
 0xcb5   :  { %3418 = vtanh.f32 %v2379_v50 }
 0xcb6   :  { %3420 = vpow2.f32 %v3071_v45 }
 0xcbd   :  { %v3415_v38 = vpop.eup %3414 }
 0xcbe   :  { %v2389_v2 = vadd.f32 1.0, %v3415_v38  ;;  %v3417_v21 = vpop.eup %3416 }
 0xcbf   :  { %v2390_v53 = vadd.f32 1.0, %v3417_v21  ;;  %v3419_v33 = vpop.eup %3418 }
 0xcc0   :  { %3422 = vrcp.f32 %v2389_v2  ;;  %v3421_v56 = vpop.eup %3420 }
 0xcc1   :  { %3424 = vrcp.f32 %v2390_v53  ;;  %v2391_v5 = vadd.f32 1.0, %v3421_v56 }
 0xcc3   :  { %3426 = vrcp.f32 %v2391_v5 }
 0xcca   :  { %v3423_v0 = vpop.eup %3422 }
 0xccb   :  { %v2403_v63 = vmul.f32 %v3423_v0, %v3419_v33  ;;  %v3425_v54 = vpop.eup %3424 }
 0xccc   :  { %v2402_v61 = vmul.f32 %v3425_v54, %v2400_v6 }
 0xccd   :  { %v3427_v42 = vpop.eup %3426 }
 0xcce   :  { %v4534_v22 = vadd.f32 %v2403_v63, %v2402_v61 }
 0xcd0   :  { %3428 = vtanh.f32 %v4534_v22  ;;  %v2517_v61 = vrot.slane %v4534_v22, 6 }
 0xcda   :  { %v3429_v44 = vpop.eup %3428 }
 0xcdb   :  { %v2406_v46 = vmul.f32 %v3429_v44, %v3427_v42 }
 0xcdd   :  { %v2407_v9 = vpack.c.bf16 %v2406_v46, %v2406_v46 }
 0xcdf   :  { %v2409_v34 = vrot.slane %v2407_v9, 3 }
 0xce1   :  { %2444 = vmatmul.mubr.bf16.vlgmr.msra.gmra.mrb[56].mxu0 %v2409_v34  ;;  %2485 = vmatmul.mubr.bf16.vlgmr.msra.gmra.mrb[56].mxu1 %v2409_v34 }
 0xce2   :  { %2526 = vmatpush1.bf16.msra.mxu0 %v4247_v39  ;;  %2567 = vmatpush1.bf16.msra.mxu1 %v4249_v20 }
 0xce3   :  { %2527 = vmatprep.subr.bf16.mxu0 %v4251_v59  ;;  %2568 = vmatprep.subr.bf16.mxu1 %v4253_v43 }
 0xce4   :  { %2557 = vmatprep.mubr.bf16.mxu0 %v3634_v4  ;;  %2598 = vmatprep.mubr.bf16.mxu1 %v3634_v4 }
 0xce6   :  { %2528 = vmatpush1.bf16.msra.mxu0 %v4257_v10  ;;  %2569 = vmatpush1.bf16.msra.mxu1 %v4259_v11 }
 0xce7   :  { %2529 = vmatprep.subr.bf16.mxu0 %v4263_v19  ;;  %2570 = vmatprep.subr.bf16.mxu1 %v4265_v17 }
 0xcea   :  { %2530 = vmatpush1.bf16.msra.mxu0 %v4271_v15  ;;  %2571 = vmatpush1.bf16.msra.mxu1 %v4273_v58 }
 0xceb   :  { %2531 = vmatprep.subr.bf16.mxu0 %v4277_v13  ;;  %2572 = vmatprep.subr.bf16.mxu1 %v4279_v62 }
 0xcee   :  { %2532 = vmatpush1.bf16.msra.mxu0 %v4283_v55  ;;  %2573 = vmatpush1.bf16.msra.mxu1 %v4285_v12 }
 0xcef   :  { %2533 = vmatprep.subr.bf16.mxu0 %v4289_v57  ;;  %2574 = vmatprep.subr.bf16.mxu1 %v4291_v14 }
 0xcf2   :  { %2534 = vmatpush1.bf16.msra.mxu0 %v4295_v60  ;;  %2575 = vmatpush1.bf16.msra.mxu1 %v4297_v52 }
 0xcf3   :  { %2535 = vmatprep.subr.bf16.mxu0 %v4301_v1  ;;  %2576 = vmatprep.subr.bf16.mxu1 %v4303_v25 }
 0xcf6   :  { %2536 = vmatpush1.bf16.msra.mxu0 %v4307_v26  ;;  %2577 = vmatpush1.bf16.msra.mxu1 %v4309_v27 }
 0xcf7   :  { %2537 = vmatprep.subr.bf16.mxu0 %v4313_v28  ;;  %2578 = vmatprep.subr.bf16.mxu1 %v4315_v29 }
 0xcfa   :  { %2538 = vmatpush1.bf16.msra.mxu0 %v4319_v30  ;;  %2579 = vmatpush1.bf16.msra.mxu1 %v4321_v31 }
 0xcfb   :  { %2539 = vmatprep.subr.bf16.mxu0 %v4325_v40  ;;  %2580 = vmatprep.subr.bf16.mxu1 %v4327_v48 }
 0xcfe   :  { %2540 = vmatpush1.bf16.msra.mxu0 %v4331_v49  ;;  %2581 = vmatpush1.bf16.msra.mxu1 %v4333_v41 }
 0xcff   :  { %2654 = vmatprep.subr.bf16.mxu0 %v4236_v23  ;;  %2695 = vmatprep.subr.bf16.mxu1 %v4238_v24 }
 0xdb4   :  { %v2445_v18 = vpop.f32.mrb[56].mxu0  ;;  %v2486_v35 = vpop.f32.mrb[56].mxu1 }
 0xdb5   :  { %v2493_v7 = vadd.f32 %v2445_v18, %v4388_v3  ;;  %v2447_v36 = vpop.f32.mrb[57].mxu0  ;;  %v2488_v16 = vpop.f32.mrb[57].mxu1  ;;  %v2495_v23 = vadd.f32 %v2486_v35, %v4390_v8 }
 0xdb6   :  { %v2494_v47 = vadd.f32 %v2447_v36, %v4392_v51  ;;  %v2449_v37 = vpop.f32.mrb[58].mxu0  ;;  %v2490_v50 = vpop.f32.mrb[58].mxu1  ;;  %v2496_v24 = vadd.f32 %v2488_v16, %v4394_v32 }
 0xdb7   :  { %v3072_v45 = vmul.f32 -1.442695, %v2493_v7  ;;  %v2450_v38 = vpop.f32.mrb[59].mxu0  ;;  %v2491_v2 = vpop.f32.mrb[59].mxu1  ;;  %v3074_v53 = vmul.f32 -1.442695, %v2495_v23 }
 0xdb8   :  { %v3073_v21 = vmul.f32 -1.442695, %v2494_v47  ;;  %v3528_v23 = vld [vmem:[#allocation8] ss:$16 sps:$4 sm:$0xff]  }
 0xdb9   :  { %3430 = vpow2.f32 %v3072_v45 }
 0xdba   :  { %3432 = vpow2.f32 %v3073_v21 }
 0xdbb   :  { %3434 = vtanh.f32 %v2496_v24  ;;  %v3529_v24 = vld [vmem:[#allocation8 + $0x8] ss:$16 sps:$4 sm:$0xff]  }
 0xdbc   :  { %3436 = vpow2.f32 %v3074_v53  ;;  %v3530_v53 = vld [vmem:[#allocation8 + $0x24] ss:$16 sps:$4 sm:$0xff]  }
 0xdc3   :  { %v3431_v33 = vpop.eup %3430 }
 0xdc4   :  { %v2506_v56 = vadd.f32 1.0, %v3431_v33  ;;  %v3433_v0 = vpop.eup %3432  ;;  %v3531_v33 = vld [vmem:[#allocation8 + $0x2c] ss:$16 sps:$4 sm:$0xff]  }
 0xdc5   :  { %v2507_v6 = vadd.f32 1.0, %v3433_v0  ;;  %v3435_v63 = vpop.eup %3434  ;;  %v3533_v0 = vld [vmem:[#allocation8 + $0x28] ss:$16 sps:$4 sm:$0xff]  }
 0xdc6   :  { %3438 = vrcp.f32 %v2506_v56  ;;  %v3437_v54 = vpop.eup %3436  ;;  %v3532_v56 = vld [vmem:[#allocation8 + $0x20] ss:$16 sps:$4 sm:$0xff]  }
 0xdc7   :  { %3440 = vrcp.f32 %v2507_v6  ;;  %v2508_v46 = vadd.f32 1.0, %v3437_v54  ;;  %v3534_v6 = vld [vmem:[#allocation8 + $0x44] ss:$16 sps:$4 sm:$0xff]   ;;  %v3536_v54 = vld [vmem:[#allocation8 + $0x40] ss:$16 sps:$4 sm:$0xff]  }
 0xdc9   :  { %3442 = vrcp.f32 %v2508_v46  ;;  %v3541_v46 = vld [vmem:[#allocation8 + $0x68] ss:$16 sps:$4 sm:$0xff]  }
 0xdd0   :  { %v3439_v5 = vpop.eup %3438 }
 0xdd1   :  { %v2520_v42 = vmul.f32 %v3439_v5, %v3435_v63  ;;  %v3441_v44 = vpop.eup %3440  ;;  %v3535_v63 = vld [vmem:[#allocation8 + $0x4c] ss:$16 sps:$4 sm:$0xff]   ;;  %v3537_v5 = vld [vmem:[#allocation8 + $0x48] ss:$16 sps:$4 sm:$0xff]  }
 0xdd2   :  { %v2519_v9 = vmul.f32 %v3441_v44, %v2517_v61  ;;  %v3538_v61 = vld [vmem:[#allocation8 + $0x64] ss:$16 sps:$4 sm:$0xff]   ;;  %v3540_v44 = vld [vmem:[#allocation8 + $0x60] ss:$16 sps:$4 sm:$0xff]  }
 0xdd3   :  { %v3443_v18 = vpop.eup %3442 }
 0xdd4   :  { %v4576_v34 = vadd.f32 %v2520_v42, %v2519_v9  ;;  %v3539_v42 = vld [vmem:[#allocation8 + $0x6c] ss:$16 sps:$4 sm:$0xff]  }
 0xdd5   :  { %v3543_v9 = vld [vmem:[#allocation8 + $0x8c] ss:$16 sps:$4 sm:$0xff]  }
 0xdd6   :  { %3444 = vtanh.f32 %v4576_v34 }
 0xde0   :  { %v3445_v35 = vpop.eup %3444 }
 0xde1   :  { %v2523_v7 = vmul.f32 %v3445_v35, %v3443_v18  ;;  %v3545_v18 = vld [vmem:[#allocation8 + $0x88] ss:$16 sps:$4 sm:$0xff]   ;;  %v3546_v35 = vld [vmem:[#allocation8 + $0xa4] ss:$16 sps:$4 sm:$0xff]  }
 0xde3   :  { %v2524_v36 = vpack.c.bf16 %v2523_v7, %v2523_v7  ;;  %v3547_v7 = vld [vmem:[#allocation8 + $0xac] ss:$16 sps:$4 sm:$0xff]  }
 0xde5   :  { %2558 = vmatmul.mubr.bf16.vlgmr.msra.gmra.mrb[60].mxu0 %v2524_v36  ;;  %2599 = vmatmul.mubr.bf16.vlgmr.msra.gmra.mrb[60].mxu1 %v2524_v36  ;;  %v3548_v36 = vld [vmem:[#allocation8 + $0xa0] ss:$16 sps:$4 sm:$0xff]  }
 0xde6   :  { %2655 = vmatpush1.bf16.msra.mxu0 %v4247_v39  ;;  %2696 = vmatpush1.bf16.msra.mxu1 %v4249_v20  ;;  %v3526_v39 = vld [vmem:[#allocation8 + $0x4] ss:$16 sps:$4 sm:$0xff]   ;;  %v3527_v20 = vld [vmem:[#allocation8 + $0xc] ss:$16 sps:$4 sm:$0xff]  }
 0xde7   :  { %2656 = vmatprep.subr.bf16.mxu0 %v4251_v59  ;;  %2697 = vmatprep.subr.bf16.mxu1 %v4253_v43 }
 0xde8   :  { %2686 = vmatprep.mubr.bf16.mxu0 %v3634_v4  ;;  %2727 = vmatprep.mubr.bf16.mxu1 %v3634_v4 }
 0xdea   :  { %2657 = vmatpush1.bf16.msra.mxu0 %v4257_v10  ;;  %2698 = vmatpush1.bf16.msra.mxu1 %v4259_v11 }
 0xdeb   :  { %2658 = vmatprep.subr.bf16.mxu0 %v4263_v19  ;;  %2699 = vmatprep.subr.bf16.mxu1 %v4265_v17 }
 0xdee   :  { %2659 = vmatpush1.bf16.msra.mxu0 %v4271_v15  ;;  %2700 = vmatpush1.bf16.msra.mxu1 %v4273_v58 }
 0xdef   :  { %2660 = vmatprep.subr.bf16.mxu0 %v4277_v13  ;;  %2701 = vmatprep.subr.bf16.mxu1 %v4279_v62 }
 0xdf2   :  { %2661 = vmatpush1.bf16.msra.mxu0 %v4283_v55  ;;  %2702 = vmatpush1.bf16.msra.mxu1 %v4285_v12 }
 0xdf3   :  { %2662 = vmatprep.subr.bf16.mxu0 %v4289_v57  ;;  %2703 = vmatprep.subr.bf16.mxu1 %v4291_v14 }
 0xdf6   :  { %2663 = vmatpush1.bf16.msra.mxu0 %v4295_v60  ;;  %2704 = vmatpush1.bf16.msra.mxu1 %v4297_v52 }
 0xdf7   :  { %2664 = vmatprep.subr.bf16.mxu0 %v4301_v1  ;;  %2705 = vmatprep.subr.bf16.mxu1 %v4303_v25 }
 0xdfa   :  { %2665 = vmatpush1.bf16.msra.mxu0 %v4307_v26  ;;  %2706 = vmatpush1.bf16.msra.mxu1 %v4309_v27 }
 0xdfb   :  { %2666 = vmatprep.subr.bf16.mxu0 %v4313_v28  ;;  %2707 = vmatprep.subr.bf16.mxu1 %v4315_v29 }
 0xdfe   :  { %2667 = vmatpush1.bf16.msra.mxu0 %v4319_v30  ;;  %2708 = vmatpush1.bf16.msra.mxu1 %v4321_v31 }
 0xdff   :  { %2668 = vmatprep.subr.bf16.mxu0 %v4325_v40  ;;  %2709 = vmatprep.subr.bf16.mxu1 %v4327_v48 }
 0xe02   :  { %2669 = vmatpush1.bf16.msra.mxu0 %v4331_v49  ;;  %2710 = vmatpush1.bf16.msra.mxu1 %v4333_v41  ;;  %v2643_v49 = vrot.slane %v4576_v34, 6  ;;  %v3544_v34 = vld [vmem:[#allocation8 + $0x80] ss:$16 sps:$4 sm:$0xff]  }
 0xe03   :  { %2783 = vmatprep.subr.bf16.mxu0 %v3526_v39  ;;  %2824 = vmatprep.subr.bf16.mxu1 %v3527_v20  ;;  %v3549_v39 = vld [vmem:[#allocation8 + $0xa8] ss:$16 sps:$4 sm:$0xff]   ;;  %v3550_v20 = vld [vmem:[#allocation8 + $0xc4] ss:$16 sps:$4 sm:$0xff]  }
 0xeb8   :  { %v2559_v59 = vpop.f32.mrb[60].mxu0  ;;  %v2600_v43 = vpop.f32.mrb[60].mxu1 }
 0xeb9   :  { %v2611_v10 = vrot.slane %v2559_v59, 6  ;;  %v2561_v11 = vpop.f32.mrb[61].mxu0  ;;  %v2602_v19 = vpop.f32.mrb[61].mxu1  ;;  %v2613_v60 = vrot.slane %v2600_v43, 6  ;;  %v3551_v59 = vld [vmem:[#allocation8 + $0xcc] ss:$16 sps:$4 sm:$0xff]  }
 0xeba   :  { %v2612_v17 = vrot.slane %v2561_v11, 6  ;;  %v2563_v15 = vpop.f32.mrb[62].mxu0  ;;  %v2604_v58 = vpop.f32.mrb[62].mxu1  ;;  %v2614_v52 = vrot.slane %v2602_v19, 6  ;;  %v3552_v43 = vld [vmem:[#allocation8 + $0xc0] ss:$16 sps:$4 sm:$0xff]  }
 0xebb   :  { %v2619_v13 = vadd.f32 %v2611_v10, %v4388_v3  ;;  %v2564_v62 = vpop.f32.mrb[63].mxu0  ;;  %v2605_v55 = vpop.f32.mrb[63].mxu1  ;;  %v2621_v1 = vadd.f32 %v2613_v60, %v4390_v8  ;;  %v3553_v10 = vld [vmem:[#allocation8 + $0xc8] ss:$16 sps:$4 sm:$0xff]   ;;  %v3554_v11 = vld [vmem:[#allocation8 + $0xe4] ss:$16 sps:$4 sm:$0xff]  }
 0xebc   :  { %v2620_v12 = vadd.f32 %v2612_v17, %v4392_v51  ;;  %v2622_v25 = vadd.f32 %v2614_v52, %v4394_v32  ;;  %v3555_v19 = vld [vmem:[#allocation8 + $0xec] ss:$16 sps:$4 sm:$0xff]   ;;  %v3556_v17 = vld [vmem:[#allocation8 + $0xe0] ss:$16 sps:$4 sm:$0xff]   ;;  %v3557_v15 = vld [vmem:[#allocation8 + $0xe8] ss:$16 sps:$4 sm:$0xff]  }
 0xebd   :  { %v3075_v57 = vmul.f32 -1.442695, %v2619_v13  ;;  %v3077_v26 = vmul.f32 -1.442695, %v2621_v1 }
 0xebe   :  { %v3076_v14 = vmul.f32 -1.442695, %v2620_v12 }
 0xebf   :  { %3446 = vpow2.f32 %v3075_v57 }
 0xec0   :  { %3448 = vpow2.f32 %v3076_v14 }
 0xec1   :  { %3450 = vtanh.f32 %v2622_v25 }
 0xec2   :  { %3452 = vpow2.f32 %v3077_v26 }
 0xec9   :  { %v3447_v27 = vpop.eup %3446 }
 0xeca   :  { %v2632_v28 = vadd.f32 1.0, %v3447_v27  ;;  %v3449_v29 = vpop.eup %3448 }
 0xecb   :  { %v2633_v30 = vadd.f32 1.0, %v3449_v29  ;;  %v3451_v31 = vpop.eup %3450 }
 0xecc   :  { %3454 = vrcp.f32 %v2632_v28  ;;  %v3453_v40 = vpop.eup %3452 }
 0xecd   :  { %3456 = vrcp.f32 %v2633_v30  ;;  %v2634_v16 = vadd.f32 1.0, %v3453_v40 }
 0xecf   :  { %3458 = vrcp.f32 %v2634_v16 }
 0xed6   :  { %v3455_v48 = vpop.eup %3454 }
 0xed7   :  { %v2646_v41 = vmul.f32 %v3455_v48, %v3451_v31  ;;  %v3457_v22 = vpop.eup %3456 }
 0xed8   :  { %v2645_v47 = vmul.f32 %v3457_v22, %v2643_v49 }
 0xed9   :  { %v3459_v50 = vpop.eup %3458 }
 0xeda   :  { %v4616_v37 = vadd.f32 %v2646_v41, %v2645_v47 }
 0xedc   :  { %3460 = vtanh.f32 %v4616_v37 }
 0xee6   :  { %v3461_v45 = vpop.eup %3460 }
 0xee7   :  { %v2649_v38 = vmul.f32 %v3461_v45, %v3459_v50 }
 0xee9   :  { %v2650_v2 = vpack.c.bf16 %v2649_v38, %v2649_v38  ;;  %v2772_v38 = vrot.slane %v4616_v37, 6 }
 0xeeb   :  { %v2652_v21 = vrot.slane %v2650_v2, 1 }
 0xeed   :  { %2687 = vmatmul.mubr.bf16.vlgmr.msra.gmra.mrb[64].mxu0 %v2652_v21  ;;  %2728 = vmatmul.mubr.bf16.vlgmr.msra.gmra.mrb[64].mxu1 %v2652_v21 }
 0xeee   :  { %2784 = vmatpush1.bf16.msra.mxu0 %v3528_v23  ;;  %2825 = vmatpush1.bf16.msra.mxu1 %v3529_v24 }
 0xeef   :  { %2785 = vmatprep.subr.bf16.mxu0 %v3530_v53  ;;  %2826 = vmatprep.subr.bf16.mxu1 %v3531_v33 }
 0xef0   :  { %2815 = vmatprep.mubr.bf16.mxu0 %v3634_v4  ;;  %2856 = vmatprep.mubr.bf16.mxu1 %v3634_v4  ;;  %v3542_v4 = vld [vmem:[#allocation8 + $0x84] ss:$16 sps:$4 sm:$0xff]  }
 0xef2   :  { %2786 = vmatpush1.bf16.msra.mxu0 %v3532_v56  ;;  %2827 = vmatpush1.bf16.msra.mxu1 %v3533_v0 }
 0xef3   :  { %2787 = vmatprep.subr.bf16.mxu0 %v3534_v6  ;;  %2828 = vmatprep.subr.bf16.mxu1 %v3535_v63 }
 0xef6   :  { %2788 = vmatpush1.bf16.msra.mxu0 %v3536_v54  ;;  %2829 = vmatpush1.bf16.msra.mxu1 %v3537_v5 }
 0xef7   :  { %2789 = vmatprep.subr.bf16.mxu0 %v3538_v61  ;;  %2830 = vmatprep.subr.bf16.mxu1 %v3539_v42 }
 0xefa   :  { %2790 = vmatpush1.bf16.msra.mxu0 %v3540_v44  ;;  %2831 = vmatpush1.bf16.msra.mxu1 %v3541_v46 }
 0xefb   :  { %2791 = vmatprep.subr.bf16.mxu0 %v3542_v4  ;;  %2832 = vmatprep.subr.bf16.mxu1 %v3543_v9 }
 0xefe   :  { %2792 = vmatpush1.bf16.msra.mxu0 %v3544_v34  ;;  %2833 = vmatpush1.bf16.msra.mxu1 %v3545_v18 }
 0xeff   :  { %2793 = vmatprep.subr.bf16.mxu0 %v3546_v35  ;;  %2834 = vmatprep.subr.bf16.mxu1 %v3547_v7 }
 0xf02   :  { %2794 = vmatpush1.bf16.msra.mxu0 %v3548_v36  ;;  %2835 = vmatpush1.bf16.msra.mxu1 %v3549_v39 }
 0xf03   :  { %2795 = vmatprep.subr.bf16.mxu0 %v3550_v20  ;;  %2836 = vmatprep.subr.bf16.mxu1 %v3551_v59 }
 0xf06   :  { %2796 = vmatpush1.bf16.msra.mxu0 %v3552_v43  ;;  %2837 = vmatpush1.bf16.msra.mxu1 %v3553_v10 }
 0xf07   :  { %2797 = vmatprep.subr.bf16.mxu0 %v3554_v11  ;;  %2838 = vmatprep.subr.bf16.mxu1 %v3555_v19 }
 0xf0a   :  { %2798 = vmatpush1.bf16.msra.mxu0 %v3556_v17  ;;  %2839 = vmatpush1.bf16.msra.mxu1 %v3557_v15 }
 0xfc0   :  { %v2688_v58 = vpop.f32.mrb[64].mxu0  ;;  %v2729_v13 = vpop.f32.mrb[64].mxu1 }
 0xfc1   :  { %v2740_v62 = vrot.slane %v2688_v58, 4  ;;  %v2690_v55 = vpop.f32.mrb[65].mxu0  ;;  %v2731_v12 = vpop.f32.mrb[65].mxu1  ;;  %v2742_v29 = vrot.slane %v2729_v13, 4 }
 0xfc2   :  { %v2741_v57 = vrot.slane %v2690_v55, 4  ;;  %v2692_v14 = vpop.f32.mrb[66].mxu0  ;;  %v2733_v60 = vpop.f32.mrb[66].mxu1  ;;  %v2743_v30 = vrot.slane %v2731_v12, 4 }
 0xfc3   :  { %v2748_v52 = vadd.f32 %v2740_v62, %v4388_v3  ;;  %v2693_v1 = vpop.f32.mrb[67].mxu0  ;;  %v2734_v25 = vpop.f32.mrb[67].mxu1  ;;  %v2750_v31 = vadd.f32 %v2742_v29, %v4390_v8  ;;  %v3084_v60 = vld [vmem:[%s4643_s7] ss:$0 sm:$0xff] }
 0xfc4   :  { %v2749_v26 = vadd.f32 %v2741_v57, %v4392_v51  ;;  %v2751_v40 = vadd.f32 %v2743_v30, %v4394_v32 }
 0xfc5   :  { %v3078_v27 = vmul.f32 -1.442695, %v2748_v52  ;;  %v3080_v48 = vmul.f32 -1.442695, %v2750_v31 }
 0xfc6   :  { %v3079_v28 = vmul.f32 -1.442695, %v2749_v26  ;;  %v3085_v26 = vld [vmem:[#allocation3] ss:$0 sm:$0xff] }
 0xfc7   :  { %3462 = vpow2.f32 %v3078_v27 }
 0xfc8   :  { %3464 = vpow2.f32 %v3079_v28 }
 0xfc9   :  { %3466 = vtanh.f32 %v2751_v40 }
 0xfca   :  { %3468 = vpow2.f32 %v3080_v48 }
 0xfd1   :  { %v3463_v49 = vpop.eup %3462 }
 0xfd2   :  { %v2761_v41 = vadd.f32 1.0, %v3463_v49  ;;  %v3465_v22 = vpop.eup %3464 }
 0xfd3   :  { %v2762_v16 = vadd.f32 1.0, %v3465_v22  ;;  %v3467_v47 = vpop.eup %3466 }
 0xfd4   :  { %3470 = vrcp.f32 %v2761_v41  ;;  %v3469_v50 = vpop.eup %3468 }
 0xfd5   :  { %3472 = vrcp.f32 %v2762_v16  ;;  %v2763_v23 = vadd.f32 1.0, %v3469_v50 }
 0xfd7   :  { %3474 = vrcp.f32 %v2763_v23 }
 0xfde   :  { %v3471_v45 = vpop.eup %3470 }
 0xfdf   :  { %v2775_v2 = vmul.f32 %v3471_v45, %v3467_v47  ;;  %v3473_v21 = vpop.eup %3472 }
 0xfe0   :  { %v2774_v24 = vmul.f32 %v3473_v21, %v2772_v38 }
 0xfe1   :  { %v3475_v33 = vpop.eup %3474 }
 0xfe2   :  { %v2776_v53 = vadd.f32 %v2775_v2, %v2774_v24 }
 0xfe4   :  { %3476 = vtanh.f32 %v2776_v53  ;;  %v2901_v13 = vrot.slane %v2776_v53, 6 }
 0xfee   :  { %v3477_v56 = vpop.eup %3476 }
 0xfef   :  { %v2778_v0 = vmul.f32 %v3477_v56, %v3475_v33 }
 0xff1   :  { %v2779_v6 = vpack.c.bf16 %v2778_v0, %v2778_v0 }
 0xff3   :  { %v2781_v63 = vrot.slane %v2779_v6, 2 }
 0xff5   :  { %2816 = vmatmul.mubr.bf16.vlgmr.msra.gmra.mrb[68].mxu0 %v2781_v63  ;;  %2857 = vmatmul.mubr.bf16.vlgmr.msra.gmra.mrb[68].mxu1 %v2781_v63 }
0x10c8   :  { %v2817_v54 = vpop.f32.mrb[68].mxu0  ;;  %v2858_v5 = vpop.f32.mrb[68].mxu1 }
0x10c9   :  { %v2869_v61 = vrot.slane %v2817_v54, 2  ;;  %v2819_v42 = vpop.f32.mrb[69].mxu0  ;;  %v2860_v44 = vpop.f32.mrb[69].mxu1  ;;  %v2871_v39 = vrot.slane %v2858_v5, 2 }
0x10ca   :  { %v2870_v37 = vrot.slane %v2819_v42, 2  ;;  %v2821_v46 = vpop.f32.mrb[70].mxu0  ;;  %v2862_v4 = vpop.f32.mrb[70].mxu1  ;;  %v2872_v20 = vrot.slane %v2860_v44, 2 }
0x10cb   :  { %v2877_v9 = vadd.f32 %v2869_v61, %v4388_v3  ;;  %v2822_v34 = vpop.f32.mrb[71].mxu0  ;;  %v2863_v18 = vpop.f32.mrb[71].mxu1  ;;  %v2879_v59 = vadd.f32 %v2871_v39, %v4390_v8 }
0x10cc   :  { %v2878_v35 = vadd.f32 %v2870_v37, %v4392_v51  ;;  %v2880_v43 = vadd.f32 %v2872_v20, %v4394_v32 }
0x10cd   :  { %v3081_v7 = vmul.f32 -1.442695, %v2877_v9  ;;  %v3083_v10 = vmul.f32 -1.442695, %v2879_v59 }
0x10ce   :  { %v3082_v36 = vmul.f32 -1.442695, %v2878_v35 }
0x10cf   :  { %3478 = vpow2.f32 %v3081_v7 }
0x10d0   :  { %3480 = vpow2.f32 %v3082_v36 }
0x10d1   :  { %3482 = vtanh.f32 %v2880_v43 }
0x10d2   :  { %3484 = vpow2.f32 %v3083_v10 }
0x10d9   :  { %v3479_v11 = vpop.eup %3478 }
0x10da   :  { %v2890_v19 = vadd.f32 1.0, %v3479_v11  ;;  %v3481_v17 = vpop.eup %3480 }
0x10db   :  { %v2891_v3 = vadd.f32 1.0, %v3481_v17  ;;  %v3483_v51 = vpop.eup %3482 }
0x10dc   :  { %3486 = vrcp.f32 %v2890_v19  ;;  %v3485_v15 = vpop.eup %3484 }
0x10dd   :  { %3488 = vrcp.f32 %v2891_v3  ;;  %v2892_v12 = vadd.f32 1.0, %v3485_v15 }
0x10df   :  { %3490 = vrcp.f32 %v2892_v12 }
0x10e6   :  { %v3487_v58 = vpop.eup %3486 }
0x10e7   :  { %v2904_v62 = vmul.f32 %v3487_v58, %v3483_v51  ;;  %v3489_v55 = vpop.eup %3488 }
0x10e8   :  { %v2903_v57 = vmul.f32 %v3489_v55, %v2901_v13 }
0x10e9   :  { %v3491_v32 = vpop.eup %3490 }
0x10ea   :  { %v2905_v8 = vadd.f32 %v2904_v62, %v2903_v57 }
0x10ec   :  { %3492 = vtanh.f32 %v2905_v8 }
0x10f6   :  { %v3493_v14 = vpop.eup %3492 }
0x10f7   :  { %v2907_v52 = vmul.f32 %v3493_v14, %v3491_v32 }
0x10f9   :  { %v2916_v1 = vmul.f32 %v3084_v60, %v2907_v52 }
0x10fb   :  { %v2918_v25 = vsel %vm2917_vm2, %v2916_v1, 0.0 }
0x10fc   :  { %2919 = vadd.xlane.f32.xlu0 %v2918_v25 }
0x1189   :  { %v2920_v27 = vpop.xlane.xlu0 %2919 }
0x118a   :  { %v2927_v28 = vadd.f32 %v3085_v26, %v2920_v27 }
0x118c   :  { %2929 = vst.msk [vmem:[%s4645_s9 - $0x6] sm:$0xc0] %vm2928_vm3, %v2927_v28 }
0x118d   :  { %2934 = vsyncpa [#allocation5], 1 }
0x118e   :  { %2935 = vsyncpa [#allocation7], 1 }

</bundles_post_ra>
